<compile_context>
chip_gen: v7x
topology: tpu7x:2x2x1
jax: 0.10.0
libtpu: 0.0.40
codegen_flags: <defaults>
</compile_context>

<pallas_src>
from functools import partial

import jax
import jax.numpy as jnp
from jax.experimental import pallas as pl
from jax.experimental.pallas import tpu as pltpu


LANE = 128      # TPU lane width: output channels are padded to a multiple of this
NSLOPE = 0.2    # LeakyReLU negative slope
IN_EPS = 1e-5   # InstanceNorm eps

# Single-buffer grid-invariant operands (weights / bias).  Flipped to False by
# the fallback in __main__ if this Pallas version rejects pipeline_mode.
_BUFFER_CONSTANTS = True


def _round_up(x, m):
    return -(-x // m) * m


def _vmem_bytes(shape, dtype):
    """Rough VMEM footprint of one buffer (lane/sublane tile padding included)."""
    item = jnp.dtype(dtype).itemsize
    dims = list(shape)
    dims[-1] = _round_up(dims[-1], 128)
    if len(dims) >= 2:
        dims[-2] = _round_up(dims[-2], 32 // item)
    n = 1
    for d in dims:
        n *= d
    return n * item


def _vmem_cap_bytes():
    """~80% of this generation's physical VMEM (conservative 64 MiB fallback)."""
    try:
        phys = int(getattr(pltpu.get_tpu_info(), "vmem_capacity_bytes", 0)) or (64 << 20)
    except Exception:
        phys = 64 << 20
    return int(phys * 0.8)


def _const_spec(block_shape, index_map):
    """BlockSpec for operands whose block index never changes across the grid."""
    if _BUFFER_CONSTANTS:
        return pl.BlockSpec(block_shape, index_map, pipeline_mode=pl.Buffered(1))
    return pl.BlockSpec(block_shape, index_map)


# ---------------------------------------------------------------------------
# Kernel A: tap-folded conv (+bias)(+LeakyReLU) — one MXU matmul per row tile.
#   x_ref : (R, Kf)   folded input rows (bf16), Kf = Kt*Kt*Cin on lanes
#   w_ref : (Kf, Cop) folded weights (bf16), Cop padded to 128 lanes
#   b_ref : (1, Cop)  bias (f32)
#   o_ref : (R, Cop)  output rows, lane-dense
# ---------------------------------------------------------------------------
def _fold_kernel(x_ref, w_ref, b_ref, o_ref, *, do_act, nslope):
    y = jnp.dot(x_ref[...], w_ref[...], preferred_element_type=jnp.float32)
    y = y + b_ref[...]
    if do_act:
        y = jnp.where(y > 0, y, nslope * y)
    o_ref[...] = y.astype(o_ref.dtype)


# ---------------------------------------------------------------------------
# Kernel B: lazy-im2col conv (+bias)(+InstanceNorm)(+LeakyReLU), one sample.
#   x_ref : (P_in, Ct)        flattened padded input rows (bf16)
#   w_ref : (Kt*Kt, Ct, Cop)  per-tap weights (bf16)
#   b_ref : (1, Cop)          bias (f32)
#   o_ref : (P_out, Cop)      output rows (OH x Wt flattened), lane-dense
# Tap (i, j) contributes x_ref[i*Wt + j + p] to output flat-row p, i.e. a
# contiguous static slice.  Flat rows whose column index >= OW wrap a row
# boundary; they are excluded from the InstanceNorm statistics by an
# in-kernel iota mask and sliced away in the XLA wrapper.
# ---------------------------------------------------------------------------
def _conv_kernel(x_ref, w_ref, b_ref, o_ref, *, Kt, Wt, OH, OW,
                 do_norm, do_act, nslope, eps):
    P = OH * Wt

    # Tap loop: Kt*Kt MXU matmuls, bf16 operands, f32 accumulation carried as
    # a traced value (no per-tap scratch read-modify-write).
    acc = None
    for i in range(Kt):
        for j in range(Kt):
            xt = x_ref[pl.ds(i * Wt + j, P), :]
            d = jnp.dot(xt, w_ref[i * Kt + j], preferred_element_type=jnp.float32)
            acc = d if acc is None else acc + d
    y = acc + b_ref[...]

    if do_norm:
        # InstanceNorm2d(affine=False): per-channel stats over the valid
        # spatial positions only.  Mask built in-kernel (no VMEM tensor),
        # two-pass variance for numerical safety.
        pos = jax.lax.broadcasted_iota(jnp.int32, (P, 1), 0)
        mask = (jax.lax.rem(pos, jnp.int32(Wt)) < OW).astype(jnp.float32)
        inv_n = 1.0 / float(OH * OW)
        mean = jnp.sum(y * mask, axis=0, keepdims=True) * inv_n
        dv = (y - mean) * mask
        var = jnp.sum(dv * dv, axis=0, keepdims=True) * inv_n
        y = (y - mean) * jax.lax.rsqrt(var + eps)

    if do_act:
        y = jnp.where(y > 0, y, nslope * y)            # LeakyReLU

    o_ref[...] = y.astype(o_ref.dtype)


# ---------------------------------------------------------------------------
# One conv layer = XLA layout glue + one fused Pallas kernel.
# ---------------------------------------------------------------------------
def conv_layer(x, w, b, *, stride, pad, do_norm, do_act,
               nslope=NSLOPE, eps=IN_EPS, out_dtype=jnp.bfloat16):
    """Conv2d(4x4)(+InstanceNorm)(+LeakyReLU).

    x : (N, H, W, Cin_x) activation, channels possibly zero-padded to Cin_x.
    w : (4, 4, Cin_true, Cout_true) f32,  b : (Cout_true,) f32.
    Returns (N, OH, OW, Cop) with Cop = round_up(Cout_true, 128); padding
    channels are exactly zero, so the next layer consumes the result directly.
    """
    N, H, W, Cin_x = x.shape
    KH, KW, Cin_t, Cout_t = w.shape
    assert KH == KW == 4 and stride in (1, 2) and Cin_t <= Cin_x
    OH = (H + 2 * pad - KH) // stride + 1
    OW = (W + 2 * pad - KW) // stride + 1
    Cop = _round_up(Cout_t, LANE)
    vmem_cap = _vmem_cap_bytes()

    # Contract over the true input channels only (the lane-padding channels of
    # the previous layer are exactly zero, so the result is bit-identical).
    x = x[..., :Cin_t]

    # Zero-pad weights / bias to the lane-dense output channel count.
    wp = jnp.zeros((KH, KW, Cin_t, Cop), jnp.float32)
    wp = wp.at[..., :Cout_t].set(w.astype(jnp.float32))
    bp = jnp.zeros((1, Cop), jnp.float32).at[0, :Cout_t].set(b.astype(jnp.float32))

    if stride == 2:
        # Rewrite the stride-2 4x4 conv as a stride-1 2x2 conv over a
        # space-to-depth'd input (4*Cin channels): only unit-stride slices
        # are needed afterwards.
        Hp, Wp = H + 2 * pad, W + 2 * pad
        Hp2, Wp2 = Hp + (Hp % 2), Wp + (Wp % 2)
        Kt, Ct = 2, 4 * Cin_t
        fold = (not do_norm) and (Kt * Kt * Ct <= LANE)   # layer 1 (Cin = 3)
        # The lazy-tap path needs one extra zero row after space-to-depth so
        # every in-kernel tap slice stays in bounds; merged into this pad.
        extra = 0 if fold else 2
        xs = jnp.pad(x, ((0, 0), (pad, Hp2 - H - pad + extra),
                         (pad, Wp2 - W - pad), (0, 0)))
        Hs2 = xs.shape[1]
        xs = xs.reshape(N, Hs2 // 2, 2, Wp2 // 2, 2, Cin_t)
        xs = xs.transpose(0, 1, 3, 2, 4, 5).reshape(N, Hs2 // 2, Wp2 // 2, Ct)
        ws = wp.reshape(2, 2, 2, 2, Cin_t, Cop).transpose(0, 2, 1, 3, 4, 5)
        ws = ws.reshape(Kt * Kt, Ct, Cop)
    else:
        Kt, Ct = KH, Cin_t
        fold = False
        # pad + one extra zero row (merged) for in-bounds tap slices.
        xs = jnp.pad(x, ((0, 0), (pad, pad + 1), (pad, pad), (0, 0)))
        ws = wp.reshape(Kt * Kt, Ct, Cop)

    if fold:
        # ---- Folded path: taps -> contraction dim, spatial row tiling. ----
        Kf = Kt * Kt * Ct                      # e.g. 2*2*12 = 48 for layer 1
        taps = [xs[:, i:i + OH, j:j + OW, :] for i in range(Kt) for j in range(Kt)]
        xf = jnp.concatenate(taps, axis=-1).reshape(N, OH * OW, Kf)
        wf = ws.reshape(Kf, Cop).astype(jnp.bfloat16)

        P = OH * OW
        R = min(512, _round_up(P, 8))          # output-row tile
        P_pad = _round_up(P, R)
        if P_pad != P:
            xf = jnp.pad(xf, ((0, 0), (0, P_pad - P), (0, 0)))
        xf = xf.astype(jnp.bfloat16)

        est = (2 * (_vmem_bytes((R, Kf), jnp.bfloat16)
                    + _vmem_bytes((Kf, Cop), jnp.bfloat16)
                    + _vmem_bytes((1, Cop), jnp.float32)
                    + _vmem_bytes((R, Cop), out_dtype))
               + 3 * _vmem_bytes((R, Cop), jnp.float32) + (8 << 20))
        vmem_limit = int(min(est, vmem_cap))

        out = pl.pallas_call(
            partial(_fold_kernel, do_act=do_act, nslope=nslope),
            out_shape=jax.ShapeDtypeStruct((N, P_pad, Cop), out_dtype),
            grid=(N, P_pad // R),
            in_specs=[
                pl.BlockSpec((None, R, Kf), lambda n, r: (n, r, 0)),
                _const_spec((Kf, Cop), lambda n, r: (0, 0)),
                _const_spec((1, Cop), lambda n, r: (0, 0)),
            ],
            out_specs=pl.BlockSpec((None, R, Cop), lambda n, r: (n, r, 0)),
            compiler_params=pltpu.CompilerParams(
                dimension_semantics=("parallel", "parallel"),
                vmem_limit_bytes=vmem_limit),
        )(xf, wf, bp)
        return out[:, :P, :].reshape(N, OH, OW, Cop)

    # ---- Lazy-tap path (whole sample per grid step; needed for InstanceNorm). ----
    Wt = xs.shape[2]
    P_in = xs.shape[1] * Wt
    P_out = OH * Wt
    x2 = xs.reshape(N, P_in, Ct).astype(jnp.bfloat16)
    ws = ws.astype(jnp.bfloat16)

    est = (2 * (_vmem_bytes((P_in, Ct), jnp.bfloat16)
                + _vmem_bytes((Kt * Kt, Ct, Cop), jnp.bfloat16)
                + _vmem_bytes((1, Cop), jnp.float32)
                + _vmem_bytes((P_out, Cop), out_dtype))
           + 3 * _vmem_bytes((P_out, Cop), jnp.float32) + (8 << 20))
    vmem_limit = int(min(est, vmem_cap))

    kernel = partial(_conv_kernel, Kt=Kt, Wt=Wt, OH=OH, OW=OW,
                     do_norm=do_norm, do_act=do_act, nslope=nslope, eps=eps)

    out = pl.pallas_call(
        kernel,
        out_shape=jax.ShapeDtypeStruct((N, P_out, Cop), out_dtype),
        grid=(N,),
        in_specs=[
            pl.BlockSpec((None, P_in, Ct), lambda n: (n, 0, 0)),    # per-sample input
            _const_spec((Kt * Kt, Ct, Cop), lambda n: (0, 0, 0)),   # weights (resident)
            _const_spec((1, Cop), lambda n: (0, 0)),                # bias
        ],
        out_specs=pl.BlockSpec((None, P_out, Cop), lambda n: (n, 0, 0)),
        compiler_params=pltpu.CompilerParams(
            dimension_semantics=("parallel",),
            vmem_limit_bytes=vmem_limit),
    )(x2, ws, bp)

    # Drop the garbage columns introduced by the merged-spatial trick.
    return out.reshape(N, OH, Wt, Cop)[:, :, :OW, :]


# ---------------------------------------------------------------------------
# Discriminator: parameter construction + forward.
# ---------------------------------------------------------------------------
def _layer_cfgs(num_layers):
    # (stride, pad, instance_norm, leaky_relu) per conv layer
    cfgs = [(2, 1, False, True)]                        # first conv + LeakyReLU
    cfgs += [(2, 1, True, True)] * (num_layers - 3)     # conv + IN + LeakyReLU
    cfgs += [(1, 1, True, True), (1, 1, False, False)]  # stride-1 IN layer, final conv
    return cfgs


def make_discriminator_params(key, iconv=8, num_conv=4):
    """Mirror of Discriminator(iconv, num_conv) + reset_params (w ~ N(0, 0.02))."""
    chans = [3, iconv]
    c = iconv
    for _ in range(num_conv - 2):
        chans.append(c * 2)
        c *= 2
    chans.append(c * 2)
    chans.append(1)
    params = []
    for cin, cout in zip(chans[:-1], chans[1:]):
        key, wk = jax.random.split(key)
        w = 0.02 * jax.random.normal(wk, (4, 4, cin, cout), dtype=jnp.float32)
        params.append((w, jnp.zeros((cout,), jnp.float32)))
    return params


def discriminator_forward(x_nchw, params):
    """Forward pass; NCHW in, NCHW out (PyTorch convention)."""
    x = jnp.transpose(x_nchw, (0, 2, 3, 1))             # NHWC internally
    cfgs = _layer_cfgs(len(params))
    last = len(params) - 1
    for idx, ((w, b), (s, p, dn, da)) in enumerate(zip(params, cfgs)):
        x = conv_layer(x, w, b, stride=s, pad=p, do_norm=dn, do_act=da,
                       out_dtype=jnp.float32 if idx == last else jnp.bfloat16)
    x = x[..., :params[-1][0].shape[-1]]                # drop channel padding (-> 1)
    return jnp.transpose(x, (0, 3, 1, 2)).astype(jnp.float32)


def _reference_forward(x_nchw, params):
    """Plain-XLA f32 reference for a numerical sanity check."""
    x = jnp.transpose(x_nchw, (0, 2, 3, 1)).astype(jnp.float32)
    for (w, b), (s, p, dn, da) in zip(params, _layer_cfgs(len(params))):
        y = jax.lax.conv_general_dilated(
            x, w, window_strides=(s, s), padding=[(p, p), (p, p)],
            dimension_numbers=("NHWC", "HWIO", "NHWC")) + b
        if dn:
            mean = jnp.mean(y, axis=(1, 2), keepdims=True)
            var = jnp.mean(jnp.square(y - mean), axis=(1, 2), keepdims=True)
            y = (y - mean) * jax.lax.rsqrt(var + IN_EPS)
        if da:
            y = jnp.where(y > 0, y, NSLOPE * y)
        x = y
    return jnp.transpose(x, (0, 3, 1, 2))


if __name__ == "__main__":
    key = jax.random.PRNGKey(0)
    key, xk = jax.random.split(key)

    # Small config: iconv=8 (channels 3->8->16->32->64->1), input 2x3x32x32.
    params = make_discriminator_params(key, iconv=8, num_conv=4)
    x = jax.random.normal(xk, (2, 3, 32, 32), dtype=jnp.float32)

    def _run():
        o = jax.jit(discriminator_forward)(x, params)
        jax.block_until_ready(o)
        return o

    try:
        out = _run()
    except Exception:
        # Fallback if this Pallas version rejects pipeline_mode=pl.Buffered(1)
        # on grid-invariant operands: retry with default double buffering.
        globals()["_BUFFER_CONSTANTS"] = False
        out = _run()

    assert out.shape == (2, 1, 2, 2), out.shape

    # Sanity check vs. a plain-XLA f32 reference (bf16 MXU operands + bf16
    # inter-layer activations -> small relative differences are expected).
    ref = jax.jit(_reference_forward)(x, params)
    jax.block_until_ready(ref)
    err = float(jnp.max(jnp.abs(out - ref)))
    scale = float(jnp.max(jnp.abs(ref)))
    assert err <= 0.08 * scale + 1e-2, (err, scale)

    print("KERNEL_OK")
</pallas_src>

<mosaic_0001>
module attributes {stable_mosaic.version = 11 : i64} {
  func.func @_fold_kernel(%arg0: i32, %arg1: i32, %arg2: memref<1x256x48xbf16, #tpu.memory_space<vmem>>, %arg3: memref<48x128xbf16, #tpu.memory_space<vmem>>, %arg4: memref<1x128xf32, #tpu.memory_space<vmem>>, %arg5: memref<1x256x128xbf16, #tpu.memory_space<vmem>>) attributes {dimension_semantics = [#tpu.dimension_semantics<parallel>, #tpu.dimension_semantics<parallel>], iteration_bounds = array<i64: 2, 1>, scalar_prefetch = 0 : i64, scratch_operands = 0 : i64, tpu.core_type = #tpu.core_type<tc>, window_params = [{transform_indices = @transform_0, window_bounds = array<i64: 1, 256, 48>}, {pipeline_mode = #tpu.pipeline_mode<synchronous>, transform_indices = @transform_1, window_bounds = array<i64: 48, 128>}, {pipeline_mode = #tpu.pipeline_mode<synchronous>, transform_indices = @transform_2, window_bounds = array<i64: 1, 128>}, {transform_indices = @transform_3, window_bounds = array<i64: 1, 256, 128>}]} {
    %c0 = arith.constant 0 : index
    %c0_0 = arith.constant 0 : index
    %c0_1 = arith.constant 0 : index
    %0 = vector.load %arg2[%c0, %c0_0, %c0_1] : memref<1x256x48xbf16, #tpu.memory_space<vmem>>, vector<1x256x48xbf16>
    %1 = vector.shape_cast %0 : vector<1x256x48xbf16> to vector<256x48xbf16>
    %c0_2 = arith.constant 0 : index
    %c0_3 = arith.constant 0 : index
    %2 = vector.load %arg3[%c0_2, %c0_3] : memref<48x128xbf16, #tpu.memory_space<vmem>>, vector<48x128xbf16>
    %cst = arith.constant dense<0.000000e+00> : vector<256x128xf32>
    %3 = tpu.matmul %1, %2, %cst {dimension_numbers = #tpu.dot_dimension_numbers<[1], [0], [0], [1], [0, 0, 1, 1], [], []>} : vector<256x48xbf16>, vector<48x128xbf16>, vector<256x128xf32> -> vector<256x128xf32>
    %c0_4 = arith.constant 0 : index
    %c0_5 = arith.constant 0 : index
    %4 = vector.load %arg4[%c0_4, %c0_5] : memref<1x128xf32, #tpu.memory_space<vmem>>, vector<1x128xf32>
    %5 = vector.broadcast %4 : vector<1x128xf32> to vector<256x128xf32>
    %6 = arith.addf %3, %5 : vector<256x128xf32>
    %cst_6 = arith.constant 0.000000e+00 : f32
    %7 = vector.broadcast %cst_6 : f32 to vector<256x128xf32>
    %8 = arith.cmpf ogt, %6, %7 : vector<256x128xf32>
    %cst_7 = arith.constant 2.000000e-01 : f32
    %9 = vector.broadcast %cst_7 : f32 to vector<256x128xf32>
    %10 = arith.mulf %9, %6 : vector<256x128xf32>
    %11 = arith.select %8, %6, %10 : vector<256x128xi1>, vector<256x128xf32>
    %12 = arith.truncf %11 : vector<256x128xf32> to vector<256x128xbf16>
    %c0_8 = arith.constant 0 : index
    %c0_9 = arith.constant 0 : index
    %c0_10 = arith.constant 0 : index
    %13 = vector.load %arg5[%c0_8, %c0_9, %c0_10] : memref<1x256x128xbf16, #tpu.memory_space<vmem>>, vector<1x256x128xbf16>
    %14 = vector.shape_cast %13 : vector<1x256x128xbf16> to vector<256x128xbf16>
    %15 = vector.shape_cast %12 : vector<256x128xbf16> to vector<1x256x128xbf16>
    tpu.vector_store %arg5[%c0_8, %c0_9, %c0_10], %15 {strides = array<i32>} : memref<1x256x128xbf16, #tpu.memory_space<vmem>>, vector<1x256x128xbf16>,
    return
  }
  func.func @transform_0(%arg0: i32, %arg1: i32) -> (i32, i32, i32) {
    %c0_i32 = arith.constant 0 : i32
    %c0_i32_0 = arith.constant 0 : i32
    return %arg0, %arg1, %c0_i32 : i32, i32, i32
  }
  func.func @transform_1(%arg0: i32, %arg1: i32) -> (i32, i32) {
    %c0_i32 = arith.constant 0 : i32
    %c0_i32_0 = arith.constant 0 : i32
    %c0_i32_1 = arith.constant 0 : i32
    return %c0_i32, %c0_i32_0 : i32, i32
  }
  func.func @transform_2(%arg0: i32, %arg1: i32) -> (i32, i32) {
    %c0_i32 = arith.constant 0 : i32
    %c0_i32_0 = arith.constant 0 : i32
    %c0_i32_1 = arith.constant 0 : i32
    return %c0_i32, %c0_i32_0 : i32, i32
  }
  func.func @transform_3(%arg0: i32, %arg1: i32) -> (i32, i32, i32) {
    %c0_i32 = arith.constant 0 : i32
    %c0_i32_0 = arith.constant 0 : i32
    return %arg0, %arg1, %c0_i32 : i32, i32, i32
  }
}

module attributes {stable_mosaic.version = 11 : i64} {
  func.func @_conv_kernel(%arg0: i32, %arg1: memref<1x90x32xbf16, #tpu.memory_space<vmem>>, %arg2: memref<4x32x128xbf16, #tpu.memory_space<vmem>>, %arg3: memref<1x128xf32, #tpu.memory_space<vmem>>, %arg4: memref<1x72x128xbf16, #tpu.memory_space<vmem>>) attributes {dimension_semantics = [#tpu.dimension_semantics<parallel>], iteration_bounds = array<i64: 2>, scalar_prefetch = 0 : i64, scratch_operands = 0 : i64, tpu.core_type = #tpu.core_type<tc>, window_params = [{transform_indices = @transform_0, window_bounds = array<i64: 1, 90, 32>}, {pipeline_mode = #tpu.pipeline_mode<synchronous>, transform_indices = @transform_1, window_bounds = array<i64: 4, 32, 128>}, {pipeline_mode = #tpu.pipeline_mode<synchronous>, transform_indices = @transform_2, window_bounds = array<i64: 1, 128>}, {transform_indices = @transform_3, window_bounds = array<i64: 1, 72, 128>}]} {
    %c0 = arith.constant 0 : index
    %c0_0 = arith.constant 0 : index
    %c0_1 = arith.constant 0 : index
    %0 = vector.load %arg1[%c0, %c0_0, %c0_1] : memref<1x90x32xbf16, #tpu.memory_space<vmem>>, vector<1x72x32xbf16>
    %1 = vector.shape_cast %0 : vector<1x72x32xbf16> to vector<72x32xbf16>
    %c0_2 = arith.constant 0 : index
    %c0_3 = arith.constant 0 : index
    %c0_4 = arith.constant 0 : index
    %2 = vector.load %arg2[%c0_2, %c0_3, %c0_4] : memref<4x32x128xbf16, #tpu.memory_space<vmem>>, vector<1x32x128xbf16>
    %3 = vector.shape_cast %2 : vector<1x32x128xbf16> to vector<32x128xbf16>
    %cst = arith.constant dense<0.000000e+00> : vector<72x128xf32>
    %4 = tpu.matmul %1, %3, %cst {dimension_numbers = #tpu.dot_dimension_numbers<[1], [0], [0], [1], [0, 0, 1, 1], [], []>} : vector<72x32xbf16>, vector<32x128xbf16>, vector<72x128xf32> -> vector<72x128xf32>
    %c0_5 = arith.constant 0 : index
    %c1 = arith.constant 1 : index
    %c0_6 = arith.constant 0 : index
    %5 = vector.load %arg1[%c0_5, %c1, %c0_6] : memref<1x90x32xbf16, #tpu.memory_space<vmem>>, vector<1x72x32xbf16>
    %6 = vector.shape_cast %5 : vector<1x72x32xbf16> to vector<72x32xbf16>
    %c1_7 = arith.constant 1 : index
    %c0_8 = arith.constant 0 : index
    %c0_9 = arith.constant 0 : index
    %7 = vector.load %arg2[%c1_7, %c0_8, %c0_9] : memref<4x32x128xbf16, #tpu.memory_space<vmem>>, vector<1x32x128xbf16>
    %8 = vector.shape_cast %7 : vector<1x32x128xbf16> to vector<32x128xbf16>
    %cst_10 = arith.constant dense<0.000000e+00> : vector<72x128xf32>
    %9 = tpu.matmul %6, %8, %cst_10 {dimension_numbers = #tpu.dot_dimension_numbers<[1], [0], [0], [1], [0, 0, 1, 1], [], []>} : vector<72x32xbf16>, vector<32x128xbf16>, vector<72x128xf32> -> vector<72x128xf32>
    %10 = arith.addf %4, %9 : vector<72x128xf32>
    %c0_11 = arith.constant 0 : index
    %c9 = arith.constant 9 : index
    %c0_12 = arith.constant 0 : index
    %11 = vector.load %arg1[%c0_11, %c9, %c0_12] : memref<1x90x32xbf16, #tpu.memory_space<vmem>>, vector<1x72x32xbf16>
    %12 = vector.shape_cast %11 : vector<1x72x32xbf16> to vector<72x32xbf16>
    %c2 = arith.constant 2 : index
    %c0_13 = arith.constant 0 : index
    %c0_14 = arith.constant 0 : index
    %13 = vector.load %arg2[%c2, %c0_13, %c0_14] : memref<4x32x128xbf16, #tpu.memory_space<vmem>>, vector<1x32x128xbf16>
    %14 = vector.shape_cast %13 : vector<1x32x128xbf16> to vector<32x128xbf16>
    %cst_15 = arith.constant dense<0.000000e+00> : vector<72x128xf32>
    %15 = tpu.matmul %12, %14, %cst_15 {dimension_numbers = #tpu.dot_dimension_numbers<[1], [0], [0], [1], [0, 0, 1, 1], [], []>} : vector<72x32xbf16>, vector<32x128xbf16>, vector<72x128xf32> -> vector<72x128xf32>
    %16 = arith.addf %10, %15 : vector<72x128xf32>
    %c0_16 = arith.constant 0 : index
    %c10 = arith.constant 10 : index
    %c0_17 = arith.constant 0 : index
    %17 = vector.load %arg1[%c0_16, %c10, %c0_17] : memref<1x90x32xbf16, #tpu.memory_space<vmem>>, vector<1x72x32xbf16>
    %18 = vector.shape_cast %17 : vector<1x72x32xbf16> to vector<72x32xbf16>
    %c3 = arith.constant 3 : index
    %c0_18 = arith.constant 0 : index
    %c0_19 = arith.constant 0 : index
    %19 = vector.load %arg2[%c3, %c0_18, %c0_19] : memref<4x32x128xbf16, #tpu.memory_space<vmem>>, vector<1x32x128xbf16>
    %20 = vector.shape_cast %19 : vector<1x32x128xbf16> to vector<32x128xbf16>
    %cst_20 = arith.constant dense<0.000000e+00> : vector<72x128xf32>
    %21 = tpu.matmul %18, %20, %cst_20 {dimension_numbers = #tpu.dot_dimension_numbers<[1], [0], [0], [1], [0, 0, 1, 1], [], []>} : vector<72x32xbf16>, vector<32x128xbf16>, vector<72x128xf32> -> vector<72x128xf32>
    %22 = arith.addf %16, %21 : vector<72x128xf32>
    %c0_21 = arith.constant 0 : index
    %c0_22 = arith.constant 0 : index
    %23 = vector.load %arg3[%c0_21, %c0_22] : memref<1x128xf32, #tpu.memory_space<vmem>>, vector<1x128xf32>
    %24 = vector.broadcast %23 : vector<1x128xf32> to vector<72x128xf32>
    %25 = arith.addf %22, %24 : vector<72x128xf32>
    %26 = tpu.iota {dimensions = array<i32: 0>} : vector<72x1xi32>
    %c9_i32 = arith.constant 9 : i32
    %27 = vector.broadcast %c9_i32 : i32 to vector<72x1xi32>
    %28 = arith.remsi %26, %27 : vector<72x1xi32>
    %c8_i32 = arith.constant 8 : i32
    %29 = vector.broadcast %c8_i32 : i32 to vector<72x1xi32>
    %30 = arith.cmpi slt, %28, %29 : vector<72x1xi32>
    %31 = arith.extui %30 : vector<72x1xi1> to vector<72x1xi32>
    %32 = arith.sitofp %31 : vector<72x1xi32> to vector<72x1xf32>
    %33 = vector.broadcast %32 : vector<72x1xf32> to vector<72x128xf32>
    %34 = arith.mulf %25, %33 : vector<72x128xf32>
    %cst_23 = arith.constant dense<0.000000e+00> : vector<128xf32>
    %35 = vector.multi_reduction <add>, %34, %cst_23 [0] : vector<72x128xf32> to vector<128xf32>
    %36 = vector.shape_cast %35 : vector<128xf32> to vector<1x128xf32>
    %cst_24 = arith.constant 1.562500e-02 : f32
    %37 = vector.broadcast %cst_24 : f32 to vector<1x128xf32>
    %38 = arith.mulf %36, %37 : vector<1x128xf32>
    %39 = vector.broadcast %38 : vector<1x128xf32> to vector<72x128xf32>
    %40 = arith.subf %25, %39 : vector<72x128xf32>
    %41 = vector.broadcast %32 : vector<72x1xf32> to vector<72x128xf32>
    %42 = arith.mulf %40, %41 : vector<72x128xf32>
    %43 = arith.mulf %42, %42 : vector<72x128xf32>
    %cst_25 = arith.constant dense<0.000000e+00> : vector<128xf32>
    %44 = vector.multi_reduction <add>, %43, %cst_25 [0] : vector<72x128xf32> to vector<128xf32>
    %45 = vector.shape_cast %44 : vector<128xf32> to vector<1x128xf32>
    %cst_26 = arith.constant 1.562500e-02 : f32
    %46 = vector.broadcast %cst_26 : f32 to vector<1x128xf32>
    %47 = arith.mulf %45, %46 : vector<1x128xf32>
    %48 = vector.broadcast %38 : vector<1x128xf32> to vector<72x128xf32>
    %49 = arith.subf %25, %48 : vector<72x128xf32>
    %cst_27 = arith.constant 9.99999974E-6 : f32
    %50 = vector.broadcast %cst_27 : f32 to vector<1x128xf32>
    %51 = arith.addf %47, %50 : vector<1x128xf32>
    %52 = math.rsqrt %51 : vector<1x128xf32>
    %53 = vector.broadcast %52 : vector<1x128xf32> to vector<72x128xf32>
    %54 = arith.mulf %49, %53 : vector<72x128xf32>
    %cst_28 = arith.constant 0.000000e+00 : f32
    %55 = vector.broadcast %cst_28 : f32 to vector<72x128xf32>
    %56 = arith.cmpf ogt, %54, %55 : vector<72x128xf32>
    %cst_29 = arith.constant 2.000000e-01 : f32
    %57 = vector.broadcast %cst_29 : f32 to vector<72x128xf32>
    %58 = arith.mulf %57, %54 : vector<72x128xf32>
    %59 = arith.select %56, %54, %58 : vector<72x128xi1>, vector<72x128xf32>
    %60 = arith.truncf %59 : vector<72x128xf32> to vector<72x128xbf16>
    %c0_30 = arith.constant 0 : index
    %c0_31 = arith.constant 0 : index
    %c0_32 = arith.constant 0 : index
    %61 = vector.load %arg4[%c0_30, %c0_31, %c0_32] : memref<1x72x128xbf16, #tpu.memory_space<vmem>>, vector<1x72x128xbf16>
    %62 = vector.shape_cast %61 : vector<1x72x128xbf16> to vector<72x128xbf16>
    %63 = vector.shape_cast %60 : vector<72x128xbf16> to vector<1x72x128xbf16>
    tpu.vector_store %arg4[%c0_30, %c0_31, %c0_32], %63 {strides = array<i32>} : memref<1x72x128xbf16, #tpu.memory_space<vmem>>, vector<1x72x128xbf16>,
    return
  }
  func.func @transform_0(%arg0: i32) -> (i32, i32, i32) {
    %c0_i32 = arith.constant 0 : i32
    %c0_i32_0 = arith.constant 0 : i32
    %c0_i32_1 = arith.constant 0 : i32
    return %arg0, %c0_i32, %c0_i32_0 : i32, i32, i32
  }
  func.func @transform_1(%arg0: i32) -> (i32, i32, i32) {
    %c0_i32 = arith.constant 0 : i32
    %c0_i32_0 = arith.constant 0 : i32
    %c0_i32_1 = arith.constant 0 : i32
    %c0_i32_2 = arith.constant 0 : i32
    return %c0_i32, %c0_i32_0, %c0_i32_1 : i32, i32, i32
  }
  func.func @transform_2(%arg0: i32) -> (i32, i32) {
    %c0_i32 = arith.constant 0 : i32
    %c0_i32_0 = arith.constant 0 : i32
    %c0_i32_1 = arith.constant 0 : i32
    return %c0_i32, %c0_i32_0 : i32, i32
  }
  func.func @transform_3(%arg0: i32) -> (i32, i32, i32) {
    %c0_i32 = arith.constant 0 : i32
    %c0_i32_0 = arith.constant 0 : i32
    %c0_i32_1 = arith.constant 0 : i32
    return %arg0, %c0_i32, %c0_i32_0 : i32, i32, i32
  }
}

module attributes {stable_mosaic.version = 11 : i64} {
  func.func @_conv_kernel(%arg0: i32, %arg1: memref<1x30x64xbf16, #tpu.memory_space<vmem>>, %arg2: memref<4x64x128xbf16, #tpu.memory_space<vmem>>, %arg3: memref<1x128xf32, #tpu.memory_space<vmem>>, %arg4: memref<1x20x128xbf16, #tpu.memory_space<vmem>>) attributes {dimension_semantics = [#tpu.dimension_semantics<parallel>], iteration_bounds = array<i64: 2>, scalar_prefetch = 0 : i64, scratch_operands = 0 : i64, tpu.core_type = #tpu.core_type<tc>, window_params = [{transform_indices = @transform_0, window_bounds = array<i64: 1, 30, 64>}, {pipeline_mode = #tpu.pipeline_mode<synchronous>, transform_indices = @transform_1, window_bounds = array<i64: 4, 64, 128>}, {pipeline_mode = #tpu.pipeline_mode<synchronous>, transform_indices = @transform_2, window_bounds = array<i64: 1, 128>}, {transform_indices = @transform_3, window_bounds = array<i64: 1, 20, 128>}]} {
    %c0 = arith.constant 0 : index
    %c0_0 = arith.constant 0 : index
    %c0_1 = arith.constant 0 : index
    %0 = vector.load %arg1[%c0, %c0_0, %c0_1] : memref<1x30x64xbf16, #tpu.memory_space<vmem>>, vector<1x20x64xbf16>
    %1 = vector.shape_cast %0 : vector<1x20x64xbf16> to vector<20x64xbf16>
    %c0_2 = arith.constant 0 : index
    %c0_3 = arith.constant 0 : index
    %c0_4 = arith.constant 0 : index
    %2 = vector.load %arg2[%c0_2, %c0_3, %c0_4] : memref<4x64x128xbf16, #tpu.memory_space<vmem>>, vector<1x64x128xbf16>
    %3 = vector.shape_cast %2 : vector<1x64x128xbf16> to vector<64x128xbf16>
    %cst = arith.constant dense<0.000000e+00> : vector<20x128xf32>
    %4 = tpu.matmul %1, %3, %cst {dimension_numbers = #tpu.dot_dimension_numbers<[1], [0], [0], [1], [0, 0, 1, 1], [], []>} : vector<20x64xbf16>, vector<64x128xbf16>, vector<20x128xf32> -> vector<20x128xf32>
    %c0_5 = arith.constant 0 : index
    %c1 = arith.constant 1 : index
    %c0_6 = arith.constant 0 : index
    %5 = vector.load %arg1[%c0_5, %c1, %c0_6] : memref<1x30x64xbf16, #tpu.memory_space<vmem>>, vector<1x20x64xbf16>
    %6 = vector.shape_cast %5 : vector<1x20x64xbf16> to vector<20x64xbf16>
    %c1_7 = arith.constant 1 : index
    %c0_8 = arith.constant 0 : index
    %c0_9 = arith.constant 0 : index
    %7 = vector.load %arg2[%c1_7, %c0_8, %c0_9] : memref<4x64x128xbf16, #tpu.memory_space<vmem>>, vector<1x64x128xbf16>
    %8 = vector.shape_cast %7 : vector<1x64x128xbf16> to vector<64x128xbf16>
    %cst_10 = arith.constant dense<0.000000e+00> : vector<20x128xf32>
    %9 = tpu.matmul %6, %8, %cst_10 {dimension_numbers = #tpu.dot_dimension_numbers<[1], [0], [0], [1], [0, 0, 1, 1], [], []>} : vector<20x64xbf16>, vector<64x128xbf16>, vector<20x128xf32> -> vector<20x128xf32>
    %10 = arith.addf %4, %9 : vector<20x128xf32>
    %c0_11 = arith.constant 0 : index
    %c5 = arith.constant 5 : index
    %c0_12 = arith.constant 0 : index
    %11 = vector.load %arg1[%c0_11, %c5, %c0_12] : memref<1x30x64xbf16, #tpu.memory_space<vmem>>, vector<1x20x64xbf16>
    %12 = vector.shape_cast %11 : vector<1x20x64xbf16> to vector<20x64xbf16>
    %c2 = arith.constant 2 : index
    %c0_13 = arith.constant 0 : index
    %c0_14 = arith.constant 0 : index
    %13 = vector.load %arg2[%c2, %c0_13, %c0_14] : memref<4x64x128xbf16, #tpu.memory_space<vmem>>, vector<1x64x128xbf16>
    %14 = vector.shape_cast %13 : vector<1x64x128xbf16> to vector<64x128xbf16>
    %cst_15 = arith.constant dense<0.000000e+00> : vector<20x128xf32>
    %15 = tpu.matmul %12, %14, %cst_15 {dimension_numbers = #tpu.dot_dimension_numbers<[1], [0], [0], [1], [0, 0, 1, 1], [], []>} : vector<20x64xbf16>, vector<64x128xbf16>, vector<20x128xf32> -> vector<20x128xf32>
    %16 = arith.addf %10, %15 : vector<20x128xf32>
    %c0_16 = arith.constant 0 : index
    %c6 = arith.constant 6 : index
    %c0_17 = arith.constant 0 : index
    %17 = vector.load %arg1[%c0_16, %c6, %c0_17] : memref<1x30x64xbf16, #tpu.memory_space<vmem>>, vector<1x20x64xbf16>
    %18 = vector.shape_cast %17 : vector<1x20x64xbf16> to vector<20x64xbf16>
    %c3 = arith.constant 3 : index
    %c0_18 = arith.constant 0 : index
    %c0_19 = arith.constant 0 : index
    %19 = vector.load %arg2[%c3, %c0_18, %c0_19] : memref<4x64x128xbf16, #tpu.memory_space<vmem>>, vector<1x64x128xbf16>
    %20 = vector.shape_cast %19 : vector<1x64x128xbf16> to vector<64x128xbf16>
    %cst_20 = arith.constant dense<0.000000e+00> : vector<20x128xf32>
    %21 = tpu.matmul %18, %20, %cst_20 {dimension_numbers = #tpu.dot_dimension_numbers<[1], [0], [0], [1], [0, 0, 1, 1], [], []>} : vector<20x64xbf16>, vector<64x128xbf16>, vector<20x128xf32> -> vector<20x128xf32>
    %22 = arith.addf %16, %21 : vector<20x128xf32>
    %c0_21 = arith.constant 0 : index
    %c0_22 = arith.constant 0 : index
    %23 = vector.load %arg3[%c0_21, %c0_22] : memref<1x128xf32, #tpu.memory_space<vmem>>, vector<1x128xf32>
    %24 = vector.broadcast %23 : vector<1x128xf32> to vector<20x128xf32>
    %25 = arith.addf %22, %24 : vector<20x128xf32>
    %26 = tpu.iota {dimensions = array<i32: 0>} : vector<20x1xi32>
    %c5_i32 = arith.constant 5 : i32
    %27 = vector.broadcast %c5_i32 : i32 to vector<20x1xi32>
    %28 = arith.remsi %26, %27 : vector<20x1xi32>
    %c4_i32 = arith.constant 4 : i32
    %29 = vector.broadcast %c4_i32 : i32 to vector<20x1xi32>
    %30 = arith.cmpi slt, %28, %29 : vector<20x1xi32>
    %31 = arith.extui %30 : vector<20x1xi1> to vector<20x1xi32>
    %32 = arith.sitofp %31 : vector<20x1xi32> to vector<20x1xf32>
    %33 = vector.broadcast %32 : vector<20x1xf32> to vector<20x128xf32>
    %34 = arith.mulf %25, %33 : vector<20x128xf32>
    %cst_23 = arith.constant dense<0.000000e+00> : vector<128xf32>
    %35 = vector.multi_reduction <add>, %34, %cst_23 [0] : vector<20x128xf32> to vector<128xf32>
    %36 = vector.shape_cast %35 : vector<128xf32> to vector<1x128xf32>
    %cst_24 = arith.constant 6.250000e-02 : f32
    %37 = vector.broadcast %cst_24 : f32 to vector<1x128xf32>
    %38 = arith.mulf %36, %37 : vector<1x128xf32>
    %39 = vector.broadcast %38 : vector<1x128xf32> to vector<20x128xf32>
    %40 = arith.subf %25, %39 : vector<20x128xf32>
    %41 = vector.broadcast %32 : vector<20x1xf32> to vector<20x128xf32>
    %42 = arith.mulf %40, %41 : vector<20x128xf32>
    %43 = arith.mulf %42, %42 : vector<20x128xf32>
    %cst_25 = arith.constant dense<0.000000e+00> : vector<128xf32>
    %44 = vector.multi_reduction <add>, %43, %cst_25 [0] : vector<20x128xf32> to vector<128xf32>
    %45 = vector.shape_cast %44 : vector<128xf32> to vector<1x128xf32>
    %cst_26 = arith.constant 6.250000e-02 : f32
    %46 = vector.broadcast %cst_26 : f32 to vector<1x128xf32>
    %47 = arith.mulf %45, %46 : vector<1x128xf32>
    %48 = vector.broadcast %38 : vector<1x128xf32> to vector<20x128xf32>
    %49 = arith.subf %25, %48 : vector<20x128xf32>
    %cst_27 = arith.constant 9.99999974E-6 : f32
    %50 = vector.broadcast %cst_27 : f32 to vector<1x128xf32>
    %51 = arith.addf %47, %50 : vector<1x128xf32>
    %52 = math.rsqrt %51 : vector<1x128xf32>
    %53 = vector.broadcast %52 : vector<1x128xf32> to vector<20x128xf32>
    %54 = arith.mulf %49, %53 : vector<20x128xf32>
    %cst_28 = arith.constant 0.000000e+00 : f32
    %55 = vector.broadcast %cst_28 : f32 to vector<20x128xf32>
    %56 = arith.cmpf ogt, %54, %55 : vector<20x128xf32>
    %cst_29 = arith.constant 2.000000e-01 : f32
    %57 = vector.broadcast %cst_29 : f32 to vector<20x128xf32>
    %58 = arith.mulf %57, %54 : vector<20x128xf32>
    %59 = arith.select %56, %54, %58 : vector<20x128xi1>, vector<20x128xf32>
    %60 = arith.truncf %59 : vector<20x128xf32> to vector<20x128xbf16>
    %c0_30 = arith.constant 0 : index
    %c0_31 = arith.constant 0 : index
    %c0_32 = arith.constant 0 : index
    %61 = vector.load %arg4[%c0_30, %c0_31, %c0_32] : memref<1x20x128xbf16, #tpu.memory_space<vmem>>, vector<1x20x128xbf16>
    %62 = vector.shape_cast %61 : vector<1x20x128xbf16> to vector<20x128xbf16>
    %63 = vector.shape_cast %60 : vector<20x128xbf16> to vector<1x20x128xbf16>
    tpu.vector_store %arg4[%c0_30, %c0_31, %c0_32], %63 {strides = array<i32>} : memref<1x20x128xbf16, #tpu.memory_space<vmem>>, vector<1x20x128xbf16>,
    return
  }
  func.func @transform_0(%arg0: i32) -> (i32, i32, i32) {
    %c0_i32 = arith.constant 0 : i32
    %c0_i32_0 = arith.constant 0 : i32
    %c0_i32_1 = arith.constant 0 : i32
    return %arg0, %c0_i32, %c0_i32_0 : i32, i32, i32
  }
  func.func @transform_1(%arg0: i32) -> (i32, i32, i32) {
    %c0_i32 = arith.constant 0 : i32
    %c0_i32_0 = arith.constant 0 : i32
    %c0_i32_1 = arith.constant 0 : i32
    %c0_i32_2 = arith.constant 0 : i32
    return %c0_i32, %c0_i32_0, %c0_i32_1 : i32, i32, i32
  }
  func.func @transform_2(%arg0: i32) -> (i32, i32) {
    %c0_i32 = arith.constant 0 : i32
    %c0_i32_0 = arith.constant 0 : i32
    %c0_i32_1 = arith.constant 0 : i32
    return %c0_i32, %c0_i32_0 : i32, i32
  }
  func.func @transform_3(%arg0: i32) -> (i32, i32, i32) {
    %c0_i32 = arith.constant 0 : i32
    %c0_i32_0 = arith.constant 0 : i32
    %c0_i32_1 = arith.constant 0 : i32
    return %arg0, %c0_i32, %c0_i32_0 : i32, i32, i32
  }
}

module attributes {stable_mosaic.version = 11 : i64} {
  func.func @_conv_kernel(%arg0: i32, %arg1: memref<1x42x32xbf16, #tpu.memory_space<vmem>>, %arg2: memref<16x32x128xbf16, #tpu.memory_space<vmem>>, %arg3: memref<1x128xf32, #tpu.memory_space<vmem>>, %arg4: memref<1x18x128xbf16, #tpu.memory_space<vmem>>) attributes {dimension_semantics = [#tpu.dimension_semantics<parallel>], iteration_bounds = array<i64: 2>, scalar_prefetch = 0 : i64, scratch_operands = 0 : i64, tpu.core_type = #tpu.core_type<tc>, window_params = [{transform_indices = @transform_0, window_bounds = array<i64: 1, 42, 32>}, {pipeline_mode = #tpu.pipeline_mode<synchronous>, transform_indices = @transform_1, window_bounds = array<i64: 16, 32, 128>}, {pipeline_mode = #tpu.pipeline_mode<synchronous>, transform_indices = @transform_2, window_bounds = array<i64: 1, 128>}, {transform_indices = @transform_3, window_bounds = array<i64: 1, 18, 128>}]} {
    %c0 = arith.constant 0 : index
    %c0_0 = arith.constant 0 : index
    %c0_1 = arith.constant 0 : index
    %0 = vector.load %arg1[%c0, %c0_0, %c0_1] : memref<1x42x32xbf16, #tpu.memory_space<vmem>>, vector<1x18x32xbf16>
    %1 = vector.shape_cast %0 : vector<1x18x32xbf16> to vector<18x32xbf16>
    %c0_2 = arith.constant 0 : index
    %c0_3 = arith.constant 0 : index
    %c0_4 = arith.constant 0 : index
    %2 = vector.load %arg2[%c0_2, %c0_3, %c0_4] : memref<16x32x128xbf16, #tpu.memory_space<vmem>>, vector<1x32x128xbf16>
    %3 = vector.shape_cast %2 : vector<1x32x128xbf16> to vector<32x128xbf16>
    %cst = arith.constant dense<0.000000e+00> : vector<18x128xf32>
    %4 = tpu.matmul %1, %3, %cst {dimension_numbers = #tpu.dot_dimension_numbers<[1], [0], [0], [1], [0, 0, 1, 1], [], []>} : vector<18x32xbf16>, vector<32x128xbf16>, vector<18x128xf32> -> vector<18x128xf32>
    %c0_5 = arith.constant 0 : index
    %c1 = arith.constant 1 : index
    %c0_6 = arith.constant 0 : index
    %5 = vector.load %arg1[%c0_5, %c1, %c0_6] : memref<1x42x32xbf16, #tpu.memory_space<vmem>>, vector<1x18x32xbf16>
    %6 = vector.shape_cast %5 : vector<1x18x32xbf16> to vector<18x32xbf16>
    %c1_7 = arith.constant 1 : index
    %c0_8 = arith.constant 0 : index
    %c0_9 = arith.constant 0 : index
    %7 = vector.load %arg2[%c1_7, %c0_8, %c0_9] : memref<16x32x128xbf16, #tpu.memory_space<vmem>>, vector<1x32x128xbf16>
    %8 = vector.shape_cast %7 : vector<1x32x128xbf16> to vector<32x128xbf16>
    %cst_10 = arith.constant dense<0.000000e+00> : vector<18x128xf32>
    %9 = tpu.matmul %6, %8, %cst_10 {dimension_numbers = #tpu.dot_dimension_numbers<[1], [0], [0], [1], [0, 0, 1, 1], [], []>} : vector<18x32xbf16>, vector<32x128xbf16>, vector<18x128xf32> -> vector<18x128xf32>
    %10 = arith.addf %4, %9 : vector<18x128xf32>
    %c0_11 = arith.constant 0 : index
    %c2 = arith.constant 2 : index
    %c0_12 = arith.constant 0 : index
    %11 = vector.load %arg1[%c0_11, %c2, %c0_12] : memref<1x42x32xbf16, #tpu.memory_space<vmem>>, vector<1x18x32xbf16>
    %12 = vector.shape_cast %11 : vector<1x18x32xbf16> to vector<18x32xbf16>
    %c2_13 = arith.constant 2 : index
    %c0_14 = arith.constant 0 : index
    %c0_15 = arith.constant 0 : index
    %13 = vector.load %arg2[%c2_13, %c0_14, %c0_15] : memref<16x32x128xbf16, #tpu.memory_space<vmem>>, vector<1x32x128xbf16>
    %14 = vector.shape_cast %13 : vector<1x32x128xbf16> to vector<32x128xbf16>
    %cst_16 = arith.constant dense<0.000000e+00> : vector<18x128xf32>
    %15 = tpu.matmul %12, %14, %cst_16 {dimension_numbers = #tpu.dot_dimension_numbers<[1], [0], [0], [1], [0, 0, 1, 1], [], []>} : vector<18x32xbf16>, vector<32x128xbf16>, vector<18x128xf32> -> vector<18x128xf32>
    %16 = arith.addf %10, %15 : vector<18x128xf32>
    %c0_17 = arith.constant 0 : index
    %c3 = arith.constant 3 : index
    %c0_18 = arith.constant 0 : index
    %17 = vector.load %arg1[%c0_17, %c3, %c0_18] : memref<1x42x32xbf16, #tpu.memory_space<vmem>>, vector<1x18x32xbf16>
    %18 = vector.shape_cast %17 : vector<1x18x32xbf16> to vector<18x32xbf16>
    %c3_19 = arith.constant 3 : index
    %c0_20 = arith.constant 0 : index
    %c0_21 = arith.constant 0 : index
    %19 = vector.load %arg2[%c3_19, %c0_20, %c0_21] : memref<16x32x128xbf16, #tpu.memory_space<vmem>>, vector<1x32x128xbf16>
    %20 = vector.shape_cast %19 : vector<1x32x128xbf16> to vector<32x128xbf16>
    %cst_22 = arith.constant dense<0.000000e+00> : vector<18x128xf32>
    %21 = tpu.matmul %18, %20, %cst_22 {dimension_numbers = #tpu.dot_dimension_numbers<[1], [0], [0], [1], [0, 0, 1, 1], [], []>} : vector<18x32xbf16>, vector<32x128xbf16>, vector<18x128xf32> -> vector<18x128xf32>
    %22 = arith.addf %16, %21 : vector<18x128xf32>
    %c0_23 = arith.constant 0 : index
    %c6 = arith.constant 6 : index
    %c0_24 = arith.constant 0 : index
    %23 = vector.load %arg1[%c0_23, %c6, %c0_24] : memref<1x42x32xbf16, #tpu.memory_space<vmem>>, vector<1x18x32xbf16>
    %24 = vector.shape_cast %23 : vector<1x18x32xbf16> to vector<18x32xbf16>
    %c4 = arith.constant 4 : index
    %c0_25 = arith.constant 0 : index
    %c0_26 = arith.constant 0 : index
    %25 = vector.load %arg2[%c4, %c0_25, %c0_26] : memref<16x32x128xbf16, #tpu.memory_space<vmem>>, vector<1x32x128xbf16>
    %26 = vector.shape_cast %25 : vector<1x32x128xbf16> to vector<32x128xbf16>
    %cst_27 = arith.constant dense<0.000000e+00> : vector<18x128xf32>
    %27 = tpu.matmul %24, %26, %cst_27 {dimension_numbers = #tpu.dot_dimension_numbers<[1], [0], [0], [1], [0, 0, 1, 1], [], []>} : vector<18x32xbf16>, vector<32x128xbf16>, vector<18x128xf32> -> vector<18x128xf32>
    %28 = arith.addf %22, %27 : vector<18x128xf32>
    %c0_28 = arith.constant 0 : index
    %c7 = arith.constant 7 : index
    %c0_29 = arith.constant 0 : index
    %29 = vector.load %arg1[%c0_28, %c7, %c0_29] : memref<1x42x32xbf16, #tpu.memory_space<vmem>>, vector<1x18x32xbf16>
    %30 = vector.shape_cast %29 : vector<1x18x32xbf16> to vector<18x32xbf16>
    %c5 = arith.constant 5 : index
    %c0_30 = arith.constant 0 : index
    %c0_31 = arith.constant 0 : index
    %31 = vector.load %arg2[%c5, %c0_30, %c0_31] : memref<16x32x128xbf16, #tpu.memory_space<vmem>>, vector<1x32x128xbf16>
    %32 = vector.shape_cast %31 : vector<1x32x128xbf16> to vector<32x128xbf16>
    %cst_32 = arith.constant dense<0.000000e+00> : vector<18x128xf32>
    %33 = tpu.matmul %30, %32, %cst_32 {dimension_numbers = #tpu.dot_dimension_numbers<[1], [0], [0], [1], [0, 0, 1, 1], [], []>} : vector<18x32xbf16>, vector<32x128xbf16>, vector<18x128xf32> -> vector<18x128xf32>
    %34 = arith.addf %28, %33 : vector<18x128xf32>
    %c0_33 = arith.constant 0 : index
    %c8 = arith.constant 8 : index
    %c0_34 = arith.constant 0 : index
    %35 = vector.load %arg1[%c0_33, %c8, %c0_34] : memref<1x42x32xbf16, #tpu.memory_space<vmem>>, vector<1x18x32xbf16>
    %36 = vector.shape_cast %35 : vector<1x18x32xbf16> to vector<18x32xbf16>
    %c6_35 = arith.constant 6 : index
    %c0_36 = arith.constant 0 : index
    %c0_37 = arith.constant 0 : index
    %37 = vector.load %arg2[%c6_35, %c0_36, %c0_37] : memref<16x32x128xbf16, #tpu.memory_space<vmem>>, vector<1x32x128xbf16>
    %38 = vector.shape_cast %37 : vector<1x32x128xbf16> to vector<32x128xbf16>
    %cst_38 = arith.constant dense<0.000000e+00> : vector<18x128xf32>
    %39 = tpu.matmul %36, %38, %cst_38 {dimension_numbers = #tpu.dot_dimension_numbers<[1], [0], [0], [1], [0, 0, 1, 1], [], []>} : vector<18x32xbf16>, vector<32x128xbf16>, vector<18x128xf32> -> vector<18x128xf32>
    %40 = arith.addf %34, %39 : vector<18x128xf32>
    %c0_39 = arith.constant 0 : index
    %c9 = arith.constant 9 : index
    %c0_40 = arith.constant 0 : index
    %41 = vector.load %arg1[%c0_39, %c9, %c0_40] : memref<1x42x32xbf16, #tpu.memory_space<vmem>>, vector<1x18x32xbf16>
    %42 = vector.shape_cast %41 : vector<1x18x32xbf16> to vector<18x32xbf16>
    %c7_41 = arith.constant 7 : index
    %c0_42 = arith.constant 0 : index
    %c0_43 = arith.constant 0 : index
    %43 = vector.load %arg2[%c7_41, %c0_42, %c0_43] : memref<16x32x128xbf16, #tpu.memory_space<vmem>>, vector<1x32x128xbf16>
    %44 = vector.shape_cast %43 : vector<1x32x128xbf16> to vector<32x128xbf16>
    %cst_44 = arith.constant dense<0.000000e+00> : vector<18x128xf32>
    %45 = tpu.matmul %42, %44, %cst_44 {dimension_numbers = #tpu.dot_dimension_numbers<[1], [0], [0], [1], [0, 0, 1, 1], [], []>} : vector<18x32xbf16>, vector<32x128xbf16>, vector<18x128xf32> -> vector<18x128xf32>
    %46 = arith.addf %40, %45 : vector<18x128xf32>
    %c0_45 = arith.constant 0 : index
    %c12 = arith.constant 12 : index
    %c0_46 = arith.constant 0 : index
    %47 = vector.load %arg1[%c0_45, %c12, %c0_46] : memref<1x42x32xbf16, #tpu.memory_space<vmem>>, vector<1x18x32xbf16>
    %48 = vector.shape_cast %47 : vector<1x18x32xbf16> to vector<18x32xbf16>
    %c8_47 = arith.constant 8 : index
    %c0_48 = arith.constant 0 : index
    %c0_49 = arith.constant 0 : index
    %49 = vector.load %arg2[%c8_47, %c0_48, %c0_49] : memref<16x32x128xbf16, #tpu.memory_space<vmem>>, vector<1x32x128xbf16>
    %50 = vector.shape_cast %49 : vector<1x32x128xbf16> to vector<32x128xbf16>
    %cst_50 = arith.constant dense<0.000000e+00> : vector<18x128xf32>
    %51 = tpu.matmul %48, %50, %cst_50 {dimension_numbers = #tpu.dot_dimension_numbers<[1], [0], [0], [1], [0, 0, 1, 1], [], []>} : vector<18x32xbf16>, vector<32x128xbf16>, vector<18x128xf32> -> vector<18x128xf32>
    %52 = arith.addf %46, %51 : vector<18x128xf32>
    %c0_51 = arith.constant 0 : index
    %c13 = arith.constant 13 : index
    %c0_52 = arith.constant 0 : index
    %53 = vector.load %arg1[%c0_51, %c13, %c0_52] : memref<1x42x32xbf16, #tpu.memory_space<vmem>>, vector<1x18x32xbf16>
    %54 = vector.shape_cast %53 : vector<1x18x32xbf16> to vector<18x32xbf16>
    %c9_53 = arith.constant 9 : index
    %c0_54 = arith.constant 0 : index
    %c0_55 = arith.constant 0 : index
    %55 = vector.load %arg2[%c9_53, %c0_54, %c0_55] : memref<16x32x128xbf16, #tpu.memory_space<vmem>>, vector<1x32x128xbf16>
    %56 = vector.shape_cast %55 : vector<1x32x128xbf16> to vector<32x128xbf16>
    %cst_56 = arith.constant dense<0.000000e+00> : vector<18x128xf32>
    %57 = tpu.matmul %54, %56, %cst_56 {dimension_numbers = #tpu.dot_dimension_numbers<[1], [0], [0], [1], [0, 0, 1, 1], [], []>} : vector<18x32xbf16>, vector<32x128xbf16>, vector<18x128xf32> -> vector<18x128xf32>
    %58 = arith.addf %52, %57 : vector<18x128xf32>
    %c0_57 = arith.constant 0 : index
    %c14 = arith.constant 14 : index
    %c0_58 = arith.constant 0 : index
    %59 = vector.load %arg1[%c0_57, %c14, %c0_58] : memref<1x42x32xbf16, #tpu.memory_space<vmem>>, vector<1x18x32xbf16>
    %60 = vector.shape_cast %59 : vector<1x18x32xbf16> to vector<18x32xbf16>
    %c10 = arith.constant 10 : index
    %c0_59 = arith.constant 0 : index
    %c0_60 = arith.constant 0 : index
    %61 = vector.load %arg2[%c10, %c0_59, %c0_60] : memref<16x32x128xbf16, #tpu.memory_space<vmem>>, vector<1x32x128xbf16>
    %62 = vector.shape_cast %61 : vector<1x32x128xbf16> to vector<32x128xbf16>
    %cst_61 = arith.constant dense<0.000000e+00> : vector<18x128xf32>
    %63 = tpu.matmul %60, %62, %cst_61 {dimension_numbers = #tpu.dot_dimension_numbers<[1], [0], [0], [1], [0, 0, 1, 1], [], []>} : vector<18x32xbf16>, vector<32x128xbf16>, vector<18x128xf32> -> vector<18x128xf32>
    %64 = arith.addf %58, %63 : vector<18x128xf32>
    %c0_62 = arith.constant 0 : index
    %c15 = arith.constant 15 : index
    %c0_63 = arith.constant 0 : index
    %65 = vector.load %arg1[%c0_62, %c15, %c0_63] : memref<1x42x32xbf16, #tpu.memory_space<vmem>>, vector<1x18x32xbf16>
    %66 = vector.shape_cast %65 : vector<1x18x32xbf16> to vector<18x32xbf16>
    %c11 = arith.constant 11 : index
    %c0_64 = arith.constant 0 : index
    %c0_65 = arith.constant 0 : index
    %67 = vector.load %arg2[%c11, %c0_64, %c0_65] : memref<16x32x128xbf16, #tpu.memory_space<vmem>>, vector<1x32x128xbf16>
    %68 = vector.shape_cast %67 : vector<1x32x128xbf16> to vector<32x128xbf16>
    %cst_66 = arith.constant dense<0.000000e+00> : vector<18x128xf32>
    %69 = tpu.matmul %66, %68, %cst_66 {dimension_numbers = #tpu.dot_dimension_numbers<[1], [0], [0], [1], [0, 0, 1, 1], [], []>} : vector<18x32xbf16>, vector<32x128xbf16>, vector<18x128xf32> -> vector<18x128xf32>
    %70 = arith.addf %64, %69 : vector<18x128xf32>
    %c0_67 = arith.constant 0 : index
    %c18 = arith.constant 18 : index
    %c0_68 = arith.constant 0 : index
    %71 = vector.load %arg1[%c0_67, %c18, %c0_68] : memref<1x42x32xbf16, #tpu.memory_space<vmem>>, vector<1x18x32xbf16>
    %72 = vector.shape_cast %71 : vector<1x18x32xbf16> to vector<18x32xbf16>
    %c12_69 = arith.constant 12 : index
    %c0_70 = arith.constant 0 : index
    %c0_71 = arith.constant 0 : index
    %73 = vector.load %arg2[%c12_69, %c0_70, %c0_71] : memref<16x32x128xbf16, #tpu.memory_space<vmem>>, vector<1x32x128xbf16>
    %74 = vector.shape_cast %73 : vector<1x32x128xbf16> to vector<32x128xbf16>
    %cst_72 = arith.constant dense<0.000000e+00> : vector<18x128xf32>
    %75 = tpu.matmul %72, %74, %cst_72 {dimension_numbers = #tpu.dot_dimension_numbers<[1], [0], [0], [1], [0, 0, 1, 1], [], []>} : vector<18x32xbf16>, vector<32x128xbf16>, vector<18x128xf32> -> vector<18x128xf32>
    %76 = arith.addf %70, %75 : vector<18x128xf32>
    %c0_73 = arith.constant 0 : index
    %c19 = arith.constant 19 : index
    %c0_74 = arith.constant 0 : index
    %77 = vector.load %arg1[%c0_73, %c19, %c0_74] : memref<1x42x32xbf16, #tpu.memory_space<vmem>>, vector<1x18x32xbf16>
    %78 = vector.shape_cast %77 : vector<1x18x32xbf16> to vector<18x32xbf16>
    %c13_75 = arith.constant 13 : index
    %c0_76 = arith.constant 0 : index
    %c0_77 = arith.constant 0 : index
    %79 = vector.load %arg2[%c13_75, %c0_76, %c0_77] : memref<16x32x128xbf16, #tpu.memory_space<vmem>>, vector<1x32x128xbf16>
    %80 = vector.shape_cast %79 : vector<1x32x128xbf16> to vector<32x128xbf16>
    %cst_78 = arith.constant dense<0.000000e+00> : vector<18x128xf32>
    %81 = tpu.matmul %78, %80, %cst_78 {dimension_numbers = #tpu.dot_dimension_numbers<[1], [0], [0], [1], [0, 0, 1, 1], [], []>} : vector<18x32xbf16>, vector<32x128xbf16>, vector<18x128xf32> -> vector<18x128xf32>
    %82 = arith.addf %76, %81 : vector<18x128xf32>
    %c0_79 = arith.constant 0 : index
    %c20 = arith.constant 20 : index
    %c0_80 = arith.constant 0 : index
    %83 = vector.load %arg1[%c0_79, %c20, %c0_80] : memref<1x42x32xbf16, #tpu.memory_space<vmem>>, vector<1x18x32xbf16>
    %84 = vector.shape_cast %83 : vector<1x18x32xbf16> to vector<18x32xbf16>
    %c14_81 = arith.constant 14 : index
    %c0_82 = arith.constant 0 : index
    %c0_83 = arith.constant 0 : index
    %85 = vector.load %arg2[%c14_81, %c0_82, %c0_83] : memref<16x32x128xbf16, #tpu.memory_space<vmem>>, vector<1x32x128xbf16>
    %86 = vector.shape_cast %85 : vector<1x32x128xbf16> to vector<32x128xbf16>
    %cst_84 = arith.constant dense<0.000000e+00> : vector<18x128xf32>
    %87 = tpu.matmul %84, %86, %cst_84 {dimension_numbers = #tpu.dot_dimension_numbers<[1], [0], [0], [1], [0, 0, 1, 1], [], []>} : vector<18x32xbf16>, vector<32x128xbf16>, vector<18x128xf32> -> vector<18x128xf32>
    %88 = arith.addf %82, %87 : vector<18x128xf32>
    %c0_85 = arith.constant 0 : index
    %c21 = arith.constant 21 : index
    %c0_86 = arith.constant 0 : index
    %89 = vector.load %arg1[%c0_85, %c21, %c0_86] : memref<1x42x32xbf16, #tpu.memory_space<vmem>>, vector<1x18x32xbf16>
    %90 = vector.shape_cast %89 : vector<1x18x32xbf16> to vector<18x32xbf16>
    %c15_87 = arith.constant 15 : index
    %c0_88 = arith.constant 0 : index
    %c0_89 = arith.constant 0 : index
    %91 = vector.load %arg2[%c15_87, %c0_88, %c0_89] : memref<16x32x128xbf16, #tpu.memory_space<vmem>>, vector<1x32x128xbf16>
    %92 = vector.shape_cast %91 : vector<1x32x128xbf16> to vector<32x128xbf16>
    %cst_90 = arith.constant dense<0.000000e+00> : vector<18x128xf32>
    %93 = tpu.matmul %90, %92, %cst_90 {dimension_numbers = #tpu.dot_dimension_numbers<[1], [0], [0], [1], [0, 0, 1, 1], [], []>} : vector<18x32xbf16>, vector<32x128xbf16>, vector<18x128xf32> -> vector<18x128xf32>
    %94 = arith.addf %88, %93 : vector<18x128xf32>
    %c0_91 = arith.constant 0 : index
    %c0_92 = arith.constant 0 : index
    %95 = vector.load %arg3[%c0_91, %c0_92] : memref<1x128xf32, #tpu.memory_space<vmem>>, vector<1x128xf32>
    %96 = vector.broadcast %95 : vector<1x128xf32> to vector<18x128xf32>
    %97 = arith.addf %94, %96 : vector<18x128xf32>
    %98 = tpu.iota {dimensions = array<i32: 0>} : vector<18x1xi32>
    %c6_i32 = arith.constant 6 : i32
    %99 = vector.broadcast %c6_i32 : i32 to vector<18x1xi32>
    %100 = arith.remsi %98, %99 : vector<18x1xi32>
    %c3_i32 = arith.constant 3 : i32
    %101 = vector.broadcast %c3_i32 : i32 to vector<18x1xi32>
    %102 = arith.cmpi slt, %100, %101 : vector<18x1xi32>
    %103 = arith.extui %102 : vector<18x1xi1> to vector<18x1xi32>
    %104 = arith.sitofp %103 : vector<18x1xi32> to vector<18x1xf32>
    %105 = vector.broadcast %104 : vector<18x1xf32> to vector<18x128xf32>
    %106 = arith.mulf %97, %105 : vector<18x128xf32>
    %cst_93 = arith.constant dense<0.000000e+00> : vector<128xf32>
    %107 = vector.multi_reduction <add>, %106, %cst_93 [0] : vector<18x128xf32> to vector<128xf32>
    %108 = vector.shape_cast %107 : vector<128xf32> to vector<1x128xf32>
    %cst_94 = arith.constant 0.111111112 : f32
    %109 = vector.broadcast %cst_94 : f32 to vector<1x128xf32>
    %110 = arith.mulf %108, %109 : vector<1x128xf32>
    %111 = vector.broadcast %110 : vector<1x128xf32> to vector<18x128xf32>
    %112 = arith.subf %97, %111 : vector<18x128xf32>
    %113 = vector.broadcast %104 : vector<18x1xf32> to vector<18x128xf32>
    %114 = arith.mulf %112, %113 : vector<18x128xf32>
    %115 = arith.mulf %114, %114 : vector<18x128xf32>
    %cst_95 = arith.constant dense<0.000000e+00> : vector<128xf32>
    %116 = vector.multi_reduction <add>, %115, %cst_95 [0] : vector<18x128xf32> to vector<128xf32>
    %117 = vector.shape_cast %116 : vector<128xf32> to vector<1x128xf32>
    %cst_96 = arith.constant 0.111111112 : f32
    %118 = vector.broadcast %cst_96 : f32 to vector<1x128xf32>
    %119 = arith.mulf %117, %118 : vector<1x128xf32>
    %120 = vector.broadcast %110 : vector<1x128xf32> to vector<18x128xf32>
    %121 = arith.subf %97, %120 : vector<18x128xf32>
    %cst_97 = arith.constant 9.99999974E-6 : f32
    %122 = vector.broadcast %cst_97 : f32 to vector<1x128xf32>
    %123 = arith.addf %119, %122 : vector<1x128xf32>
    %124 = math.rsqrt %123 : vector<1x128xf32>
    %125 = vector.broadcast %124 : vector<1x128xf32> to vector<18x128xf32>
    %126 = arith.mulf %121, %125 : vector<18x128xf32>
    %cst_98 = arith.constant 0.000000e+00 : f32
    %127 = vector.broadcast %cst_98 : f32 to vector<18x128xf32>
    %128 = arith.cmpf ogt, %126, %127 : vector<18x128xf32>
    %cst_99 = arith.constant 2.000000e-01 : f32
    %129 = vector.broadcast %cst_99 : f32 to vector<18x128xf32>
    %130 = arith.mulf %129, %126 : vector<18x128xf32>
    %131 = arith.select %128, %126, %130 : vector<18x128xi1>, vector<18x128xf32>
    %132 = arith.truncf %131 : vector<18x128xf32> to vector<18x128xbf16>
    %c0_100 = arith.constant 0 : index
    %c0_101 = arith.constant 0 : index
    %c0_102 = arith.constant 0 : index
    %133 = vector.load %arg4[%c0_100, %c0_101, %c0_102] : memref<1x18x128xbf16, #tpu.memory_space<vmem>>, vector<1x18x128xbf16>
    %134 = vector.shape_cast %133 : vector<1x18x128xbf16> to vector<18x128xbf16>
    %135 = vector.shape_cast %132 : vector<18x128xbf16> to vector<1x18x128xbf16>
    tpu.vector_store %arg4[%c0_100, %c0_101, %c0_102], %135 {strides = array<i32>} : memref<1x18x128xbf16, #tpu.memory_space<vmem>>, vector<1x18x128xbf16>,
    return
  }
  func.func @transform_0(%arg0: i32) -> (i32, i32, i32) {
    %c0_i32 = arith.constant 0 : i32
    %c0_i32_0 = arith.constant 0 : i32
    %c0_i32_1 = arith.constant 0 : i32
    return %arg0, %c0_i32, %c0_i32_0 : i32, i32, i32
  }
  func.func @transform_1(%arg0: i32) -> (i32, i32, i32) {
    %c0_i32 = arith.constant 0 : i32
    %c0_i32_0 = arith.constant 0 : i32
    %c0_i32_1 = arith.constant 0 : i32
    %c0_i32_2 = arith.constant 0 : i32
    return %c0_i32, %c0_i32_0, %c0_i32_1 : i32, i32, i32
  }
  func.func @transform_2(%arg0: i32) -> (i32, i32) {
    %c0_i32 = arith.constant 0 : i32
    %c0_i32_0 = arith.constant 0 : i32
    %c0_i32_1 = arith.constant 0 : i32
    return %c0_i32, %c0_i32_0 : i32, i32
  }
  func.func @transform_3(%arg0: i32) -> (i32, i32, i32) {
    %c0_i32 = arith.constant 0 : i32
    %c0_i32_0 = arith.constant 0 : i32
    %c0_i32_1 = arith.constant 0 : i32
    return %arg0, %c0_i32, %c0_i32_0 : i32, i32, i32
  }
}

module attributes {stable_mosaic.version = 11 : i64} {
  func.func @_conv_kernel(%arg0: i32, %arg1: memref<1x30x64xbf16, #tpu.memory_space<vmem>>, %arg2: memref<16x64x128xbf16, #tpu.memory_space<vmem>>, %arg3: memref<1x128xf32, #tpu.memory_space<vmem>>, %arg4: memref<1x10x128xf32, #tpu.memory_space<vmem>>) attributes {dimension_semantics = [#tpu.dimension_semantics<parallel>], iteration_bounds = array<i64: 2>, scalar_prefetch = 0 : i64, scratch_operands = 0 : i64, tpu.core_type = #tpu.core_type<tc>, window_params = [{transform_indices = @transform_0, window_bounds = array<i64: 1, 30, 64>}, {pipeline_mode = #tpu.pipeline_mode<synchronous>, transform_indices = @transform_1, window_bounds = array<i64: 16, 64, 128>}, {pipeline_mode = #tpu.pipeline_mode<synchronous>, transform_indices = @transform_2, window_bounds = array<i64: 1, 128>}, {transform_indices = @transform_3, window_bounds = array<i64: 1, 10, 128>}]} {
    %c0 = arith.constant 0 : index
    %c0_0 = arith.constant 0 : index
    %c0_1 = arith.constant 0 : index
    %0 = vector.load %arg1[%c0, %c0_0, %c0_1] : memref<1x30x64xbf16, #tpu.memory_space<vmem>>, vector<1x10x64xbf16>
    %1 = vector.shape_cast %0 : vector<1x10x64xbf16> to vector<10x64xbf16>
    %c0_2 = arith.constant 0 : index
    %c0_3 = arith.constant 0 : index
    %c0_4 = arith.constant 0 : index
    %2 = vector.load %arg2[%c0_2, %c0_3, %c0_4] : memref<16x64x128xbf16, #tpu.memory_space<vmem>>, vector<1x64x128xbf16>
    %3 = vector.shape_cast %2 : vector<1x64x128xbf16> to vector<64x128xbf16>
    %cst = arith.constant dense<0.000000e+00> : vector<10x128xf32>
    %4 = tpu.matmul %1, %3, %cst {dimension_numbers = #tpu.dot_dimension_numbers<[1], [0], [0], [1], [0, 0, 1, 1], [], []>} : vector<10x64xbf16>, vector<64x128xbf16>, vector<10x128xf32> -> vector<10x128xf32>
    %c0_5 = arith.constant 0 : index
    %c1 = arith.constant 1 : index
    %c0_6 = arith.constant 0 : index
    %5 = vector.load %arg1[%c0_5, %c1, %c0_6] : memref<1x30x64xbf16, #tpu.memory_space<vmem>>, vector<1x10x64xbf16>
    %6 = vector.shape_cast %5 : vector<1x10x64xbf16> to vector<10x64xbf16>
    %c1_7 = arith.constant 1 : index
    %c0_8 = arith.constant 0 : index
    %c0_9 = arith.constant 0 : index
    %7 = vector.load %arg2[%c1_7, %c0_8, %c0_9] : memref<16x64x128xbf16, #tpu.memory_space<vmem>>, vector<1x64x128xbf16>
    %8 = vector.shape_cast %7 : vector<1x64x128xbf16> to vector<64x128xbf16>
    %cst_10 = arith.constant dense<0.000000e+00> : vector<10x128xf32>
    %9 = tpu.matmul %6, %8, %cst_10 {dimension_numbers = #tpu.dot_dimension_numbers<[1], [0], [0], [1], [0, 0, 1, 1], [], []>} : vector<10x64xbf16>, vector<64x128xbf16>, vector<10x128xf32> -> vector<10x128xf32>
    %10 = arith.addf %4, %9 : vector<10x128xf32>
    %c0_11 = arith.constant 0 : index
    %c2 = arith.constant 2 : index
    %c0_12 = arith.constant 0 : index
    %11 = vector.load %arg1[%c0_11, %c2, %c0_12] : memref<1x30x64xbf16, #tpu.memory_space<vmem>>, vector<1x10x64xbf16>
    %12 = vector.shape_cast %11 : vector<1x10x64xbf16> to vector<10x64xbf16>
    %c2_13 = arith.constant 2 : index
    %c0_14 = arith.constant 0 : index
    %c0_15 = arith.constant 0 : index
    %13 = vector.load %arg2[%c2_13, %c0_14, %c0_15] : memref<16x64x128xbf16, #tpu.memory_space<vmem>>, vector<1x64x128xbf16>
    %14 = vector.shape_cast %13 : vector<1x64x128xbf16> to vector<64x128xbf16>
    %cst_16 = arith.constant dense<0.000000e+00> : vector<10x128xf32>
    %15 = tpu.matmul %12, %14, %cst_16 {dimension_numbers = #tpu.dot_dimension_numbers<[1], [0], [0], [1], [0, 0, 1, 1], [], []>} : vector<10x64xbf16>, vector<64x128xbf16>, vector<10x128xf32> -> vector<10x128xf32>
    %16 = arith.addf %10, %15 : vector<10x128xf32>
    %c0_17 = arith.constant 0 : index
    %c3 = arith.constant 3 : index
    %c0_18 = arith.constant 0 : index
    %17 = vector.load %arg1[%c0_17, %c3, %c0_18] : memref<1x30x64xbf16, #tpu.memory_space<vmem>>, vector<1x10x64xbf16>
    %18 = vector.shape_cast %17 : vector<1x10x64xbf16> to vector<10x64xbf16>
    %c3_19 = arith.constant 3 : index
    %c0_20 = arith.constant 0 : index
    %c0_21 = arith.constant 0 : index
    %19 = vector.load %arg2[%c3_19, %c0_20, %c0_21] : memref<16x64x128xbf16, #tpu.memory_space<vmem>>, vector<1x64x128xbf16>
    %20 = vector.shape_cast %19 : vector<1x64x128xbf16> to vector<64x128xbf16>
    %cst_22 = arith.constant dense<0.000000e+00> : vector<10x128xf32>
    %21 = tpu.matmul %18, %20, %cst_22 {dimension_numbers = #tpu.dot_dimension_numbers<[1], [0], [0], [1], [0, 0, 1, 1], [], []>} : vector<10x64xbf16>, vector<64x128xbf16>, vector<10x128xf32> -> vector<10x128xf32>
    %22 = arith.addf %16, %21 : vector<10x128xf32>
    %c0_23 = arith.constant 0 : index
    %c5 = arith.constant 5 : index
    %c0_24 = arith.constant 0 : index
    %23 = vector.load %arg1[%c0_23, %c5, %c0_24] : memref<1x30x64xbf16, #tpu.memory_space<vmem>>, vector<1x10x64xbf16>
    %24 = vector.shape_cast %23 : vector<1x10x64xbf16> to vector<10x64xbf16>
    %c4 = arith.constant 4 : index
    %c0_25 = arith.constant 0 : index
    %c0_26 = arith.constant 0 : index
    %25 = vector.load %arg2[%c4, %c0_25, %c0_26] : memref<16x64x128xbf16, #tpu.memory_space<vmem>>, vector<1x64x128xbf16>
    %26 = vector.shape_cast %25 : vector<1x64x128xbf16> to vector<64x128xbf16>
    %cst_27 = arith.constant dense<0.000000e+00> : vector<10x128xf32>
    %27 = tpu.matmul %24, %26, %cst_27 {dimension_numbers = #tpu.dot_dimension_numbers<[1], [0], [0], [1], [0, 0, 1, 1], [], []>} : vector<10x64xbf16>, vector<64x128xbf16>, vector<10x128xf32> -> vector<10x128xf32>
    %28 = arith.addf %22, %27 : vector<10x128xf32>
    %c0_28 = arith.constant 0 : index
    %c6 = arith.constant 6 : index
    %c0_29 = arith.constant 0 : index
    %29 = vector.load %arg1[%c0_28, %c6, %c0_29] : memref<1x30x64xbf16, #tpu.memory_space<vmem>>, vector<1x10x64xbf16>
    %30 = vector.shape_cast %29 : vector<1x10x64xbf16> to vector<10x64xbf16>
    %c5_30 = arith.constant 5 : index
    %c0_31 = arith.constant 0 : index
    %c0_32 = arith.constant 0 : index
    %31 = vector.load %arg2[%c5_30, %c0_31, %c0_32] : memref<16x64x128xbf16, #tpu.memory_space<vmem>>, vector<1x64x128xbf16>
    %32 = vector.shape_cast %31 : vector<1x64x128xbf16> to vector<64x128xbf16>
    %cst_33 = arith.constant dense<0.000000e+00> : vector<10x128xf32>
    %33 = tpu.matmul %30, %32, %cst_33 {dimension_numbers = #tpu.dot_dimension_numbers<[1], [0], [0], [1], [0, 0, 1, 1], [], []>} : vector<10x64xbf16>, vector<64x128xbf16>, vector<10x128xf32> -> vector<10x128xf32>
    %34 = arith.addf %28, %33 : vector<10x128xf32>
    %c0_34 = arith.constant 0 : index
    %c7 = arith.constant 7 : index
    %c0_35 = arith.constant 0 : index
    %35 = vector.load %arg1[%c0_34, %c7, %c0_35] : memref<1x30x64xbf16, #tpu.memory_space<vmem>>, vector<1x10x64xbf16>
    %36 = vector.shape_cast %35 : vector<1x10x64xbf16> to vector<10x64xbf16>
    %c6_36 = arith.constant 6 : index
    %c0_37 = arith.constant 0 : index
    %c0_38 = arith.constant 0 : index
    %37 = vector.load %arg2[%c6_36, %c0_37, %c0_38] : memref<16x64x128xbf16, #tpu.memory_space<vmem>>, vector<1x64x128xbf16>
    %38 = vector.shape_cast %37 : vector<1x64x128xbf16> to vector<64x128xbf16>
    %cst_39 = arith.constant dense<0.000000e+00> : vector<10x128xf32>
    %39 = tpu.matmul %36, %38, %cst_39 {dimension_numbers = #tpu.dot_dimension_numbers<[1], [0], [0], [1], [0, 0, 1, 1], [], []>} : vector<10x64xbf16>, vector<64x128xbf16>, vector<10x128xf32> -> vector<10x128xf32>
    %40 = arith.addf %34, %39 : vector<10x128xf32>
    %c0_40 = arith.constant 0 : index
    %c8 = arith.constant 8 : index
    %c0_41 = arith.constant 0 : index
    %41 = vector.load %arg1[%c0_40, %c8, %c0_41] : memref<1x30x64xbf16, #tpu.memory_space<vmem>>, vector<1x10x64xbf16>
    %42 = vector.shape_cast %41 : vector<1x10x64xbf16> to vector<10x64xbf16>
    %c7_42 = arith.constant 7 : index
    %c0_43 = arith.constant 0 : index
    %c0_44 = arith.constant 0 : index
    %43 = vector.load %arg2[%c7_42, %c0_43, %c0_44] : memref<16x64x128xbf16, #tpu.memory_space<vmem>>, vector<1x64x128xbf16>
    %44 = vector.shape_cast %43 : vector<1x64x128xbf16> to vector<64x128xbf16>
    %cst_45 = arith.constant dense<0.000000e+00> : vector<10x128xf32>
    %45 = tpu.matmul %42, %44, %cst_45 {dimension_numbers = #tpu.dot_dimension_numbers<[1], [0], [0], [1], [0, 0, 1, 1], [], []>} : vector<10x64xbf16>, vector<64x128xbf16>, vector<10x128xf32> -> vector<10x128xf32>
    %46 = arith.addf %40, %45 : vector<10x128xf32>
    %c0_46 = arith.constant 0 : index
    %c10 = arith.constant 10 : index
    %c0_47 = arith.constant 0 : index
    %47 = vector.load %arg1[%c0_46, %c10, %c0_47] : memref<1x30x64xbf16, #tpu.memory_space<vmem>>, vector<1x10x64xbf16>
    %48 = vector.shape_cast %47 : vector<1x10x64xbf16> to vector<10x64xbf16>
    %c8_48 = arith.constant 8 : index
    %c0_49 = arith.constant 0 : index
    %c0_50 = arith.constant 0 : index
    %49 = vector.load %arg2[%c8_48, %c0_49, %c0_50] : memref<16x64x128xbf16, #tpu.memory_space<vmem>>, vector<1x64x128xbf16>
    %50 = vector.shape_cast %49 : vector<1x64x128xbf16> to vector<64x128xbf16>
    %cst_51 = arith.constant dense<0.000000e+00> : vector<10x128xf32>
    %51 = tpu.matmul %48, %50, %cst_51 {dimension_numbers = #tpu.dot_dimension_numbers<[1], [0], [0], [1], [0, 0, 1, 1], [], []>} : vector<10x64xbf16>, vector<64x128xbf16>, vector<10x128xf32> -> vector<10x128xf32>
    %52 = arith.addf %46, %51 : vector<10x128xf32>
    %c0_52 = arith.constant 0 : index
    %c11 = arith.constant 11 : index
    %c0_53 = arith.constant 0 : index
    %53 = vector.load %arg1[%c0_52, %c11, %c0_53] : memref<1x30x64xbf16, #tpu.memory_space<vmem>>, vector<1x10x64xbf16>
    %54 = vector.shape_cast %53 : vector<1x10x64xbf16> to vector<10x64xbf16>
    %c9 = arith.constant 9 : index
    %c0_54 = arith.constant 0 : index
    %c0_55 = arith.constant 0 : index
    %55 = vector.load %arg2[%c9, %c0_54, %c0_55] : memref<16x64x128xbf16, #tpu.memory_space<vmem>>, vector<1x64x128xbf16>
    %56 = vector.shape_cast %55 : vector<1x64x128xbf16> to vector<64x128xbf16>
    %cst_56 = arith.constant dense<0.000000e+00> : vector<10x128xf32>
    %57 = tpu.matmul %54, %56, %cst_56 {dimension_numbers = #tpu.dot_dimension_numbers<[1], [0], [0], [1], [0, 0, 1, 1], [], []>} : vector<10x64xbf16>, vector<64x128xbf16>, vector<10x128xf32> -> vector<10x128xf32>
    %58 = arith.addf %52, %57 : vector<10x128xf32>
    %c0_57 = arith.constant 0 : index
    %c12 = arith.constant 12 : index
    %c0_58 = arith.constant 0 : index
    %59 = vector.load %arg1[%c0_57, %c12, %c0_58] : memref<1x30x64xbf16, #tpu.memory_space<vmem>>, vector<1x10x64xbf16>
    %60 = vector.shape_cast %59 : vector<1x10x64xbf16> to vector<10x64xbf16>
    %c10_59 = arith.constant 10 : index
    %c0_60 = arith.constant 0 : index
    %c0_61 = arith.constant 0 : index
    %61 = vector.load %arg2[%c10_59, %c0_60, %c0_61] : memref<16x64x128xbf16, #tpu.memory_space<vmem>>, vector<1x64x128xbf16>
    %62 = vector.shape_cast %61 : vector<1x64x128xbf16> to vector<64x128xbf16>
    %cst_62 = arith.constant dense<0.000000e+00> : vector<10x128xf32>
    %63 = tpu.matmul %60, %62, %cst_62 {dimension_numbers = #tpu.dot_dimension_numbers<[1], [0], [0], [1], [0, 0, 1, 1], [], []>} : vector<10x64xbf16>, vector<64x128xbf16>, vector<10x128xf32> -> vector<10x128xf32>
    %64 = arith.addf %58, %63 : vector<10x128xf32>
    %c0_63 = arith.constant 0 : index
    %c13 = arith.constant 13 : index
    %c0_64 = arith.constant 0 : index
    %65 = vector.load %arg1[%c0_63, %c13, %c0_64] : memref<1x30x64xbf16, #tpu.memory_space<vmem>>, vector<1x10x64xbf16>
    %66 = vector.shape_cast %65 : vector<1x10x64xbf16> to vector<10x64xbf16>
    %c11_65 = arith.constant 11 : index
    %c0_66 = arith.constant 0 : index
    %c0_67 = arith.constant 0 : index
    %67 = vector.load %arg2[%c11_65, %c0_66, %c0_67] : memref<16x64x128xbf16, #tpu.memory_space<vmem>>, vector<1x64x128xbf16>
    %68 = vector.shape_cast %67 : vector<1x64x128xbf16> to vector<64x128xbf16>
    %cst_68 = arith.constant dense<0.000000e+00> : vector<10x128xf32>
    %69 = tpu.matmul %66, %68, %cst_68 {dimension_numbers = #tpu.dot_dimension_numbers<[1], [0], [0], [1], [0, 0, 1, 1], [], []>} : vector<10x64xbf16>, vector<64x128xbf16>, vector<10x128xf32> -> vector<10x128xf32>
    %70 = arith.addf %64, %69 : vector<10x128xf32>
    %c0_69 = arith.constant 0 : index
    %c15 = arith.constant 15 : index
    %c0_70 = arith.constant 0 : index
    %71 = vector.load %arg1[%c0_69, %c15, %c0_70] : memref<1x30x64xbf16, #tpu.memory_space<vmem>>, vector<1x10x64xbf16>
    %72 = vector.shape_cast %71 : vector<1x10x64xbf16> to vector<10x64xbf16>
    %c12_71 = arith.constant 12 : index
    %c0_72 = arith.constant 0 : index
    %c0_73 = arith.constant 0 : index
    %73 = vector.load %arg2[%c12_71, %c0_72, %c0_73] : memref<16x64x128xbf16, #tpu.memory_space<vmem>>, vector<1x64x128xbf16>
    %74 = vector.shape_cast %73 : vector<1x64x128xbf16> to vector<64x128xbf16>
    %cst_74 = arith.constant dense<0.000000e+00> : vector<10x128xf32>
    %75 = tpu.matmul %72, %74, %cst_74 {dimension_numbers = #tpu.dot_dimension_numbers<[1], [0], [0], [1], [0, 0, 1, 1], [], []>} : vector<10x64xbf16>, vector<64x128xbf16>, vector<10x128xf32> -> vector<10x128xf32>
    %76 = arith.addf %70, %75 : vector<10x128xf32>
    %c0_75 = arith.constant 0 : index
    %c16 = arith.constant 16 : index
    %c0_76 = arith.constant 0 : index
    %77 = vector.load %arg1[%c0_75, %c16, %c0_76] : memref<1x30x64xbf16, #tpu.memory_space<vmem>>, vector<1x10x64xbf16>
    %78 = vector.shape_cast %77 : vector<1x10x64xbf16> to vector<10x64xbf16>
    %c13_77 = arith.constant 13 : index
    %c0_78 = arith.constant 0 : index
    %c0_79 = arith.constant 0 : index
    %79 = vector.load %arg2[%c13_77, %c0_78, %c0_79] : memref<16x64x128xbf16, #tpu.memory_space<vmem>>, vector<1x64x128xbf16>
    %80 = vector.shape_cast %79 : vector<1x64x128xbf16> to vector<64x128xbf16>
    %cst_80 = arith.constant dense<0.000000e+00> : vector<10x128xf32>
    %81 = tpu.matmul %78, %80, %cst_80 {dimension_numbers = #tpu.dot_dimension_numbers<[1], [0], [0], [1], [0, 0, 1, 1], [], []>} : vector<10x64xbf16>, vector<64x128xbf16>, vector<10x128xf32> -> vector<10x128xf32>
    %82 = arith.addf %76, %81 : vector<10x128xf32>
    %c0_81 = arith.constant 0 : index
    %c17 = arith.constant 17 : index
    %c0_82 = arith.constant 0 : index
    %83 = vector.load %arg1[%c0_81, %c17, %c0_82] : memref<1x30x64xbf16, #tpu.memory_space<vmem>>, vector<1x10x64xbf16>
    %84 = vector.shape_cast %83 : vector<1x10x64xbf16> to vector<10x64xbf16>
    %c14 = arith.constant 14 : index
    %c0_83 = arith.constant 0 : index
    %c0_84 = arith.constant 0 : index
    %85 = vector.load %arg2[%c14, %c0_83, %c0_84] : memref<16x64x128xbf16, #tpu.memory_space<vmem>>, vector<1x64x128xbf16>
    %86 = vector.shape_cast %85 : vector<1x64x128xbf16> to vector<64x128xbf16>
    %cst_85 = arith.constant dense<0.000000e+00> : vector<10x128xf32>
    %87 = tpu.matmul %84, %86, %cst_85 {dimension_numbers = #tpu.dot_dimension_numbers<[1], [0], [0], [1], [0, 0, 1, 1], [], []>} : vector<10x64xbf16>, vector<64x128xbf16>, vector<10x128xf32> -> vector<10x128xf32>
    %88 = arith.addf %82, %87 : vector<10x128xf32>
    %c0_86 = arith.constant 0 : index
    %c18 = arith.constant 18 : index
    %c0_87 = arith.constant 0 : index
    %89 = vector.load %arg1[%c0_86, %c18, %c0_87] : memref<1x30x64xbf16, #tpu.memory_space<vmem>>, vector<1x10x64xbf16>
    %90 = vector.shape_cast %89 : vector<1x10x64xbf16> to vector<10x64xbf16>
    %c15_88 = arith.constant 15 : index
    %c0_89 = arith.constant 0 : index
    %c0_90 = arith.constant 0 : index
    %91 = vector.load %arg2[%c15_88, %c0_89, %c0_90] : memref<16x64x128xbf16, #tpu.memory_space<vmem>>, vector<1x64x128xbf16>
    %92 = vector.shape_cast %91 : vector<1x64x128xbf16> to vector<64x128xbf16>
    %cst_91 = arith.constant dense<0.000000e+00> : vector<10x128xf32>
    %93 = tpu.matmul %90, %92, %cst_91 {dimension_numbers = #tpu.dot_dimension_numbers<[1], [0], [0], [1], [0, 0, 1, 1], [], []>} : vector<10x64xbf16>, vector<64x128xbf16>, vector<10x128xf32> -> vector<10x128xf32>
    %94 = arith.addf %88, %93 : vector<10x128xf32>
    %c0_92 = arith.constant 0 : index
    %c0_93 = arith.constant 0 : index
    %95 = vector.load %arg3[%c0_92, %c0_93] : memref<1x128xf32, #tpu.memory_space<vmem>>, vector<1x128xf32>
    %96 = vector.broadcast %95 : vector<1x128xf32> to vector<10x128xf32>
    %97 = arith.addf %94, %96 : vector<10x128xf32>
    %c0_94 = arith.constant 0 : index
    %c0_95 = arith.constant 0 : index
    %c0_96 = arith.constant 0 : index
    %98 = vector.load %arg4[%c0_94, %c0_95, %c0_96] : memref<1x10x128xf32, #tpu.memory_space<vmem>>, vector<1x10x128xf32>
    %99 = vector.shape_cast %98 : vector<1x10x128xf32> to vector<10x128xf32>
    %100 = vector.shape_cast %97 : vector<10x128xf32> to vector<1x10x128xf32>
    tpu.vector_store %arg4[%c0_94, %c0_95, %c0_96], %100 {strides = array<i32>} : memref<1x10x128xf32, #tpu.memory_space<vmem>>, vector<1x10x128xf32>,
    return
  }
  func.func @transform_0(%arg0: i32) -> (i32, i32, i32) {
    %c0_i32 = arith.constant 0 : i32
    %c0_i32_0 = arith.constant 0 : i32
    %c0_i32_1 = arith.constant 0 : i32
    return %arg0, %c0_i32, %c0_i32_0 : i32, i32, i32
  }
  func.func @transform_1(%arg0: i32) -> (i32, i32, i32) {
    %c0_i32 = arith.constant 0 : i32
    %c0_i32_0 = arith.constant 0 : i32
    %c0_i32_1 = arith.constant 0 : i32
    %c0_i32_2 = arith.constant 0 : i32
    return %c0_i32, %c0_i32_0, %c0_i32_1 : i32, i32, i32
  }
  func.func @transform_2(%arg0: i32) -> (i32, i32) {
    %c0_i32 = arith.constant 0 : i32
    %c0_i32_0 = arith.constant 0 : i32
    %c0_i32_1 = arith.constant 0 : i32
    return %c0_i32, %c0_i32_0 : i32, i32
  }
  func.func @transform_3(%arg0: i32) -> (i32, i32, i32) {
    %c0_i32 = arith.constant 0 : i32
    %c0_i32_0 = arith.constant 0 : i32
    %c0_i32_1 = arith.constant 0 : i32
    return %arg0, %c0_i32, %c0_i32_0 : i32, i32, i32
  }
}

</mosaic_0001>

<bundles_post_ra>
// kernel: discriminator_forward.5
= control target key start
LH: loop header
LB: loop body
LE: loop exit
PB: predicated region body
PF: predicated region fallthrough
CT: control target
= control target key end

     0   :  { %s1265_s12 = smov 0   ;;  %s1267_s13 = smov 0   ;;  %s1409_s0 = inlined_call_operand.vmem [shape: bf16[2,256,48], index: 0, kind: input, shape index: {}]   ;;  %s1410_s1 = inlined_call_operand.vmem [shape: bf16[48,128], index: 1, kind: input, shape index: {}]   ;;  %s1411_s2 = inlined_call_operand.vmem [shape: f32[1,128], index: 2, kind: input, shape index: {}]   ;;  %s1412_s3 = inlined_call_operand.vmem [shape: bf16[2,256,128], index: 3, kind: output, shape index: {}]  }
   0x1   :  { %s1269_s14 = smov 0  }
   0x2 LB: > { %s25_s15 = sadd.s32 1, %s1239_s13  ;;  %p911_p0 = scmp.ge.s32.totalorder %s1243_s14, 1  ;;  %s1243_s14 = sphi %s1269_s14, %s13_s14   ;;  %s1239_s13 = sphi %s1267_s13, %s1414_s13   ;;  %s1235_s12 = sphi %s1265_s12, %s1413_s12  }
   0x3   : > { %p27_p1 = scmp.ge.s32.totalorder %s25_s15, 2  ;;  %p158_p2 = scmp.lt.s32.totalorder %s1243_s14, 3 }
   0x5   : > { %s1416_s15 = smov (%p27_p1, %s25_s15), 0  ;;  %p159_p3 = pnand %p911_p0, %p158_p2 }
   0x6   : > { %v1202_v0 = vld [vmem:[%s1410_s1] sm:$0xff] (!%p159_p3)   ;;  %p191_p4 = scmp.lt.s32.totalorder (!%p159_p3), %s1235_s12, 1  ;;  %v1203_v1 = vld [vmem:[%s1410_s1 + $0x8] sm:$0xff] (!%p159_p3)   ;;  %v1204_v2 = vld [vmem:[%s1410_s1 + $0x10] sm:$0xff] (!%p159_p3)   ;;  %vm354_vm0 = vcmask (!%p159_p3), 392192  }
   0x7   : > { %162 = sbr.rel (%p159_p3) target bundleno = 274 (0x112), region = 32  ;;  %1134 = vmatprep.subr.bf16.mxu0 (!%p159_p3), %v1202_v0  ;;  %1172 = vmatprep.subr.bf16.mxu1 (!%p159_p3), %v1202_v0  ;;  %v1337_v19 = vld [vmem:[%s1411_s2] ss:$0 sm:$0xff] (!%p159_p3) }
   0x8   : > { %1135 = vmatpush3.bf16.msra.mxu0 (!%p159_p3), %v1202_v0  ;;  %1175 = vmatpush3.bf16.msra.mxu1 (!%p159_p3), %v1202_v0 }
   0x9   : > { %1136 = vmatprep.subr.bf16.mxu0 (!%p159_p3), %v1203_v1  ;;  %1173 = vmatprep.subr.bf16.mxu1 (!%p159_p3), %v1203_v1 }
   0xc   : > { %1137 = vmatpush3.bf16.msra.mxu0 (!%p159_p3), %v1203_v1  ;;  %1176 = vmatpush3.bf16.msra.mxu1 (!%p159_p3), %v1203_v1 }
   0xd   : > { %1138 = vmatprep.subr.bf16.mxu0 (!%p159_p3), %v1204_v2  ;;  %1174 = vmatprep.subr.bf16.mxu1 (!%p159_p3), %v1204_v2 }
   0xe   : > { %s1418_s12 = smov (!%p191_p4, %s1235_s12), 1 }
   0xf   : > { %s986_s22 = sshll.u32 %s1418_s12, 7 }
  0x10   : > { %s1300_s25 = scalar_lea.vmem %s1409_s0, %s986_s22  ;;  %1139 = vmatpush3.bf16.msra.mxu0 %v1204_v2  ;;  %1177 = vmatpush3.bf16.msra.mxu1 %v1204_v2  ;;  %s1354_s30 = scalar_lea.vmem %s1412_s3, %s986_s22 }
  0x11   : > { %v1205_v3 = vld [vmem:[%s1300_s25] sm:$0xff]   ;;  %v1207_v5 = vld [vmem:[%s1300_s25 + $0x8] sm:$0xff]   ;;  %v1209_v7 = vld [vmem:[%s1300_s25 + $0x10] sm:$0xff]  }
  0x12   : > { %v1206_v4 = vld [vmem:[%s1300_s25 + $0x40] sm:$0xff]   ;;  %1140 = vmatprep.mubr.msk.bf16.mxu0 %vm354_vm0, %v1205_v3  ;;  %v1208_v6 = vld [vmem:[%s1300_s25 + $0x48] sm:$0xff]   ;;  %v1210_v8 = vld [vmem:[%s1300_s25 + $0x50] sm:$0xff]  }
  0x13   : > { %1156 = vmatprep.mubr.msk.bf16.mxu1 %vm354_vm0, %v1206_v4  ;;  %1141 = vmatmul.mubr.msk.bf16.vlgmr.msra.gmra.mrb[0].mxu0 %vm354_vm0, %v1207_v5  ;;  %v1211_v9 = vld [vmem:[%s1300_s25 + $0x18] sm:$0xff]   ;;  %v1213_v11 = vld [vmem:[%s1300_s25 + $0x20] sm:$0xff]   ;;  %v1215_v13 = vld [vmem:[%s1300_s25 + $0x28] sm:$0xff]  }
  0x14   : > { %1157 = vmatmul.mubr.msk.bf16.vlgmr.msra.gmra.mrb[0].mxu1 %vm354_vm0, %v1208_v6  ;;  %1144 = vmatprep.mubr.msk.bf16.mxu0 %vm354_vm0, %v1209_v7  ;;  %v1212_v10 = vld [vmem:[%s1300_s25 + $0x58] sm:$0xff]   ;;  %v1214_v12 = vld [vmem:[%s1300_s25 + $0x60] sm:$0xff]   ;;  %v1216_v14 = vld [vmem:[%s1300_s25 + $0x68] sm:$0xff]  }
  0x15   : > { %1160 = vmatprep.mubr.msk.bf16.mxu1 %vm354_vm0, %v1210_v8  ;;  %v1217_v15 = vld [vmem:[%s1300_s25 + $0x30] sm:$0xff]   ;;  %v1219_v17 = vld [vmem:[%s1300_s25 + $0x38] sm:$0xff]  }
  0x16   : > { %v1218_v16 = vld [vmem:[%s1300_s25 + $0x70] sm:$0xff]   ;;  %v1220_v18 = vld [vmem:[%s1300_s25 + $0x78] sm:$0xff]  }
  0x1b   : > { %1145 = vmatmul.mubr.msk.bf16.gmra.mrb[4].mxu0 %vm354_vm0, %v1211_v9 }
  0x1c   : > { %1161 = vmatmul.mubr.msk.bf16.gmra.mrb[4].mxu1 %vm354_vm0, %v1212_v10  ;;  %1148 = vmatprep.mubr.msk.bf16.mxu0 %vm354_vm0, %v1213_v11 }
  0x1d   : > { %1164 = vmatprep.mubr.msk.bf16.mxu1 %vm354_vm0, %v1214_v12 }
  0x23   : > { %1149 = vmatmul.mubr.msk.bf16.gmra.mrb[8].mxu0 %vm354_vm0, %v1215_v13 }
  0x24   : > { %1165 = vmatmul.mubr.msk.bf16.gmra.mrb[8].mxu1 %vm354_vm0, %v1216_v14  ;;  %1152 = vmatprep.mubr.msk.bf16.mxu0 %vm354_vm0, %v1217_v15 }
  0x25   : > { %1168 = vmatprep.mubr.msk.bf16.mxu1 %vm354_vm0, %v1218_v16 }
  0x2b   : > { %1153 = vmatmul.mubr.msk.bf16.gmra.mrb[12].mxu0 %vm354_vm0, %v1219_v17 }
  0x2c   : > { %1169 = vmatmul.mubr.msk.bf16.gmra.mrb[12].mxu1 %vm354_vm0, %v1220_v18 }
  0xe6   : > { %v1142_v20 = vpop.f32.mrb[0].mxu0 }
  0xe7   : > { %v1158_v21 = vpop.f32.mrb[0].mxu1  ;;  %v446_v22 = vadd.f32 %v1142_v20, %v1337_v19  ;;  %v437_v24 = vpop.f32.mrb[1].mxu0 }
  0xe8   : > { %v510_v23 = vadd.f32 %v1158_v21, %v1337_v19  ;;  %v501_v25 = vpop.f32.mrb[1].mxu1  ;;  %v438_v26 = vadd.f32 %v1337_v19, %v437_v24  ;;  %v1143_v28 = vpop.f32.mrb[2].mxu0 }
  0xe9   : > { %v502_v27 = vadd.f32 %v1337_v19, %v501_v25  ;;  %v1159_v29 = vpop.f32.mrb[2].mxu1  ;;  %vm566_vm1 = vcmp.gt.f32.partialorder %v446_v22, 0.0  ;;  %v598_v30 = vmul.f32 0.2, %v446_v22  ;;  %v449_v34 = vadd.f32 %v1143_v28, %v1337_v19  ;;  %v440_v36 = vpop.f32.mrb[3].mxu0 }
  0xea   : > { %vm582_vm2 = vcmp.gt.f32.partialorder %v510_v23, 0.0  ;;  %v614_v31 = vmul.f32 0.2, %v510_v23  ;;  %vm564_vm3 = vcmp.gt.f32.partialorder %v438_v26, 0.0  ;;  %v596_v32 = vmul.f32 0.2, %v438_v26 }
  0xeb   : > { %vm580_vm4 = vcmp.gt.f32.partialorder %v502_v27, 0.0  ;;  %v612_v33 = vmul.f32 0.2, %v502_v27  ;;  %v513_v35 = vadd.f32 %v1159_v29, %v1337_v19  ;;  %v504_v37 = vpop.f32.mrb[3].mxu1  ;;  %v630_v38 = vsel %vm566_vm1, %v446_v22, %v598_v30 }
  0xec   : > { %v646_v39 = vsel %vm582_vm2, %v510_v23, %v614_v31  ;;  %v441_v40 = vadd.f32 %v1337_v19, %v440_v36  ;;  %v505_v41 = vadd.f32 %v1337_v19, %v504_v37  ;;  %vm567_vm5 = vcmp.gt.f32.partialorder %v449_v34, 0.0 }
  0xed   : > { %v599_v42 = vmul.f32 0.2, %v449_v34  ;;  %vm583_vm6 = vcmp.gt.f32.partialorder %v513_v35, 0.0  ;;  %v615_v43 = vmul.f32 0.2, %v513_v35  ;;  %v628_v46 = vsel %vm564_vm3, %v438_v26, %v596_v32 }
  0xee   : > { %vm565_vm7 = vcmp.gt.f32.partialorder %v441_v40, 0.0  ;;  %v597_v44 = vmul.f32 0.2, %v441_v40  ;;  %vm581_vm8 = vcmp.gt.f32.partialorder %v505_v41, 0.0  ;;  %v613_v45 = vmul.f32 0.2, %v505_v41 }
  0xef   : > { %v644_v47 = vsel %vm580_vm4, %v502_v27, %v612_v33  ;;  %v631_v48 = vsel %vm567_vm5, %v449_v34, %v599_v42  ;;  %v647_v49 = vsel %vm583_vm6, %v513_v35, %v615_v43  ;;  %v1146_v50 = vpop.f32.mrb[4].mxu0  ;;  %v1162_v51 = vpop.f32.mrb[4].mxu1 }
  0xf0   : > { %v1028_v52 = vpack.c.bf16 %v631_v48, %v630_v38  ;;  %v1068_v53 = vpack.c.bf16 %v647_v49, %v646_v39  ;;  %v629_v54 = vsel %vm565_vm7, %v441_v40, %v597_v44  ;;  %v645_v55 = vsel %vm581_vm8, %v505_v41, %v613_v45  ;;  %v453_v56 = vpop.f32.mrb[5].mxu0  ;;  %v517_v57 = vpop.f32.mrb[5].mxu1 }
  0xf1   : > { %v1023_v58 = vpack.c.bf16 %v629_v54, %v628_v46  ;;  %v1063_v59 = vpack.c.bf16 %v645_v55, %v644_v47  ;;  %v462_v60 = vadd.f32 %v1146_v50, %v1337_v19  ;;  %v526_v61 = vadd.f32 %v1162_v51, %v1337_v19  ;;  %v1147_v62 = vpop.f32.mrb[6].mxu0  ;;  %v1163_v63 = vpop.f32.mrb[6].mxu1 }
  0xf2   : > { %1100 = vst [vmem:[%s1354_s30 + $0x8] sm:$0xff] %v1028_v52   ;;  %1108 = vst [vmem:[%s1354_s30 + $0x48] sm:$0xff] %v1068_v53   ;;  %v454_v0 = vadd.f32 %v1337_v19, %v453_v56  ;;  %v518_v1 = vadd.f32 %v1337_v19, %v517_v57  ;;  %v465_v2 = vadd.f32 %v1147_v62, %v1337_v19  ;;  %v456_v4 = vpop.f32.mrb[7].mxu0  ;;  %v520_v5 = vpop.f32.mrb[7].mxu1 }
  0xf3   : > { %v529_v3 = vadd.f32 %v1163_v63, %v1337_v19  ;;  %1024 = vst [vmem:[%s1354_s30] sm:$0xff] %v1023_v58   ;;  %1107 = vst [vmem:[%s1354_s30 + $0x40] sm:$0xff] %v1063_v59   ;;  %vm570_vm9 = vcmp.gt.f32.partialorder %v462_v60, 0.0  ;;  %v602_v6 = vmul.f32 0.2, %v462_v60  ;;  %vm586_vm10 = vcmp.gt.f32.partialorder %v526_v61, 0.0 }
  0xf4   : > { %v618_v7 = vmul.f32 0.2, %v526_v61  ;;  %vm568_vm11 = vcmp.gt.f32.partialorder %v454_v0, 0.0  ;;  %v600_v8 = vmul.f32 0.2, %v454_v0  ;;  %vm584_vm12 = vcmp.gt.f32.partialorder %v518_v1, 0.0 }
  0xf5   : > { %v634_v9 = vsel %vm570_vm9, %v462_v60, %v602_v6  ;;  %v616_v10 = vmul.f32 0.2, %v518_v1  ;;  %vm571_vm13 = vcmp.gt.f32.partialorder %v465_v2, 0.0  ;;  %v603_v11 = vmul.f32 0.2, %v465_v2 }
  0xf6   : > { %v650_v12 = vsel %vm586_vm10, %v526_v61, %v618_v7  ;;  %v632_v13 = vsel %vm568_vm11, %v454_v0, %v600_v8  ;;  %vm587_vm14 = vcmp.gt.f32.partialorder %v529_v3, 0.0  ;;  %v619_v14 = vmul.f32 0.2, %v529_v3  ;;  %v1150_v15 = vpop.f32.mrb[8].mxu0 }
  0xf7   : > { %v1166_v16 = vpop.f32.mrb[8].mxu1  ;;  %v635_v17 = vsel %vm571_vm13, %v465_v2, %v603_v11  ;;  %v457_v18 = vadd.f32 %v1337_v19, %v456_v4  ;;  %v521_v20 = vadd.f32 %v1337_v19, %v520_v5  ;;  %v478_v21 = vadd.f32 %v1150_v15, %v1337_v19  ;;  %v469_v22 = vpop.f32.mrb[9].mxu0 }
  0xf8   : > { %v533_v23 = vpop.f32.mrb[9].mxu1  ;;  %v1038_v24 = vpack.c.bf16 %v635_v17, %v634_v9  ;;  %v651_v25 = vsel %vm587_vm14, %v529_v3, %v619_v14  ;;  %v542_v26 = vadd.f32 %v1166_v16, %v1337_v19  ;;  %v470_v27 = vadd.f32 %v1337_v19, %v469_v22  ;;  %v1151_v28 = vpop.f32.mrb[10].mxu0 }
  0xf9   : > { %v1167_v29 = vpop.f32.mrb[10].mxu1  ;;  %v1078_v30 = vpack.c.bf16 %v651_v25, %v650_v12  ;;  %vm569_vm15 = vcmp.gt.f32.partialorder %v457_v18, 0.0  ;;  %v601_v31 = vmul.f32 0.2, %v457_v18  ;;  %vm585_vm0 = vcmp.gt.f32.partialorder %v521_v20, 0.0  ;;  %v472_v32 = vpop.f32.mrb[11].mxu0 }
  0xfa   : > { %v536_v33 = vpop.f32.mrb[11].mxu1  ;;  %1102 = vst [vmem:[%s1354_s30 + $0x18] sm:$0xff] %v1038_v24   ;;  %v617_v34 = vmul.f32 0.2, %v521_v20  ;;  %vm574_vm1 = vcmp.gt.f32.partialorder %v478_v21, 0.0  ;;  %vm590_vm2 = vcmp.gt.f32.partialorder %v542_v26, 0.0  ;;  %v648_v36 = vsel %vm584_vm12, %v518_v1, %v616_v10 }
  0xfb   : > { %v606_v35 = vmul.f32 0.2, %v478_v21  ;;  %1110 = vst [vmem:[%s1354_s30 + $0x58] sm:$0xff] %v1078_v30   ;;  %v633_v37 = vsel %vm569_vm15, %v457_v18, %v601_v31  ;;  %v622_v38 = vmul.f32 0.2, %v542_v26  ;;  %vm572_vm3 = vcmp.gt.f32.partialorder %v470_v27, 0.0 }
  0xfc   : > { %v1033_v39 = vpack.c.bf16 %v633_v37, %v632_v13  ;;  %v649_v40 = vsel %vm585_vm0, %v521_v20, %v617_v34  ;;  %v604_v41 = vmul.f32 0.2, %v470_v27  ;;  %v534_v42 = vadd.f32 %v1337_v19, %v533_v23 }
  0xfd   : > { %v1073_v43 = vpack.c.bf16 %v649_v40, %v648_v36  ;;  %v638_v44 = vsel %vm574_vm1, %v478_v21, %v606_v35  ;;  %v654_v45 = vsel %vm590_vm2, %v542_v26, %v622_v38  ;;  %v481_v46 = vadd.f32 %v1151_v28, %v1337_v19 }
  0xfe   : > { %1101 = vst [vmem:[%s1354_s30 + $0x10] sm:$0xff] %v1033_v39   ;;  %vm588_vm4 = vcmp.gt.f32.partialorder %v534_v42, 0.0  ;;  %v620_v47 = vmul.f32 0.2, %v534_v42  ;;  %v545_v48 = vadd.f32 %v1167_v29, %v1337_v19  ;;  %v473_v49 = vadd.f32 %v1337_v19, %v472_v32  ;;  %v1154_v50 = vpop.f32.mrb[12].mxu0 }
  0xff   : > { %v1170_v51 = vpop.f32.mrb[12].mxu1  ;;  %1109 = vst [vmem:[%s1354_s30 + $0x50] sm:$0xff] %v1073_v43   ;;  %vm575_vm5 = vcmp.gt.f32.partialorder %v481_v46, 0.0  ;;  %v607_v52 = vmul.f32 0.2, %v481_v46  ;;  %v537_v53 = vadd.f32 %v1337_v19, %v536_v33  ;;  %v494_v54 = vadd.f32 %v1154_v50, %v1337_v19  ;;  %v485_v55 = vpop.f32.mrb[13].mxu0 }
 0x100   : > { %v549_v56 = vpop.f32.mrb[13].mxu1  ;;  %v636_v57 = vsel %vm572_vm3, %v470_v27, %v604_v41  ;;  %vm591_vm6 = vcmp.gt.f32.partialorder %v545_v48, 0.0  ;;  %v623_v58 = vmul.f32 0.2, %v545_v48  ;;  %vm573_vm7 = vcmp.gt.f32.partialorder %v473_v49, 0.0  ;;  %v1155_v59 = vpop.f32.mrb[14].mxu0 }
 0x101   : > { %v1171_v60 = vpop.f32.mrb[14].mxu1  ;;  %v639_v61 = vsel %vm575_vm5, %v481_v46, %v607_v52  ;;  %v605_v62 = vmul.f32 0.2, %v473_v49  ;;  %vm589_vm8 = vcmp.gt.f32.partialorder %v537_v53, 0.0  ;;  %v621_v63 = vmul.f32 0.2, %v537_v53 }
 0x102   : > { %v488_v0 = vpop.f32.mrb[15].mxu0  ;;  %v652_v1 = vsel %vm588_vm4, %v534_v42, %v620_v47  ;;  %v1048_v2 = vpack.c.bf16 %v639_v61, %v638_v44  ;;  %v655_v3 = vsel %vm591_vm6, %v545_v48, %v623_v58  ;;  %v610_v4 = vmul.f32 0.2, %v494_v54  ;;  %v552_v5 = vpop.f32.mrb[15].mxu1 }
 0x103   : > { %v1088_v6 = vpack.c.bf16 %v655_v3, %v654_v45  ;;  %v637_v7 = vsel %vm573_vm7, %v473_v49, %v605_v62  ;;  %v653_v8 = vsel %vm589_vm8, %v537_v53, %v621_v63  ;;  %v558_v9 = vadd.f32 %v1170_v51, %v1337_v19 }
 0x104   : > { %1104 = vst [vmem:[%s1354_s30 + $0x28] sm:$0xff] %v1048_v2   ;;  %v1043_v10 = vpack.c.bf16 %v637_v7, %v636_v57  ;;  %v1083_v11 = vpack.c.bf16 %v653_v8, %v652_v1  ;;  %vm578_vm9 = vcmp.gt.f32.partialorder %v494_v54, 0.0  ;;  %v486_v12 = vadd.f32 %v1337_v19, %v485_v55 }
 0x105   : > { %1112 = vst [vmem:[%s1354_s30 + $0x68] sm:$0xff] %v1088_v6   ;;  %vm594_vm10 = vcmp.gt.f32.partialorder %v558_v9, 0.0  ;;  %v626_v13 = vmul.f32 0.2, %v558_v9  ;;  %v550_v14 = vadd.f32 %v1337_v19, %v549_v56  ;;  %v497_v15 = vadd.f32 %v1155_v59, %v1337_v19 }
 0x106   : > { %1103 = vst [vmem:[%s1354_s30 + $0x20] sm:$0xff] %v1043_v10   ;;  %1111 = vst [vmem:[%s1354_s30 + $0x60] sm:$0xff] %v1083_v11   ;;  %v608_v16 = vmul.f32 0.2, %v486_v12  ;;  %v561_v17 = vadd.f32 %v1171_v60, %v1337_v19  ;;  %v489_v18 = vadd.f32 %v1337_v19, %v488_v0  ;;  %v642_v20 = vsel %vm578_vm9, %v494_v54, %v610_v4 }
 0x107   : > { %vm576_vm11 = vcmp.gt.f32.partialorder %v486_v12, 0.0  ;;  %vm579_vm12 = vcmp.gt.f32.partialorder %v497_v15, 0.0  ;;  %v658_v21 = vsel %vm594_vm10, %v558_v9, %v626_v13  ;;  %v611_v22 = vmul.f32 0.2, %v497_v15 }
 0x108   : > { %vm595_vm13 = vcmp.gt.f32.partialorder %v561_v17, 0.0  ;;  %v627_v23 = vmul.f32 0.2, %v561_v17  ;;  %vm592_vm14 = vcmp.gt.f32.partialorder %v550_v14, 0.0  ;;  %vm577_vm15 = vcmp.gt.f32.partialorder %v489_v18, 0.0 }
 0x109   : > { %v609_v24 = vmul.f32 0.2, %v489_v18  ;;  %v553_v25 = vadd.f32 %v1337_v19, %v552_v5  ;;  %v640_v26 = vsel %vm576_vm11, %v486_v12, %v608_v16  ;;  %v624_v27 = vmul.f32 0.2, %v550_v14 }
 0x10a   : > { %v643_v28 = vsel %vm579_vm12, %v497_v15, %v611_v22  ;;  %v659_v29 = vsel %vm595_vm13, %v561_v17, %v627_v23 }
 0x10b   : > { %v1058_v30 = vpack.c.bf16 %v643_v28, %v642_v20  ;;  %v1098_v31 = vpack.c.bf16 %v659_v29, %v658_v21  ;;  %v641_v32 = vsel %vm577_vm15, %v489_v18, %v609_v24  ;;  %vm593_vm0 = vcmp.gt.f32.partialorder %v553_v25, 0.0 }
 0x10c   : > { %v1053_v33 = vpack.c.bf16 %v641_v32, %v640_v26  ;;  %v625_v34 = vmul.f32 0.2, %v553_v25  ;;  %v656_v35 = vsel %vm592_vm14, %v550_v14, %v624_v27 }
 0x10d   : > { %1106 = vst [vmem:[%s1354_s30 + $0x38] sm:$0xff] %v1058_v30   ;;  %1114 = vst [vmem:[%s1354_s30 + $0x78] sm:$0xff] %v1098_v31  }
 0x10e   : > { %1105 = vst [vmem:[%s1354_s30 + $0x30] sm:$0xff] %v1053_v33   ;;  %v657_v36 = vsel %vm593_vm0, %v553_v25, %v625_v34 }
 0x10f   : > { %v1093_v37 = vpack.c.bf16 %v657_v36, %v656_v35 }
 0x111   : > { %1113 = vst [vmem:[%s1354_s30 + $0x70] sm:$0xff] %v1093_v37  }
 0x112 PF: > { %s13_s14 = sadd.s32 1, %s1243_s14   ;;  %s1413_s12 = smov %s1239_s13 }
 0x113   : > { %p10_p5 = scmp.ge.s32.totalorder %s13_s14, 4   ;;  %s1414_s13 = smov %s1416_s15 }
 0x115   :  { %12 = sbr.rel (!%p10_p5) target bundleno = 2 (0x2), region = 62 }

// kernel: discriminator_forward.6
= control target key start
LH: loop header
LB: loop body
LE: loop exit
PB: predicated region body
PF: predicated region fallthrough
CT: control target
= control target key end

     0   :  { %s1441_s12 = smov 0   ;;  %s1774_s0 = inlined_call_operand.vmem [shape: bf16[2,90,32], index: 0, kind: input, shape index: {}]   ;;  %s1775_s1 = inlined_call_operand.vmem [shape: bf16[4,32,128], index: 1, kind: input, shape index: {}]   ;;  %s1776_s2 = inlined_call_operand.vmem [shape: f32[1,128], index: 2, kind: input, shape index: {}]   ;;  %s1777_s3 = inlined_call_operand.vmem [shape: bf16[2,72,128], index: 3, kind: output, shape index: {}]  }
   0x1 LB: > { %s1123_s13 = sadd.s32 4294967295, %s1417_s12   ;;  %p1127_p0 = scmp.ge.s32.totalorder %s1417_s12, 1  ;;  %s1417_s12 = sphi %s1441_s12, %s13_s12  }
   0x2   : > { %p137_p1 = scmp.lt.s32.totalorder %s1417_s12, 3 }
   0x4   : > { %p138_p2 = pnand %p1127_p0, %p137_p1 }
   0x5   : > { %v1389_v0 = vld [vmem:[%s1775_s1 + $0x10] sm:$0xff] (!%p138_p2)   ;;  %v1419_v1 = vmov (!%p138_p2), 0.0   ;;  %v1390_v2 = vld [vmem:[%s1775_s1] sm:$0xff] (!%p138_p2)   ;;  %v1391_v3 = vld [vmem:[%s1775_s1 + $0x18] sm:$0xff] (!%p138_p2)   ;;  %vm1420_vm0 = vmmov (!%p138_p2), 0   ;;  %p161_p3 = scmp.lt.s32.totalorder (!%p138_p2), %s1123_s13, 1 }
   0x6   : > { %141 = sbr.rel (%p138_p2) target bundleno = 396 (0x18c), region = 32  ;;  %1263 = vmatprep.subr.bf16.mxu0 (!%p138_p2), %v1419_v1  ;;  %1287 = vmatprep.subr.bf16.mxu1 (!%p138_p2), %v1419_v1  ;;  %v1392_v4 = vld [vmem:[%s1775_s1 + $0x8] sm:$0xff] (!%p138_p2)   ;;  %vm268_vm1 = vcmask (!%p138_p2), 261120   ;;  %v1396_v5 = vld [vmem:[%s1775_s1 + $0x30] sm:$0xff] (!%p138_p2)   ;;  %v1400_v12 = vld [vmem:[%s1775_s1 + $0x38] sm:$0xff] (!%p138_p2)   ;;  %vm648_vm3 = vcmask (!%p138_p2), 1046528  }
   0x7   : > { %1264 = vmatpush3.bf16.msra.mxu0 (!%p138_p2), %v1389_v0  ;;  %1291 = vmatprep.mubr.msk.bf16.mxu1 (!%p138_p2), %vm1420_vm0, %v1419_v1  ;;  %vm216_vm2 = vsmask.f32 (!%p138_p2), 7424  ;;  %v1395_v16 = vld [vmem:[%s1775_s1 + $0x20] sm:$0xff] (!%p138_p2)   ;;  %v1399_v23 = vld [vmem:[%s1775_s1 + $0x28] sm:$0xff] (!%p138_p2)  }
   0x8   : > { %1288 = vmatpush3.bf16.msra.mxu1 (!%p138_p2), %v1390_v2  ;;  %1265 = vmatprep.subr.bf16.mxu0 (!%p138_p2), %v1419_v1 }
   0x9   : > { %1289 = vmatprep.subr.bf16.mxu1 (!%p138_p2), %v1419_v1  ;;  %1267 = vmatprep.mubr.msk.bf16.mxu0 (!%p138_p2), %vm1420_vm0, %v1419_v1 }
   0xb   : > { %1266 = vmatpush3.bf16.msra.mxu0 (!%p138_p2), %v1391_v3 }
   0xc   : > { %1290 = vmatpush3.bf16.msra.mxu1 (!%p138_p2), %v1392_v4  ;;  %1311 = vmatprep.subr.bf16.mxu0 (!%p138_p2), %v1419_v1 }
   0xd   : > { %s1785_s13 = smov (!%p161_p3, %s1123_s13), 1  ;;  %1335 = vmatprep.subr.bf16.mxu1 %v1419_v1 }
   0xe   : > { %s1359_s22 = smul.u32 48, %s1785_s13 }
   0xf   : > { %s1360_s9 = smul.u32 36, %s1785_s13 }
  0x10   : > { %s1476_s25 = scalar_lea.vmem %s1774_s0, %s1359_s22 }
  0x11   : > { %v1393_v6 = vld [vmem:[%s1476_s25] sm:$0xff]   ;;  %v1394_v7 = vld [vmem:[%s1476_s25 + $0x8] sm:$0xff]   ;;  %v1397_v11 = vld [vmem:[%s1476_s25 + $0x10] sm:$0xff]   ;;  %s170_s13 = scalar_lea.vmem %s1777_s3, %s1360_s9 }
  0x12   : > { %1292 = vmatmul.mubr.msk.bf16.vlgmr.msra.gmra.mrb[0].mxu1 %vm268_vm1, %v1393_v6  ;;  %v218_v8 = vshrl.u32 %v1393_v6, 16  ;;  %v220_v9 = vshll.u32 %v1393_v6, 16  ;;  %v225_v10 = vshll.u32 %v1394_v7, 16  ;;  %v229_v17 = vshrl.u32 %v1394_v7, 16  ;;  %v1398_v22 = vld [vmem:[%s1476_s25 + $0x18] sm:$0xff]   ;;  %v1404_v43 = vld [vmem:[%s1476_s25 + $0xc] sm:$0xff]  }
  0x13   : > { %1336 = vmatpush3.bf16.msra.mxu1 %v1396_v5  ;;  %1295 = vmatprep.mubr.msk.bf16.mxu1 %vm1420_vm0, %v1419_v1  ;;  %v233_v18 = vshll.u32 %v1397_v11, 16  ;;  %v237_v25 = vshrl.u32 %v1397_v11, 16  ;;  %v241_v26 = vshll.u32 %v1398_v22, 16  ;;  %v180_v27 = vld [vmem:[%s1476_s25 + $0x20] sm:$0xf]  ;;  %v245_v33 = vshrl.u32 %v1398_v22, 16 }
  0x14   : > { %v222_v13 = vrot.slane %v220_v9, 1  ;;  %1337 = vmatprep.subr.bf16.mxu1 %v1419_v1  ;;  %v227_v14 = vrot.slane %v225_v10, 1  ;;  %v185_v28 = vld [vmem:[%s1476_s25 + $0x24] sm:$0x1]  ;;  %v453_v38 = vld [vmem:[%s1476_s25 + $0x8] sm:$0xf]  ;;  %v1146_v42 = vcombine.low %v180_v27, %v180_v27 }
  0x15   : > { %v235_v21 = vrot.slane %v233_v18, 1  ;;  %v243_v30 = vrot.slane %v241_v26, 1  ;;  %v1138_v31 = vcombine.low %v180_v27, %v185_v28  ;;  %v452_v37 = vld [vmem:[%s1476_s25 + $0x4] sm:$0xf]  ;;  %v650_v48 = vrot.slane %v1404_v43, 1  ;;  %v1406_v54 = vld [vmem:[%s1476_s25 + $0x14] sm:$0xff]  }
  0x16   : > { %v223_v15 = vor.u32 %v222_v13, %v218_v8  ;;  %v231_v20 = vor.u32 %v229_v17, %v227_v14  ;;  %v639_v39 = vld [vmem:[%s1476_s25 + $0x4] sm:$0xe]  ;;  %v1158_v41 = vcombine.low %v452_v37, %v453_v38  ;;  %v500_v52 = vshll.u32 %v1404_v43, 16  ;;  %v1407_v62 = vld [vmem:[%s1476_s25 + $0x1c] sm:$0xff]  }
  0x17   : > { %1338 = vmatpush3.bf16.msra.mxu1 %v1400_v12  ;;  %v239_v29 = vor.u32 %v237_v25, %v235_v21  ;;  %v249_v34 = vshll.u32 %v1138_v31, 16  ;;  %v247_v35 = vor.u32 %v245_v33, %v243_v30  ;;  %v1174_v44 = vcombine.low %v639_v39, %v453_v38 }
  0x18   : > { %v228_v19 = vsel %vm216_vm2, %v223_v15, %v227_v14  ;;  %v236_v24 = vsel %vm216_vm2, %v231_v20, %v235_v21  ;;  %v253_v45 = vshrl.u32 %v1138_v31, 16  ;;  %v495_v46 = vshll.u32 %v1158_v41, 16 }
  0x19   : > { %1268 = vmatmul.mubr.msk.bf16.vlgmr.msra.gmra.mrb[0].mxu0 %vm268_vm1, %v228_v19  ;;  %v244_v32 = vsel %vm216_vm2, %v239_v29, %v243_v30  ;;  %v251_v36 = vrot.slane %v249_v34, 1  ;;  %v649_v47 = vrot.slane %v1174_v44, 1  ;;  %v493_v50 = vshrl.u32 %v1158_v41, 16 }
  0x1a   : > { %1312 = vmatpush3.bf16.msra.mxu0 %v1395_v16  ;;  %1271 = vmatprep.mubr.msk.bf16.mxu0 %vm1420_vm0, %v1419_v1  ;;  %v497_v51 = vrot.slane %v495_v46, 1  ;;  %v502_v56 = vrot.slane %v500_v52, 1  ;;  %v652_v57 = vrot.slane %v1406_v54, 1  ;;  %v504_v59 = vshrl.u32 %v1404_v43, 16 }
  0x1b   : > { %1296 = vmatmul.mubr.msk.bf16.gmra.mrb[4].mxu1 %vm268_vm1, %v1394_v7  ;;  %1313 = vmatprep.subr.bf16.mxu0 %v1419_v1  ;;  %v252_v40 = vsel %vm216_vm2, %v247_v35, %v251_v36  ;;  %v255_v49 = vor.u32 %v253_v45, %v251_v36  ;;  %v651_v53 = vsel %vm648_vm3, %v649_v47, %v650_v48  ;;  %v508_v60 = vshll.u32 %v1406_v54, 16  ;;  %v1408_v7 = vld [vmem:[%s1476_s25 + $0x24] sm:$0x1f]  }
  0x1c   : > { %1299 = vmatprep.mubr.msk.bf16.mxu1 %vm1420_vm0, %v1419_v1  ;;  %v498_v55 = vor.u32 %v497_v51, %v493_v50  ;;  %v653_v61 = vsel %vm648_vm3, %v650_v48, %v652_v57  ;;  %v506_v63 = vor.u32 %v504_v59, %v502_v56  ;;  %v654_v2 = vrot.slane %v1407_v62, 1 }
  0x1d   : > { %v510_v0 = vrot.slane %v508_v60, 1  ;;  %v512_v4 = vshrl.u32 %v1406_v54, 16  ;;  %v516_v5 = vshll.u32 %v1407_v62, 16  ;;  %v656_v10 = vrot.slane %v1408_v7, 1 }
  0x1e   : > { %1314 = vmatpush3.bf16.msra.mxu0 %v1399_v23  ;;  %v503_v58 = vsel %vm216_vm2, %v498_v55, %v502_v56  ;;  %v655_v6 = vsel %vm648_vm3, %v652_v57, %v654_v2  ;;  %v520_v12 = vshrl.u32 %v1407_v62, 16  ;;  %v524_v13 = vshll.u32 %v1408_v7, 16 }
  0x1f   : > { %v511_v3 = vsel %vm216_vm2, %v506_v63, %v510_v0  ;;  %v514_v8 = vor.u32 %v512_v4, %v510_v0  ;;  %v518_v9 = vrot.slane %v516_v5, 1  ;;  %v657_v14 = vsel %vm648_vm3, %v654_v2, %v656_v10 }
  0x20   : > { %v526_v16 = vrot.slane %v524_v13, 1  ;;  %v528_v18 = vshrl.u32 %v1408_v7, 16  ;;  %v782_v39 = vlaneseq }
  0x21   : > { %1272 = vmatmul.mubr.msk.bf16.gmra.mrb[4].mxu0 %vm268_vm1, %v236_v24  ;;  %v522_v15 = vor.u32 %v520_v12, %v518_v9 }
  0x22   : > { %1275 = vmatprep.mubr.msk.bf16.mxu0 %vm1420_vm0, %v1419_v1  ;;  %v530_v19 = vor.u32 %v528_v18, %v526_v16  ;;  %v1582_v45 = vshrl.u32 %v782_v39, 7 }
  0x23   : > { %1300 = vmatmul.mubr.msk.bf16.gmra.mrb[8].mxu1 %vm268_vm1, %v1397_v11  ;;  %v519_v11 = vsel %vm216_vm2, %v514_v8, %v518_v9  ;;  %v527_v17 = vsel %vm216_vm2, %v522_v15, %v526_v16 }
  0x24   : > { %1303 = vmatprep.mubr.msk.bf16.mxu1 %vm1420_vm0, %v1419_v1  ;;  %v784_v51 = vadd.s32 8, %v1582_v45  ;;  %v1597_v62 = vadd.s32 16, %v1582_v45  ;;  %v1604_v7 = vadd.s32 24, %v1582_v45 }
  0x26   : > { %v1593_v59 = vmul.u32.u64.low 3817748708, %v784_v51  ;;  %v1594_v60 = vmul.u32.u64.high 3817748708, %v784_v51, %v1593_v59 }
  0x28   : > { %v809_v13 = vshrl.u32 %v1594_v60, 3 }
  0x29   : > { %1276 = vmatmul.mubr.msk.bf16.gmra.mrb[8].mxu0 %vm268_vm1, %v244_v32 }
  0x2a   : > { %1279 = vmatprep.mubr.msk.bf16.mxu0 %vm1420_vm0, %v1419_v1 }
  0x2b   : > { %1304 = vmatmul.mubr.msk.bf16.gmra.mrb[12].mxu1 %vm268_vm1, %v1398_v22 }
  0x2c   : > { %1307 = vmatprep.mubr.msk.bf16.mxu1 %vm1420_vm0, %v1419_v1 }
  0x31   : > { %1280 = vmatmul.mubr.msk.bf16.gmra.mrb[12].mxu0 %vm268_vm1, %v252_v40 }
  0x32   : > { %1283 = vmatprep.mubr.msk.bf16.mxu0 %vm1420_vm0, %v1419_v1 }
  0x33   : > { %1308 = vmatmul.mubr.msk.bf16.gmra.mrb[16].mxu1 %vm268_vm1, %v1146_v42 }
  0x34   : > { %1339 = vmatprep.mubr.msk.bf16.mxu1 %vm1420_vm0, %v1419_v1 }
  0x39   : > { %1284 = vmatmul.mubr.msk.bf16.gmra.mrb[16].mxu0 %vm268_vm1, %v255_v49 }
  0x3a   : > { %1315 = vmatprep.mubr.msk.bf16.mxu0 %vm1420_vm0, %v1419_v1 }
  0x3b   : > { %1340 = vmatmul.mubr.msk.bf16.vlgmr.msra.gmra.mrb[20].mxu1 %vm268_vm1, %v651_v53 }
  0x3c   : > { %1343 = vmatprep.mubr.msk.bf16.mxu1 %vm1420_vm0, %v1419_v1 }
  0x41   : > { %1316 = vmatmul.mubr.msk.bf16.vlgmr.msra.gmra.mrb[20].mxu0 %vm268_vm1, %v503_v58  ;;  %v1590_v57 = vmul.u32.u64.low 3817748708, %v1582_v45  ;;  %v1591_v58 = vmul.u32.u64.high 3817748708, %v1582_v45, %v1590_v57 }
  0x42   : > { %1319 = vmatprep.mubr.msk.bf16.mxu0 %vm1420_vm0, %v1419_v1 }
  0x43   : > { %1344 = vmatmul.mubr.msk.bf16.gmra.mrb[24].mxu1 %vm268_vm1, %v653_v61  ;;  %v798_v12 = vshrl.u32 %v1591_v58, 3  ;;  %v1654_v58 = vadd.s32 56, %v1582_v45 }
  0x44   : > { %1347 = vmatprep.mubr.msk.bf16.mxu1 %vm1420_vm0, %v1419_v1 }
  0x49   : > { %1320 = vmatmul.mubr.msk.bf16.gmra.mrb[24].mxu0 %vm268_vm1, %v511_v3 }
  0x4a   : > { %1323 = vmatprep.mubr.msk.bf16.mxu0 %vm1420_vm0, %v1419_v1 }
  0x4b   : > { %1348 = vmatmul.mubr.msk.bf16.gmra.mrb[28].mxu1 %vm268_vm1, %v655_v6 }
  0x4c   : > { %1351 = vmatprep.mubr.msk.bf16.mxu1 %vm1420_vm0, %v1419_v1 }
  0x51   : > { %1324 = vmatmul.mubr.msk.bf16.gmra.mrb[28].mxu0 %vm268_vm1, %v519_v11 }
  0x52   : > { %1327 = vmatprep.mubr.msk.bf16.mxu0 %vm1420_vm0, %v1419_v1 }
  0x53   : > { %1352 = vmatmul.mubr.msk.bf16.gmra.mrb[32].mxu1 %vm268_vm1, %v657_v14  ;;  %v1613_v14 = vmul.u32.u64.low 3817748708, %v1604_v7  ;;  %v1614_v15 = vmul.u32.u64.high 3817748708, %v1604_v7, %v1613_v14 }
  0x54   : > { %1355 = vmatprep.mubr.msk.bf16.mxu1 %vm1420_vm0, %v1419_v1 }
  0x55   : > { %v831_v39 = vshrl.u32 %v1614_v15, 3 }
  0x57   : > { %v832_v57 = vmul.u32 9, %v831_v39 }
  0x59   : > { %1328 = vmatmul.mubr.msk.bf16.gmra.mrb[32].mxu0 %vm268_vm1, %v527_v17  ;;  %v1617_v17 = vadd.s32 32, %v1582_v45 }
  0x5a   : > { %1331 = vmatprep.mubr.msk.bf16.mxu0 %vm1420_vm0, %v1419_v1 }
  0x5b   : > { %1356 = vmatmul.mubr.msk.bf16.gmra.mrb[36].mxu1 %vm268_vm1, %v656_v10  ;;  %v1607_v9 = vmul.u32.u64.low 3817748708, %v1597_v62  ;;  %v1608_v10 = vmul.u32.u64.high 3817748708, %v1597_v62, %v1607_v9 }
  0x61   : > { %1332 = vmatmul.mubr.msk.bf16.gmra.mrb[36].mxu0 %vm268_vm1, %v530_v19 }
  0xe5   : > { %v414_v20 = vpop.f32.mrb[0].mxu1 }
  0xe6   : > { %v1293_v21 = vpop.f32.mrb[1].mxu1 }
  0xe7   : > { %v417_v22 = vpop.f32.mrb[2].mxu1 }
  0xe8   : > { %v1294_v23 = vpop.f32.mrb[3].mxu1 }
  0xe9   : > { %v810_v23 = vmul.u32 9, %v809_v13 }
  0xec   : > { %v318_v24 = vpop.f32.mrb[0].mxu0 }
  0xed   : > { %v1574_v25 = vadd.f32 %v414_v20, %v318_v24  ;;  %v1269_v26 = vpop.f32.mrb[1].mxu0  ;;  %v1622_v24 = vadd.s32 40, %v1582_v45 }
  0xee   : > { %v321_v27 = vpop.f32.mrb[2].mxu0  ;;  %v422_v28 = vpop.f32.mrb[4].mxu1 }
  0xef   : > { %v1576_v29 = vadd.f32 %v417_v22, %v321_v27  ;;  %v1270_v30 = vpop.f32.mrb[3].mxu0  ;;  %v1297_v31 = vpop.f32.mrb[5].mxu1  ;;  %v799_v22 = vmul.u32 9, %v798_v12 }
  0xf0   : > { %v425_v32 = vpop.f32.mrb[6].mxu1  ;;  %v820_v30 = vshrl.u32 %v1608_v10, 3  ;;  %v833_v10 = vsub.s32 %v1604_v7, %v832_v57  ;;  %v1694_v7 = vadd.s32 64, %v1582_v45 }
  0xf1   : > { %v1298_v33 = vpop.f32.mrb[7].mxu1 }
  0xf2   : > { %vm894_vm7 = vcmp.lt.s32.totalorder %v833_v10, 8 }
  0xf4   : > { %v326_v34 = vpop.f32.mrb[4].mxu0 }
  0xf5   : > { %v1578_v35 = vadd.f32 %v422_v28, %v326_v34  ;;  %v1273_v36 = vpop.f32.mrb[5].mxu0  ;;  %v800_v34 = vsub.s32 %v1582_v45, %v799_v22 }
  0xf6   : > { %v329_v37 = vpop.f32.mrb[6].mxu0  ;;  %v430_v38 = vpop.f32.mrb[8].mxu1  ;;  %v811_v36 = vsub.s32 %v784_v51, %v810_v23 }
  0xf7   : > { %v1580_v40 = vadd.f32 %v425_v32, %v329_v37  ;;  %v1274_v41 = vpop.f32.mrb[7].mxu0  ;;  %v1301_v42 = vpop.f32.mrb[9].mxu1  ;;  %v1626_v31 = vmul.u32.u64.low 3817748708, %v1617_v17  ;;  %v1627_v32 = vmul.u32.u64.high 3817748708, %v1617_v17, %v1626_v31  ;;  %vm1644_vm4 = vcmp.lt.s32.totalorder %v800_v34, 8 }
  0xf8   : > { %v433_v43 = vpop.f32.mrb[10].mxu1  ;;  %v821_v42 = vmul.u32 9, %v820_v30  ;;  %vm1648_vm5 = vcmp.lt.s32.totalorder %v811_v36, 8 }
  0xf9   : > { %v1302_v44 = vpop.f32.mrb[11].mxu1 }
  0xfa   : > { %v822_v59 = vsub.s32 %v1597_v62, %v821_v42  ;;  %v1673_v62 = vsel %vm1648_vm5, 1.0, %v1419_v1 }
  0xfc   : > { %v334_v46 = vpop.f32.mrb[8].mxu0  ;;  %vm1684_vm6 = vcmp.lt.s32.totalorder %v822_v59, 8 }
  0xfd   : > { %v1584_v47 = vadd.f32 %v430_v38, %v334_v46  ;;  %v1277_v48 = vpop.f32.mrb[9].mxu0  ;;  %v1631_v37 = vmul.u32.u64.low 3817748708, %v1622_v24  ;;  %v1632_v38 = vmul.u32.u64.high 3817748708, %v1622_v24, %v1631_v37 }
  0xfe   : > { %v337_v49 = vpop.f32.mrb[10].mxu0  ;;  %v438_v50 = vpop.f32.mrb[12].mxu1  ;;  %v1642_v48 = vld [vmem:[%s1776_s2] ss:$0 sm:$0xff] }
  0xff   : > { %v1587_v52 = vadd.f32 %v433_v43, %v337_v49  ;;  %v1278_v53 = vpop.f32.mrb[11].mxu0  ;;  %v1305_v54 = vpop.f32.mrb[13].mxu1  ;;  %v1636_v43 = vadd.s32 48, %v1582_v45 }
 0x100   : > { %v441_v55 = vpop.f32.mrb[14].mxu1 }
 0x101   : > { %v1306_v56 = vpop.f32.mrb[15].mxu1 }
 0x104   : > { %v342_v61 = vpop.f32.mrb[12].mxu0 }
 0x105   : > { %v1599_v63 = vadd.f32 %v438_v50, %v342_v61  ;;  %v1281_v0 = vpop.f32.mrb[13].mxu0  ;;  %v842_v61 = vshrl.u32 %v1627_v32, 3 }
 0x106   : > { %v345_v2 = vpop.f32.mrb[14].mxu0  ;;  %v446_v3 = vpop.f32.mrb[16].mxu1 }
 0x107   : > { %v1601_v4 = vadd.f32 %v441_v55, %v345_v2  ;;  %v1282_v5 = vpop.f32.mrb[15].mxu0  ;;  %v1309_v6 = vpop.f32.mrb[17].mxu1  ;;  %v1659_v0 = vmul.u32.u64.low 3817748708, %v1636_v43  ;;  %v1660_v2 = vmul.u32.u64.high 3817748708, %v1636_v43, %v1659_v0  ;;  %v843_v15 = vmul.u32 9, %v842_v61 }
 0x108   : > { %v449_v8 = vpop.f32.mrb[18].mxu1  ;;  %v1668_v6 = vsel %vm1644_vm4, 1.0, %v1419_v1 }
 0x109   : > { %v1310_v11 = vpop.f32.mrb[19].mxu1  ;;  %v853_v8 = vshrl.u32 %v1632_v38, 3  ;;  %v864_v45 = vshrl.u32 %v1660_v2, 3 }
 0x10a   : > { %v1681_v11 = vmul.u32.u64.low 3817748708, %v1654_v58  ;;  %v1682_v12 = vmul.u32.u64.high 3817748708, %v1654_v58, %v1681_v11 }
 0x10c   : > { %v350_v16 = vpop.f32.mrb[16].mxu0 }
 0x10d   : > { %v1619_v18 = vadd.f32 %v446_v3, %v350_v16  ;;  %v1285_v19 = vpop.f32.mrb[17].mxu0 }
 0x10e   : > { %v353_v20 = vpop.f32.mrb[18].mxu0  ;;  %v719_v21 = vpop.f32.mrb[20].mxu1 }
 0x10f   : > { %v1286_v26 = vpop.f32.mrb[19].mxu0  ;;  %v1341_v27 = vpop.f32.mrb[21].mxu1 }
 0x110   : > { %v722_v28 = vpop.f32.mrb[22].mxu1  ;;  %v854_v26 = vmul.u32 9, %v853_v8 }
 0x111   : > { %v1342_v33 = vpop.f32.mrb[23].mxu1 }
 0x112   : > { %v1700_v33 = vsel %vm1684_vm6, 1.0, %v1419_v1  ;;  %v855_v42 = vsub.s32 %v1622_v24, %v854_v26 }
 0x114   : > { %v592_v41 = vpop.f32.mrb[20].mxu0  ;;  %vm896_vm9 = vcmp.lt.s32.totalorder %v855_v42, 8 }
 0x115   : > { %v630_v44 = vadd.f32 %v592_v41, %v1574_v25  ;;  %v1317_v46 = vpop.f32.mrb[21].mxu0  ;;  %v1712_v41 = vsel %vm894_vm7, 1.0, %v1419_v1 }
 0x116   : > { %v595_v50 = vpop.f32.mrb[22].mxu0  ;;  %v727_v53 = vpop.f32.mrb[24].mxu1  ;;  %v875_v46 = vshrl.u32 %v1682_v12, 3  ;;  %v1732_v12 = vsel %vm896_vm9, 1.0, %v1419_v1 }
 0x117   : > { %v757_v54 = vadd.f32 %v719_v21, %v630_v44  ;;  %v631_v55 = vadd.f32 %v595_v50, %v1576_v29  ;;  %v1318_v25 = vpop.f32.mrb[23].mxu0  ;;  %v1345_v56 = vpop.f32.mrb[25].mxu1  ;;  %v865_v50 = vmul.u32 9, %v864_v45 }
 0x118   : > { %v730_v60 = vpop.f32.mrb[26].mxu1  ;;  %v876_v0 = vmul.u32 9, %v875_v46 }
 0x119   : > { %v1663_v3 = vadd.f32 %v1642_v48, %v757_v54  ;;  %v758_v5 = vadd.f32 %v722_v28, %v631_v55  ;;  %v1346_v29 = vpop.f32.mrb[27].mxu1 }
 0x11a   : > { %v877_v14 = vsub.s32 %v1654_v58, %v876_v0 }
 0x11b   : > { %v1677_v9 = vadd.f32 %v1642_v48, %v758_v5  ;;  %v918_v16 = vmul.f32 %v1668_v6, %v1663_v3  ;;  %v866_v5 = vsub.s32 %v1636_v43, %v865_v50 }
 0x11c   : > { %v600_v13 = vpop.f32.mrb[24].mxu0  ;;  %vm898_vm11 = vcmp.lt.s32.totalorder %v877_v14, 8 }
 0x11d   : > { %v919_v19 = vmul.f32 %v1673_v62, %v1677_v9  ;;  %v632_v20 = vadd.f32 %v600_v13, %v1578_v35  ;;  %v1321_v21 = vpop.f32.mrb[25].mxu0  ;;  %v844_v35 = vsub.s32 %v1617_v17, %v843_v15  ;;  %vm897_vm10 = vcmp.lt.s32.totalorder %v866_v5, 8 }
 0x11e   : > { %v603_v22 = vpop.f32.mrb[26].mxu0  ;;  %v735_v23 = vpop.f32.mrb[28].mxu1  ;;  %v1189_v58 = vsel %vm897_vm10, 1.0, %v1419_v1 }
 0x11f   : > { %v927_v27 = vadd.f32 %v919_v19, %v918_v16  ;;  %v759_v28 = vadd.f32 %v727_v53, %v632_v20  ;;  %v633_v30 = vadd.f32 %v603_v22, %v1580_v40  ;;  %v1322_v31 = vpop.f32.mrb[27].mxu0  ;;  %v1349_v32 = vpop.f32.mrb[29].mxu1  ;;  %vm895_vm8 = vcmp.lt.s32.totalorder %v844_v35, 8 }
 0x120   : > { %v738_v34 = vpop.f32.mrb[30].mxu1  ;;  %v1708_v40 = vmul.u32.u64.low 3817748708, %v1694_v7  ;;  %v1709_v39 = vmul.u32.u64.high 3817748708, %v1694_v7, %v1708_v40  ;;  %v1726_v2 = vsel %vm895_vm8, 1.0, %v1419_v1 }
 0x121   : > { %v1705_v36 = vadd.f32 %v1642_v48, %v759_v28  ;;  %v760_v37 = vadd.f32 %v730_v60, %v633_v30  ;;  %v1350_v38 = vpop.f32.mrb[31].mxu1 }
 0x122   : > { %v886_v11 = vshrl.u32 %v1709_v39, 3 }
 0x123   : > { %v920_v17 = vmul.f32 %v1700_v33, %v1705_v36  ;;  %v1718_v44 = vadd.f32 %v1642_v48, %v760_v37  ;;  %v1190_v37 = vsel %vm898_vm11, 1.0, %v1419_v1 }
 0x124   : > { %v608_v49 = vpop.f32.mrb[28].mxu0  ;;  %v887_v21 = vmul.u32 9, %v886_v11 }
 0x125   : > { %v928_v51 = vadd.f32 %v927_v27, %v920_v17  ;;  %v921_v53 = vmul.f32 %v1712_v41, %v1718_v44  ;;  %v634_v54 = vadd.f32 %v608_v49, %v1584_v47  ;;  %v1325_v55 = vpop.f32.mrb[29].mxu0 }
 0x126   : > { %v611_v25 = vpop.f32.mrb[30].mxu0  ;;  %v743_v24 = vpop.f32.mrb[32].mxu1  ;;  %v888_v45 = vsub.s32 %v1694_v7, %v887_v21 }
 0x127   : > { %v929_v56 = vadd.f32 %v928_v51, %v921_v53  ;;  %v761_v57 = vadd.f32 %v735_v23, %v634_v54  ;;  %v635_v59 = vadd.f32 %v611_v25, %v1587_v52  ;;  %v1326_v60 = vpop.f32.mrb[31].mxu0  ;;  %v1353_v61 = vpop.f32.mrb[33].mxu1 }
 0x128   : > { %v746_v29 = vpop.f32.mrb[34].mxu1  ;;  %vm899_vm12 = vcmp.lt.s32.totalorder %v888_v45, 8 }
 0x129   : > { %v777_v47 = vadd.f32 %v1642_v48, %v761_v57  ;;  %v762_v8 = vadd.f32 %v738_v34, %v635_v59  ;;  %v1354_v10 = vpop.f32.mrb[35].mxu1  ;;  %v1191_v54 = vsel %vm899_vm12, 1.0, %v1419_v1 }
 0x12b   : > { %v922_v52 = vmul.f32 %v1726_v2, %v777_v47  ;;  %v778_v13 = vadd.f32 %v1642_v48, %v762_v8 }
 0x12c   : > { %v616_v15 = vpop.f32.mrb[32].mxu0 }
 0x12d   : > { %v930_v16 = vadd.f32 %v929_v56, %v922_v52  ;;  %v923_v43 = vmul.f32 %v1732_v12, %v778_v13  ;;  %v636_v19 = vadd.f32 %v616_v15, %v1599_v63  ;;  %v1329_v20 = vpop.f32.mrb[33].mxu0 }
 0x12e   : > { %v619_v22 = vpop.f32.mrb[34].mxu0  ;;  %v751_v23 = vpop.f32.mrb[36].mxu1 }
 0x12f   : > { %v931_v26 = vadd.f32 %v930_v16, %v923_v43  ;;  %v763_v27 = vadd.f32 %v743_v24, %v636_v19  ;;  %v637_v28 = vadd.f32 %v619_v22, %v1601_v4  ;;  %v1330_v30 = vpop.f32.mrb[35].mxu0  ;;  %v1357_v31 = vpop.f32.mrb[37].mxu1 }
 0x130   : > { %v754_v32 = vpop.f32.mrb[38].mxu1 }
 0x131   : > { %v779_v35 = vadd.f32 %v1642_v48, %v763_v27  ;;  %v764_v34 = vadd.f32 %v746_v29, %v637_v28  ;;  %v1358_v63 = vpop.f32.mrb[39].mxu1 }
 0x133   : > { %v924_v38 = vmul.f32 %v1189_v58, %v779_v35  ;;  %v780_v40 = vadd.f32 %v1642_v48, %v764_v34 }
 0x134   : > { %v624_v39 = vpop.f32.mrb[36].mxu0 }
 0x135   : > { %v932_v42 = vadd.f32 %v931_v26, %v924_v38  ;;  %v925_v4 = vmul.f32 %v1190_v37, %v780_v40  ;;  %v638_v17 = vadd.f32 %v624_v39, %v1619_v18  ;;  %v1333_v46 = vpop.f32.mrb[37].mxu0 }
 0x136   : > { %v627_v49 = vpop.f32.mrb[38].mxu0 }
 0x137   : > { %v933_v50 = vadd.f32 %v932_v42, %v925_v4  ;;  %v765_v51 = vadd.f32 %v751_v23, %v638_v17  ;;  %v1334_v53 = vpop.f32.mrb[39].mxu0 }
 0x139   : > { %v781_v7 = vadd.f32 %v1642_v48, %v765_v51 }
 0x13b   : > { %v926_v55 = vmul.f32 %v1191_v54, %v781_v7 }
 0x13d   : > { %v934_v25 = vadd.f32 %v933_v50, %v926_v55 }
 0x13f   : > { %v935_v24 = vrot.slane %v934_v25, 4 }
 0x141   : > { %v936_v56 = vadd.f32 %v935_v24, %v934_v25 }
 0x143   : > { %v937_v57 = vrot.slane %v936_v56, 2 }
 0x145   : > { %v938_v59 = vadd.f32 %v937_v57, %v936_v56 }
 0x147   : > { %v939_v60 = vrot.slane %v938_v59, 1 }
 0x149   : > { %v940_v61 = vadd.f32 %v939_v60, %v938_v59 }
 0x14b   : > { %v941_v0 = vmul.f32 0.015625, %v940_v61 }
 0x14d   : > { %v942_v18 = vsub.f32 %v1663_v3, %v941_v0  ;;  %v943_v5 = vsub.f32 %v1677_v9, %v941_v0  ;;  %v944_v29 = vsub.f32 %v1705_v36, %v941_v0  ;;  %v945_v8 = vsub.f32 %v1718_v44, %v941_v0 }
 0x14e   : > { %v946_v1 = vsub.f32 %v777_v47, %v941_v0  ;;  %v947_v10 = vsub.f32 %v778_v13, %v941_v0  ;;  %v948_v48 = vsub.f32 %v779_v35, %v941_v0  ;;  %v949_v11 = vsub.f32 %v780_v40, %v941_v0 }
 0x14f   : > { %v950_v52 = vsub.f32 %v781_v7, %v941_v0  ;;  %v951_v14 = vmul.f32 %v1668_v6, %v942_v18  ;;  %v952_v15 = vmul.f32 %v1673_v62, %v943_v5  ;;  %v953_v16 = vmul.f32 %v1700_v33, %v944_v29 }
 0x150   : > { %v954_v43 = vmul.f32 %v1712_v41, %v945_v8  ;;  %v955_v9 = vmul.f32 %v1726_v2, %v946_v1  ;;  %v956_v44 = vmul.f32 %v1732_v12, %v947_v10  ;;  %v957_v21 = vmul.f32 %v1189_v58, %v948_v48 }
 0x151   : > { %v960_v3 = vmul.f32 %v951_v14, %v951_v14  ;;  %v961_v19 = vmul.f32 %v952_v15, %v952_v15  ;;  %v962_v36 = vmul.f32 %v953_v16, %v953_v16  ;;  %v958_v6 = vmul.f32 %v1190_v37, %v949_v11 }
 0x152   : > { %v963_v47 = vmul.f32 %v954_v43, %v954_v43  ;;  %v964_v22 = vmul.f32 %v955_v9, %v955_v9  ;;  %v965_v26 = vmul.f32 %v956_v44, %v956_v44  ;;  %v959_v27 = vmul.f32 %v1191_v54, %v950_v52 }
 0x153   : > { %v969_v20 = vadd.f32 %v961_v19, %v960_v3  ;;  %v966_v33 = vmul.f32 %v957_v21, %v957_v21  ;;  %v967_v41 = vmul.f32 %v958_v6, %v958_v6 }
 0x154   : > { %v968_v31 = vmul.f32 %v959_v27, %v959_v27 }
 0x155   : > { %v970_v13 = vadd.f32 %v969_v20, %v962_v36 }
 0x157   : > { %v971_v23 = vadd.f32 %v970_v13, %v963_v47 }
 0x159   : > { %v972_v62 = vadd.f32 %v971_v23, %v964_v22 }
 0x15b   : > { %v973_v28 = vadd.f32 %v972_v62, %v965_v26 }
 0x15d   : > { %v974_v30 = vadd.f32 %v973_v28, %v966_v33 }
 0x15f   : > { %v975_v32 = vadd.f32 %v974_v30, %v967_v41 }
 0x161   : > { %v976_v2 = vadd.f32 %v975_v32, %v968_v31 }
 0x163   : > { %v977_v35 = vrot.slane %v976_v2, 4 }
 0x165   : > { %v978_v34 = vadd.f32 %v977_v35, %v976_v2 }
 0x167   : > { %v979_v45 = vrot.slane %v978_v34, 2 }
 0x169   : > { %v980_v12 = vadd.f32 %v979_v45, %v978_v34 }
 0x16b   : > { %v981_v63 = vrot.slane %v980_v12, 1 }
 0x16d   : > { %v982_v38 = vadd.f32 %v981_v63, %v980_v12 }
 0x16f   : > { %v983_v58 = vmul.f32 0.015625, %v982_v38 }
 0x171   : > { %v984_v40 = vadd.f32 1e-05, %v983_v58 }
 0x173   : > { %1409 = vrsqrt.f32 %v984_v40 }
 0x17d   : > { %v1410_v37 = vpop.eup %1409 }
 0x17e   : > { %v986_v39 = vmul.f32 %v1410_v37, %v942_v18  ;;  %v987_v42 = vmul.f32 %v1410_v37, %v943_v5  ;;  %v988_v4 = vmul.f32 %v1410_v37, %v944_v29  ;;  %v989_v17 = vmul.f32 %v1410_v37, %v945_v8 }
 0x17f   : > { %v990_v46 = vmul.f32 %v1410_v37, %v946_v1  ;;  %v991_v49 = vmul.f32 %v1410_v37, %v947_v10  ;;  %v992_v50 = vmul.f32 %v1410_v37, %v948_v48  ;;  %v993_v51 = vmul.f32 %v1410_v37, %v949_v11 }
 0x180   : > { %v994_v53 = vmul.f32 %v1410_v37, %v950_v52  ;;  %vm995_vm13 = vcmp.gt.f32.partialorder %v986_v39, 0.0  ;;  %vm996_vm14 = vcmp.gt.f32.partialorder %v987_v42, 0.0  ;;  %vm997_vm15 = vcmp.gt.f32.partialorder %v988_v4, 0.0 }
 0x181   : > { %vm998_vm0 = vcmp.gt.f32.partialorder %v989_v17, 0.0  ;;  %vm999_vm1 = vcmp.gt.f32.partialorder %v990_v46, 0.0  ;;  %vm1000_vm2 = vcmp.gt.f32.partialorder %v991_v49, 0.0  ;;  %vm1001_vm3 = vcmp.gt.f32.partialorder %v992_v50, 0.0 }
 0x182   : > { %vm1002_vm4 = vcmp.gt.f32.partialorder %v993_v51, 0.0  ;;  %vm1003_vm5 = vcmp.gt.f32.partialorder %v994_v53, 0.0  ;;  %v1004_v54 = vmul.f32 0.2, %v986_v39  ;;  %v1005_v7 = vmul.f32 0.2, %v987_v42 }
 0x183   : > { %v1006_v55 = vmul.f32 0.2, %v988_v4  ;;  %v1007_v25 = vmul.f32 0.2, %v989_v17  ;;  %v1008_v24 = vmul.f32 0.2, %v990_v46 }
 0x184   : > { %v1009_v56 = vmul.f32 0.2, %v991_v49  ;;  %v1010_v57 = vmul.f32 0.2, %v992_v50  ;;  %v1011_v59 = vmul.f32 0.2, %v993_v51  ;;  %v1013_v60 = vsel %vm995_vm13, %v986_v39, %v1004_v54 }
 0x185   : > { %v1012_v61 = vmul.f32 0.2, %v994_v53  ;;  %v1014_v0 = vsel %vm996_vm14, %v987_v42, %v1005_v7  ;;  %v1015_v18 = vsel %vm997_vm15, %v988_v4, %v1006_v55  ;;  %v1016_v5 = vsel %vm998_vm0, %v989_v17, %v1007_v25 }
 0x186   : > { %v1017_v29 = vsel %vm999_vm1, %v990_v46, %v1008_v24  ;;  %v1018_v8 = vsel %vm1000_vm2, %v991_v49, %v1009_v56  ;;  %v1019_v1 = vsel %vm1001_vm3, %v992_v50, %v1010_v57  ;;  %v1020_v10 = vsel %vm1002_vm4, %v993_v51, %v1011_v59 }
 0x187   : > { %v1021_v48 = vsel %vm1003_vm5, %v994_v53, %v1012_v61  ;;  %v1215_v11 = vpack.c.bf16 %v1014_v0, %v1013_v60  ;;  %v1220_v52 = vpack.c.bf16 %v1016_v5, %v1015_v18  ;;  %v1225_v14 = vpack.c.bf16 %v1018_v8, %v1017_v29 }
 0x188   : > { %v1211_v15 = vpack.c.bf16 %v1021_v48, %v1021_v48  ;;  %v1230_v16 = vpack.c.bf16 %v1020_v10, %v1019_v1 }
 0x189   : > { %1216 = vst [vmem:[%s170_s13] sm:$0xff] %v1215_v11   ;;  %1232 = vst [vmem:[%s170_s13 + $0x8] sm:$0xff] %v1220_v52  }
 0x18a   : > { %1233 = vst [vmem:[%s170_s13 + $0x10] sm:$0xff] %v1225_v14   ;;  %1234 = vst [vmem:[%s170_s13 + $0x18] sm:$0xff] %v1230_v16  }
 0x18b   : > { %1067 = vst [vmem:[%s170_s13 + $0x20] sm:$0xf] %v1211_v15 }
 0x18c PF: > { %s13_s12 = sadd.s32 1, %s1417_s12  }
 0x18d   : > { %p10_p4 = scmp.ge.s32.totalorder %s13_s12, 4  }
 0x18f   :  { %12 = sbr.rel (!%p10_p4) target bundleno = 1 (0x1), region = 65 }

// kernel: discriminator_forward.7
= control target key start
LH: loop header
LB: loop body
LE: loop exit
PB: predicated region body
PF: predicated region fallthrough
CT: control target
= control target key end

     0   :  { %s991_s12 = smov 0   ;;  %s1096_s0 = inlined_call_operand.vmem [shape: bf16[2,30,64], index: 0, kind: input, shape index: {}]   ;;  %s1097_s1 = inlined_call_operand.vmem [shape: bf16[4,64,128], index: 1, kind: input, shape index: {}]   ;;  %s1098_s2 = inlined_call_operand.vmem [shape: f32[1,128], index: 2, kind: input, shape index: {}]   ;;  %s1099_s3 = inlined_call_operand.vmem [shape: bf16[2,20,128], index: 3, kind: output, shape index: {}]  }
   0x1 LB: > { %s770_s13 = sadd.s32 4294967295, %s968_s12   ;;  %p774_p0 = scmp.ge.s32.totalorder %s968_s12, 1  ;;  %s968_s12 = sphi %s991_s12, %s13_s12  }
   0x2   : > { %p137_p1 = scmp.lt.s32.totalorder %s968_s12, 3 }
   0x4   : > { %p138_p2 = pnand %p774_p0, %p137_p1 }
   0x5   : > { %v938_v0 = vld [vmem:[%s1097_s1 + $0x20] sm:$0xff] (!%p138_p2)   ;;  %p161_p3 = scmp.lt.s32.totalorder (!%p138_p2), %s770_s13, 1  ;;  %v940_v2 = vld [vmem:[%s1097_s1 + $0x28] sm:$0xff] (!%p138_p2)   ;;  %v942_v4 = vld [vmem:[%s1097_s1 + $0x30] sm:$0xff] (!%p138_p2)   ;;  %vm241_vm0 = vcmask (!%p138_p2), 523264   ;;  %vm511_vm2 = vcmask (!%p138_p2), 1044480   ;;  %v606_v48 = vlaneseq (!%p138_p2) }
   0x6   : > { %141 = sbr.rel (%p138_p2) target bundleno = 328 (0x148), region = 32  ;;  %v939_v1 = vld [vmem:[%s1097_s1] sm:$0xff] (!%p138_p2)   ;;  %874 = vmatprep.subr.bf16.mxu0 (!%p138_p2), %v938_v0  ;;  %v941_v3 = vld [vmem:[%s1097_s1 + $0x8] sm:$0xff] (!%p138_p2)   ;;  %v943_v5 = vld [vmem:[%s1097_s1 + $0x10] sm:$0xff] (!%p138_p2)   ;;  %vm201_vm1 = vsmask.f32 (!%p138_p2), 7424 }
   0x7   : > { %886 = vmatprep.subr.bf16.mxu1 (!%p138_p2), %v939_v1  ;;  %875 = vmatpush3.bf16.msra.mxu0 (!%p138_p2), %v938_v0  ;;  %v944_v6 = vld [vmem:[%s1097_s1 + $0x38] sm:$0xff] (!%p138_p2)   ;;  %v949_v10 = vld [vmem:[%s1097_s1 + $0x40] sm:$0xff] (!%p138_p2)   ;;  %v951_v21 = vld [vmem:[%s1097_s1 + $0x48] sm:$0xff] (!%p138_p2)   ;;  %vm399_vm3 = vsmask.f32 (!%p138_p2), 5376  ;;  %v607_v49 = vshrl.u32 (!%p138_p2), %v606_v48, 7 }
   0x8   : > { %887 = vmatpush3.bf16.msra.mxu1 (!%p138_p2), %v939_v1  ;;  %876 = vmatprep.subr.bf16.mxu0 (!%p138_p2), %v940_v2  ;;  %v945_v7 = vld [vmem:[%s1097_s1 + $0x18] sm:$0xff] (!%p138_p2)   ;;  %v950_v18 = vld [vmem:[%s1097_s1 + $0x60] sm:$0xff] (!%p138_p2)   ;;  %v952_v23 = vld [vmem:[%s1097_s1 + $0x68] sm:$0xff] (!%p138_p2)   ;;  %vm656_vm7 = vcmask (!%p138_p2), 1043456  }
   0x9   : > { %888 = vmatprep.subr.bf16.mxu1 (!%p138_p2), %v941_v3  ;;  %v953_v28 = vld [vmem:[%s1097_s1 + $0x50] sm:$0xff] (!%p138_p2)   ;;  %v955_v41 = vld [vmem:[%s1097_s1 + $0x58] sm:$0xff] (!%p138_p2)   ;;  %v609_v50 = vadd.s32 (!%p138_p2), 16, %v607_v49  ;;  %v608_v51 = vadd.s32 (!%p138_p2), 8, %v607_v49  ;;  %v1075_v56 = vmul.u32.u64.low (!%p138_p2), 3435973837, %v607_v49  ;;  %v1076_v57 = vmul.u32.u64.high 3435973837, %v607_v49, %v1075_v56 }
   0xa   : > { %v954_v29 = vld [vmem:[%s1097_s1 + $0x70] sm:$0xff] (!%p138_p2)   ;;  %v956_v42 = vld [vmem:[%s1097_s1 + $0x78] sm:$0xff] (!%p138_p2)  }
   0xb   : > { %877 = vmatpush3.bf16.msra.mxu0 (!%p138_p2), %v940_v2  ;;  %v1072_v52 = vmul.u32.u64.low (!%p138_p2), 3435973837, %v609_v50  ;;  %v1073_v53 = vmul.u32.u64.high 3435973837, %v609_v50, %v1072_v52  ;;  %v1078_v58 = vmul.u32.u64.low (!%p138_p2), 3435973837, %v608_v51  ;;  %v1079_v59 = vmul.u32.u64.high 3435973837, %v608_v51, %v1078_v58 }
   0xc   : > { %889 = vmatpush3.bf16.msra.mxu1 (!%p138_p2), %v941_v3  ;;  %878 = vmatprep.subr.bf16.mxu0 (!%p138_p2), %v942_v4 }
   0xd   : > { %s1101_s13 = smov (!%p161_p3, %s770_s13), 1  ;;  %890 = vmatprep.subr.bf16.mxu1 %v943_v5 }
   0xe   : > { %s841_s24 = sshll.u32 %s1101_s13, 4  ;;  %s922_s27 = smul.u32 12, %s1101_s13 }
   0xf   : > { %s1023_s29 = scalar_lea.vmem %s1096_s0, %s841_s24  ;;  %879 = vmatpush3.bf16.msra.mxu0 %v942_v4 }
  0x10   : > { %v946_v8 = vld [vmem:[%s1023_s29] sm:$0xff]   ;;  %v947_v9 = vld [vmem:[%s1023_s29 + $0x8] ss:$0 sps:$4 sm:$0x77]   ;;  %891 = vmatpush3.bf16.msra.mxu1 %v943_v5  ;;  %880 = vmatprep.subr.bf16.mxu0 %v944_v6  ;;  %v638_v5 = vshrl.u32 %v1073_v53, 2  ;;  %s170_s30 = scalar_lea.vmem %s1099_s3, %s922_s27 }
  0x11   : > { %v203_v11 = vshrl.u32 %v946_v8, 16  ;;  %v205_v12 = vshll.u32 %v946_v8, 16  ;;  %v210_v13 = vshll.u32 %v947_v9, 16  ;;  %v214_v14 = vshrl.u32 %v947_v9, 16  ;;  %894 = vmatprep.mubr.msk.bf16.mxu1 %vm241_vm0, %v946_v8  ;;  %892 = vmatprep.subr.bf16.mxu1 %v945_v7  ;;  %v376_v24 = vld [vmem:[%s1023_s29] sm:$0xc] }
  0x12   : > { %v948_v17 = vld [vmem:[%s1023_s29 + $0x8] ss:$0 sps:$4 sm:$0x33]   ;;  %v377_v25 = vld [vmem:[%s1023_s29 + $0x4] sm:$0xf]  ;;  %v639_v8 = vmul.u32 5, %v638_v5 }
  0x13   : > { %v207_v15 = vrot.slane %v205_v12, 1  ;;  %v212_v16 = vrot.slane %v210_v13, 1  ;;  %881 = vmatpush3.bf16.msra.mxu0 %v944_v6  ;;  %v809_v26 = vcombine.low %v376_v24, %v377_v25  ;;  %v958_v27 = vld [vmem:[%s1023_s29 + $0x8] sm:$0x1f]   ;;  %v498_v30 = vld [vmem:[%s1023_s29] sm:$0x8] }
  0x14   : > { %893 = vmatpush3.bf16.msra.mxu1 %v945_v7  ;;  %898 = vmatprep.subr.bf16.mxu0 %v949_v10  ;;  %v409_v33 = vshrl.u32 %v958_v27, 16  ;;  %v412_v34 = vshll.u32 %v958_v27, 16  ;;  %v825_v35 = vcombine.low %v498_v30, %v377_v25  ;;  %v513_v36 = vrot.slane %v958_v27, 3 }
  0x15   : > { %v208_v19 = vor.u32 %v207_v15, %v203_v11  ;;  %v216_v20 = vor.u32 %v214_v14, %v212_v16  ;;  %910 = vmatprep.subr.bf16.mxu1 %v950_v18  ;;  %v401_v31 = vshrl.u32 %v809_v26, 16  ;;  %v404_v32 = vshll.u32 %v809_v26, 16 }
  0x16   : > { %v411_v39 = vrot.slane %v409_v33, 2  ;;  %v414_v40 = vrot.slane %v412_v34, 3  ;;  %v512_v43 = vrot.slane %v825_v35, 3  ;;  %v616_v6 = vshrl.u32 %v1076_v57, 2 }
  0x17   : > { %v213_v22 = vsel %vm201_vm1, %v208_v19, %v212_v16  ;;  %895 = vmatmul.mubr.msk.bf16.vlgmr.msra.gmra.mrb[0].mxu1 %vm241_vm0, %v948_v17  ;;  %v403_v37 = vrot.slane %v401_v31, 2  ;;  %v406_v38 = vrot.slane %v404_v32, 3  ;;  %v627_v7 = vshrl.u32 %v1079_v59, 2  ;;  %v832_v19 = vld [vmem:[%s1098_s2] ss:$0 sm:$0xff] }
  0x18   : > { %882 = vmatprep.mubr.msk.bf16.mxu0 %vm241_vm0, %v213_v22  ;;  %911 = vmatpush3.bf16.msra.mxu1 %v950_v18  ;;  %v415_v45 = vor.u32 %v414_v40, %v411_v39  ;;  %v514_v46 = vsel %vm511_vm2, %v512_v43, %v513_v36  ;;  %v617_v9 = vmul.u32 5, %v616_v6  ;;  %v640_v11 = vsub.s32 %v609_v50, %v639_v8 }
  0x19   : > { %883 = vmatmul.mubr.msk.bf16.vlgmr.msra.gmra.mrb[0].mxu0 %vm241_vm0, %v216_v20  ;;  %912 = vmatprep.subr.bf16.mxu1 %v952_v23  ;;  %v407_v44 = vor.u32 %v406_v38, %v403_v37 }
  0x1a   : > { %899 = vmatpush3.bf16.msra.mxu0 %v949_v10  ;;  %918 = vmatprep.mubr.msk.bf16.mxu1 %vm241_vm0, %v514_v46  ;;  %v628_v10 = vmul.u32 5, %v627_v7  ;;  %v618_v14 = vsub.s32 %v607_v49, %v617_v9  ;;  %vm645_vm4 = vcmp.lt.s32.totalorder %v640_v11, 4 }
  0x1b   : > { %900 = vmatprep.subr.bf16.mxu0 %v951_v21  ;;  %v416_v47 = vsel %vm399_vm3, %v407_v44, %v415_v45 }
  0x1c   : > { %913 = vmatpush3.bf16.msra.mxu1 %v952_v23  ;;  %906 = vmatprep.mubr.msk.bf16.mxu0 %vm241_vm0, %v416_v47  ;;  %v629_v15 = vsub.s32 %v608_v51, %v628_v10  ;;  %vm643_vm5 = vcmp.lt.s32.totalorder %v618_v14, 4 }
  0x1d   : > { %914 = vmatprep.subr.bf16.mxu1 %v954_v29 }
  0x1e   : > { %901 = vmatpush3.bf16.msra.mxu0 %v951_v21  ;;  %vm644_vm6 = vcmp.lt.s32.totalorder %v629_v15, 4 }
  0x1f   : > { %902 = vmatprep.subr.bf16.mxu0 %v953_v28 }
  0x20   : > { %915 = vmatpush3.bf16.msra.mxu1 %v954_v29  ;;  %v970_v29 = vmov 0.0  }
  0x21   : > { %916 = vmatprep.subr.bf16.mxu1 %v956_v42  ;;  %v835_v30 = vsel %vm645_vm4, 1.0, %v970_v29  ;;  %v833_v33 = vsel %vm643_vm5, 1.0, %v970_v29  ;;  %v834_v34 = vsel %vm644_vm6, 1.0, %v970_v29 }
  0x22   : > { %903 = vmatpush3.bf16.msra.mxu0 %v953_v28 }
  0x23   : > { %904 = vmatprep.subr.bf16.mxu0 %v955_v41 }
  0x24   : > { %917 = vmatpush3.bf16.msra.mxu1 %v956_v42 }
  0x26   : > { %905 = vmatpush3.bf16.msra.mxu0 %v955_v41 }
  0x27   : > { %919 = vmatmul.mubr.msk.bf16.vlgmr.msra.gmra.mrb[4].mxu1 %vm241_vm0, %v513_v36 }
  0x29   : > { %907 = vmatmul.mubr.msk.bf16.vlgmr.msra.gmra.mrb[4].mxu0 %vm241_vm0, %v415_v45 }
  0xea   : > { %v896_v55 = vpop.f32.mrb[0].mxu1 }
  0xeb   : > { %v362_v62 = vpop.f32.mrb[1].mxu1 }
  0xec   : > { %v884_v54 = vpop.f32.mrb[0].mxu0  ;;  %v897_v1 = vpop.f32.mrb[2].mxu1 }
  0xed   : > { %v371_v60 = vadd.f32 %v896_v55, %v884_v54  ;;  %v282_v61 = vpop.f32.mrb[1].mxu0  ;;  %v365_v3 = vpop.f32.mrb[3].mxu1 }
  0xee   : > { %v363_v63 = vadd.f32 %v362_v62, %v282_v61  ;;  %v885_v0 = vpop.f32.mrb[2].mxu0 }
  0xef   : > { %v285_v2 = vpop.f32.mrb[3].mxu0 }
  0xf0   : > { %v366_v4 = vadd.f32 %v365_v3, %v285_v2 }
  0xfa   : > { %v920_v13 = vpop.f32.mrb[4].mxu1 }
  0xfb   : > { %v579_v18 = vpop.f32.mrb[5].mxu1 }
  0xfc   : > { %v908_v12 = vpop.f32.mrb[4].mxu0  ;;  %v921_v22 = vpop.f32.mrb[6].mxu1 }
  0xfd   : > { %v497_v16 = vadd.f32 %v908_v12, %v371_v60  ;;  %v481_v17 = vpop.f32.mrb[5].mxu0  ;;  %v582_v25 = vpop.f32.mrb[7].mxu1 }
  0xfe   : > { %v495_v20 = vadd.f32 %v481_v17, %v363_v63  ;;  %v909_v21 = vpop.f32.mrb[6].mxu0 }
  0xff   : > { %v595_v23 = vadd.f32 %v920_v13, %v497_v16  ;;  %v484_v24 = vpop.f32.mrb[7].mxu0 }
 0x100   : > { %v593_v26 = vadd.f32 %v579_v18, %v495_v20  ;;  %v496_v27 = vadd.f32 %v484_v24, %v366_v4 }
 0x101   : > { %v605_v28 = vadd.f32 %v832_v19, %v595_v23 }
 0x102   : > { %v603_v31 = vadd.f32 %v832_v19, %v593_v26  ;;  %v594_v32 = vadd.f32 %v582_v25, %v496_v27 }
 0x103   : > { %v654_v36 = vmul.f32 %v835_v30, %v605_v28 }
 0x104   : > { %v604_v35 = vadd.f32 %v832_v19, %v594_v32  ;;  %v652_v37 = vmul.f32 %v833_v33, %v603_v31 }
 0x105   : > { %v657_v40 = vsel %vm656_vm7, %v654_v36, 0.0 }
 0x106   : > { %v653_v38 = vmul.f32 %v834_v34, %v604_v35 }
 0x108   : > { %v655_v39 = vadd.f32 %v653_v38, %v652_v37 }
 0x10a   : > { %v658_v41 = vadd.f32 %v657_v40, %v655_v39 }
 0x10c   : > { %v659_v42 = vrot.slane %v658_v41, 4 }
 0x10e   : > { %v660_v43 = vadd.f32 %v659_v42, %v658_v41 }
 0x110   : > { %v661_v44 = vrot.slane %v660_v43, 2 }
 0x112   : > { %v662_v45 = vadd.f32 %v661_v44, %v660_v43 }
 0x114   : > { %v663_v46 = vrot.slane %v662_v45, 1 }
 0x116   : > { %v664_v47 = vadd.f32 %v663_v46, %v662_v45 }
 0x118   : > { %v665_v48 = vmul.f32 0.0625, %v664_v47 }
 0x11a   : > { %v666_v49 = vsub.f32 %v603_v31, %v665_v48  ;;  %v667_v50 = vsub.f32 %v604_v35, %v665_v48  ;;  %v668_v51 = vsub.f32 %v605_v28, %v665_v48 }
 0x11c   : > { %v669_v52 = vmul.f32 %v833_v33, %v666_v49  ;;  %v670_v53 = vmul.f32 %v834_v34, %v667_v50  ;;  %v671_v54 = vmul.f32 %v835_v30, %v668_v51 }
 0x11e   : > { %v672_v55 = vmul.f32 %v669_v52, %v669_v52  ;;  %v673_v56 = vmul.f32 %v670_v53, %v670_v53  ;;  %v674_v57 = vmul.f32 %v671_v54, %v671_v54 }
 0x120   : > { %v675_v58 = vadd.f32 %v673_v56, %v672_v55  ;;  %v676_v59 = vsel %vm656_vm7, %v674_v57, 0.0 }
 0x122   : > { %v677_v60 = vadd.f32 %v676_v59, %v675_v58 }
 0x124   : > { %v678_v61 = vrot.slane %v677_v60, 4 }
 0x126   : > { %v679_v62 = vadd.f32 %v678_v61, %v677_v60 }
 0x128   : > { %v680_v63 = vrot.slane %v679_v62, 2 }
 0x12a   : > { %v681_v0 = vadd.f32 %v680_v63, %v679_v62 }
 0x12c   : > { %v682_v1 = vrot.slane %v681_v0, 1 }
 0x12e   : > { %v683_v2 = vadd.f32 %v682_v1, %v681_v0 }
 0x130   : > { %v684_v3 = vmul.f32 0.0625, %v683_v2 }
 0x132   : > { %v685_v4 = vadd.f32 1e-05, %v684_v3 }
 0x134   : > { %960 = vrsqrt.f32 %v685_v4 }
 0x13e   : > { %v961_v5 = vpop.eup %960 }
 0x13f   : > { %v687_v6 = vmul.f32 %v961_v5, %v666_v49  ;;  %v688_v7 = vmul.f32 %v961_v5, %v667_v50  ;;  %v689_v8 = vmul.f32 %v961_v5, %v668_v51 }
 0x141   : > { %vm690_vm8 = vcmp.gt.f32.partialorder %v687_v6, 0.0  ;;  %vm691_vm9 = vcmp.gt.f32.partialorder %v688_v7, 0.0  ;;  %vm692_vm10 = vcmp.gt.f32.partialorder %v689_v8, 0.0  ;;  %v693_v9 = vmul.f32 0.2, %v687_v6 }
 0x142   : > { %v694_v10 = vmul.f32 0.2, %v688_v7  ;;  %v695_v11 = vmul.f32 0.2, %v689_v8 }
 0x143   : > { %v696_v12 = vsel %vm690_vm8, %v687_v6, %v693_v9 }
 0x144   : > { %v697_v13 = vsel %vm691_vm9, %v688_v7, %v694_v10  ;;  %v698_v14 = vsel %vm692_vm10, %v689_v8, %v695_v11 }
 0x145   : > { %v844_v15 = vpack.c.bf16 %v698_v14, %v698_v14  ;;  %v848_v16 = vpack.c.bf16 %v697_v13, %v696_v12 }
 0x147   : > { %849 = vst [vmem:[%s170_s30] sm:$0xff] %v848_v16   ;;  %714 = vst [vmem:[%s170_s30 + $0x8] sm:$0x3] %v844_v15 }
 0x148 PF: > { %s13_s12 = sadd.s32 1, %s968_s12  }
 0x149   : > { %p10_p4 = scmp.ge.s32.totalorder %s13_s12, 4  }
 0x14b   :  { %12 = sbr.rel (!%p10_p4) target bundleno = 1 (0x1), region = 65 }

// kernel: discriminator_forward.8
= control target key start
LH: loop header
LB: loop body
LE: loop exit
PB: predicated region body
PF: predicated region fallthrough
CT: control target
= control target key end

     0   :  { %s2246_s12 = smov 0   ;;  %s2509_s0 = inlined_call_operand.vmem [shape: bf16[2,42,32], index: 0, kind: input, shape index: {}]   ;;  %s2510_s1 = inlined_call_operand.vmem [shape: bf16[16,32,128], index: 1, kind: input, shape index: {}]   ;;  %s2511_s2 = inlined_call_operand.vmem [shape: f32[1,128], index: 2, kind: input, shape index: {}]   ;;  %s2512_s3 = inlined_call_operand.vmem [shape: bf16[2,18,128], index: 3, kind: output, shape index: {}]  }
   0x1 LB: > { %s1780_s13 = sadd.s32 4294967295, %s2223_s12   ;;  %p1784_p0 = scmp.ge.s32.totalorder %s2223_s12, 1  ;;  %s2223_s12 = sphi %s2246_s12, %s13_s12  }
   0x2   : > { %p137_p1 = scmp.lt.s32.totalorder %s2223_s12, 3 }
   0x4   : > { %p138_p2 = pnand %p1784_p0, %p137_p1 }
   0x5   : > { %v2160_v0 = vld [vmem:[%s2510_s1 + $0x10] sm:$0xff] (!%p138_p2)   ;;  %p161_p3 = scmp.lt.s32.totalorder (!%p138_p2), %s1780_s13, 1  ;;  %v2161_v1 = vld [vmem:[%s2510_s1] sm:$0xff] (!%p138_p2)   ;;  %v2162_v2 = vld [vmem:[%s2510_s1 + $0x18] sm:$0xff] (!%p138_p2)   ;;  %vm193_vm0 = vsmask.f32 (!%p138_p2), 7424 }
   0x6   : > { %141 = sbr.rel (%p138_p2) target bundleno = 371 (0x173), region = 32  ;;  %2015 = vmatprep.subr.bf16.mxu0 (!%p138_p2), %v2160_v0  ;;  %2023 = vmatprep.subr.bf16.mxu1 (!%p138_p2), %v2161_v1  ;;  %v2163_v3 = vld [vmem:[%s2510_s1 + $0x8] sm:$0xff] (!%p138_p2)   ;;  %v2168_v4 = vld [vmem:[%s2510_s1 + $0x20] sm:$0xff] (!%p138_p2)   ;;  %vm221_vm1 = vcmask (!%p138_p2), 261120   ;;  %v2169_v5 = vld [vmem:[%s2510_s1 + $0x30] sm:$0xff] (!%p138_p2)   ;;  %vm353_vm3 = vcmask (!%p138_p2), 1046528  }
   0x7   : > { %2016 = vmatpush3.bf16.msra.mxu0 (!%p138_p2), %v2160_v0  ;;  %2024 = vmatpush3.bf16.msra.mxu1 (!%p138_p2), %v2161_v1  ;;  %v2171_v13 = vld [vmem:[%s2510_s1 + $0x38] sm:$0xff] (!%p138_p2)   ;;  %vm435_vm2 = vsmask.f32 (!%p138_p2), 6400  ;;  %v2174_v31 = vld [vmem:[%s2510_s1 + $0x50] sm:$0xff] (!%p138_p2)   ;;  %v2170_v33 = vld [vmem:[%s2510_s1 + $0x28] sm:$0xff] (!%p138_p2)   ;;  %vm535_vm4 = vcmask (!%p138_p2), 1044480  }
   0x8   : > { %2017 = vmatprep.subr.bf16.mxu0 (!%p138_p2), %v2162_v2  ;;  %2025 = vmatprep.subr.bf16.mxu1 (!%p138_p2), %v2163_v3  ;;  %v2173_v38 = vld [vmem:[%s2510_s1 + $0x40] sm:$0xff] (!%p138_p2)   ;;  %v2176_v43 = vld [vmem:[%s2510_s1 + $0x58] sm:$0xff] (!%p138_p2)   ;;  %v2175_v54 = vld [vmem:[%s2510_s1 + $0x48] sm:$0xff] (!%p138_p2)   ;;  %vm627_vm5 = vsmask.f32 (!%p138_p2), 4352  ;;  %vm895_vm6 = vcmask (!%p138_p2), 1045504  }
   0x9   : > { %v2182_v1 = vld [vmem:[%s2510_s1 + $0x70] sm:$0xff] (!%p138_p2)   ;;  %vm977_vm7 = vsmask.f32 (!%p138_p2), 5376  ;;  %vm1666_vm11 = vcmask (!%p138_p2), 1041408  }
   0xb   : > { %2018 = vmatpush3.bf16.msra.mxu0 (!%p138_p2), %v2162_v2  ;;  %2026 = vmatpush3.bf16.msra.mxu1 (!%p138_p2), %v2163_v3 }
   0xc   : > { %2031 = vmatprep.subr.bf16.mxu0 (!%p138_p2), %v2168_v4  ;;  %2039 = vmatprep.subr.bf16.mxu1 (!%p138_p2), %v2169_v5 }
   0xd   : > { %s2514_s13 = smov (!%p161_p3, %s1780_s13), 1 }
   0xe   : > { %s2143_s22 = smul.u32 24, %s2514_s13 }
   0xf   : > { %s2144_s8 = smul.u32 12, %s2514_s13 }
  0x10   : > { %s2275_s27 = scalar_lea.vmem %s2509_s0, %s2143_s22 }
  0x11   : > { %v172_v6 = vld [vmem:[%s2275_s27] sm:$0xf]  ;;  %v2282_v7 = vld [vmem:[%s2275_s27 + $0x4] sm:$0xf]  ;;  %v2316_v41 = vld [vmem:[%s2275_s27 + $0x8] sm:$0xf]  ;;  %s170_s11 = scalar_lea.vmem %s2512_s3, %s2144_s8 }
  0x12   : > { %v344_v8 = vld [vmem:[%s2275_s27] sm:$0xe]  ;;  %v1791_v9 = vcombine.low %v172_v6, %v2282_v7  ;;  %v2288_v11 = vld [vmem:[%s2275_s27 + $0x8] ss:$0 sps:$4 sm:$0x33]  }
  0x13   : > { %v1806_v10 = vcombine.low %v344_v8, %v2282_v7  ;;  %v2167_v12 = vld [vmem:[%s2275_s27 + $0x8] ss:$0 sps:$4 sm:$0x11]   ;;  %v202_v16 = vshll.u32 %v2288_v11, 16  ;;  %v206_v17 = vshrl.u32 %v2288_v11, 16  ;;  %v355_v24 = vrot.slane %v2288_v11, 1 }
  0x14   : > { %2027 = vmatprep.mubr.msk.bf16.mxu1 %vm221_vm1, %v1791_v9  ;;  %v195_v14 = vshrl.u32 %v1791_v9, 16  ;;  %v197_v15 = vshll.u32 %v1791_v9, 16  ;;  %v2172_v20 = vld [vmem:[%s2275_s27 + $0x8] ss:$0 sps:$4 sm:$0x77]  }
  0x15   : > { %2028 = vmatmul.mubr.msk.bf16.vlgmr.msra.gmra.mrb[0].mxu1 %vm221_vm1, %v2167_v12  ;;  %v204_v19 = vrot.slane %v202_v16, 1  ;;  %v437_v21 = vshrl.u32 %v1806_v10, 16  ;;  %v440_v22 = vshll.u32 %v1806_v10, 16  ;;  %v354_v23 = vrot.slane %v1806_v10, 1  ;;  %v608_v39 = vld [vmem:[%s2275_s27] sm:$0x8] }
  0x16   : > { %v199_v18 = vrot.slane %v197_v15, 1  ;;  %2040 = vmatpush3.bf16.msra.mxu1 %v2169_v5  ;;  %v445_v28 = vshrl.u32 %v2172_v20, 16  ;;  %v448_v30 = vshll.u32 %v2172_v20, 16  ;;  %v609_v40 = vld [vmem:[%s2275_s27 + $0x4] sm:$0xf]  ;;  %v2184_v10 = vld [vmem:[%s2510_s1 + $0x78] sm:$0xff]  }
  0x17   : > { %2041 = vmatprep.subr.bf16.mxu1 %v2171_v13  ;;  %v208_v26 = vor.u32 %v206_v17, %v204_v19  ;;  %v439_v27 = vrot.slane %v437_v21, 1  ;;  %v442_v29 = vrot.slane %v440_v22, 2  ;;  %v356_v35 = vsel %vm353_vm3, %v354_v23, %v355_v24  ;;  %v2323_v44 = vld [vmem:[%s2275_s27 + $0xc] sm:$0x1]  ;;  %v522_v46 = vld [vmem:[%s2275_s27] sm:$0x8] }
  0x18   : > { %v200_v25 = vor.u32 %v199_v18, %v195_v14  ;;  %v447_v34 = vrot.slane %v445_v28, 1  ;;  %v450_v37 = vrot.slane %v448_v30, 2  ;;  %v1834_v45 = vcombine.low %v608_v39, %v609_v40  ;;  %v2180_v49 = vld [vmem:[%s2275_s27 + $0x8] ss:$0 sps:$4 sm:$0xff]   ;;  %v882_v14 = vld [vmem:[%s2275_s27 + $0x4] sm:$0xc] }
  0x19   : > { %v443_v36 = vor.u32 %v442_v29, %v439_v27  ;;  %v1835_v47 = vcombine.low %v2316_v41, %v2323_v44  ;;  %v1824_v48 = vcombine.low %v522_v46, %v2282_v7  ;;  %v1844_v53 = vcombine.low %v609_v40, %v2316_v41  ;;  %v2181_v7 = vld [vmem:[%s2510_s1 + $0x60] sm:$0xff]   ;;  %v2355_v15 = vld [vmem:[%s2275_s27 + $0xc] ss:$0 sps:$4 sm:$0xff]   ;;  %v2191_v27 = vld [vmem:[%s2510_s1 + $0x98] sm:$0xff]  }
  0x1a   : > { %v205_v32 = vsel %vm193_vm0, %v200_v25, %v204_v19  ;;  %2042 = vmatpush3.bf16.msra.mxu1 %v2171_v13  ;;  %v451_v42 = vor.u32 %v450_v37, %v447_v34  ;;  %v629_v51 = vshrl.u32 %v1834_v45, 16  ;;  %v632_v52 = vshll.u32 %v1834_v45, 16  ;;  %v2183_v16 = vld [vmem:[%s2510_s1 + $0x68] sm:$0xff]   ;;  %v2188_v19 = vld [vmem:[%s2510_s1 + $0x90] sm:$0xff]   ;;  %v1064_v45 = vld [vmem:[%s2275_s27 + $0x4] sm:$0x8] }
  0x1b   : > { %2019 = vmatprep.mubr.msk.bf16.mxu0 %vm221_vm1, %v205_v32  ;;  %2055 = vmatprep.subr.bf16.mxu1 %v2174_v31  ;;  %v637_v55 = vshrl.u32 %v1835_v47, 16  ;;  %v640_v56 = vshll.u32 %v1835_v47, 16  ;;  %v536_v57 = vrot.slane %v1824_v48, 3  ;;  %v537_v58 = vrot.slane %v2180_v49, 3  ;;  %v1148_v39 = vld [vmem:[%s2275_s27 + $0x10] sm:$0x1] }
  0x1c   : > { %2020 = vmatmul.mubr.msk.bf16.vlgmr.msra.gmra.mrb[0].mxu0 %vm221_vm1, %v208_v26  ;;  %v452_v50 = vsel %vm435_vm2, %v443_v36, %v451_v42  ;;  %v631_v59 = vrot.slane %v629_v51, 3  ;;  %v634_v60 = vrot.slane %v632_v52, 4  ;;  %v799_v2 = vshrl.u32 %v1844_v53, 16  ;;  %v2369_v22 = vld [vmem:[%s2275_s27 + $0xc] ss:$0 sps:$4 sm:$0x77]  }
  0x1d   : > { %2032 = vmatpush3.bf16.msra.mxu0 %v2168_v4  ;;  %2035 = vmatprep.mubr.msk.bf16.mxu0 %vm221_vm1, %v356_v35  ;;  %v639_v61 = vrot.slane %v637_v55, 3  ;;  %v642_v62 = vrot.slane %v640_v56, 4  ;;  %v538_v63 = vsel %vm535_vm4, %v536_v57, %v537_v58  ;;  %v2186_v4 = vld [vmem:[%s2275_s27 + $0xc] ss:$0 sps:$4 sm:$0x33]   ;;  %v801_v5 = vshll.u32 %v1844_v53, 16 }
  0x1e   : > { %2033 = vmatprep.subr.bf16.mxu0 %v2170_v33  ;;  %2043 = vmatprep.mubr.msk.bf16.mxu1 %vm221_vm1, %v452_v50  ;;  %v635_v0 = vor.u32 %v634_v60, %v631_v59  ;;  %v806_v9 = vshll.u32 %v2186_v4, 16  ;;  %v810_v13 = vshrl.u32 %v2186_v4, 16  ;;  %v1863_v18 = vcombine.low %v882_v14, %v2316_v41  ;;  %v2190_v36 = vld [vmem:[%s2510_s1 + $0x88] sm:$0xff]   ;;  %v2196_v46 = vld [vmem:[%s2510_s1 + $0xb0] sm:$0xff]   ;;  %v2195_v50 = vld [vmem:[%s2510_s1 + $0xa0] sm:$0xff]  }
  0x1f   : > { %2044 = vmatmul.mubr.msk.bf16.vlgmr.msra.gmra.mrb[4].mxu1 %vm221_vm1, %v451_v42  ;;  %v643_v3 = vor.u32 %v642_v62, %v639_v61  ;;  %v803_v8 = vrot.slane %v801_v5, 1  ;;  %v987_v20 = vshrl.u32 %v2355_v15, 16  ;;  %v990_v21 = vshll.u32 %v2355_v15, 16  ;;  %v2199_v40 = vld [vmem:[%s2275_s27 + $0x4] sm:$0xf8]  }
  0x20   : > { %2056 = vmatpush3.bf16.msra.mxu1 %v2174_v31  ;;  %v808_v12 = vrot.slane %v806_v9, 1  ;;  %v979_v25 = vshrl.u32 %v1863_v18, 16  ;;  %v982_v26 = vshll.u32 %v1863_v18, 16  ;;  %v896_v30 = vrot.slane %v1863_v18, 2  ;;  %v1250_v60 = vld [vmem:[%s2275_s27 + $0x8] sm:$0xe] }
  0x21   : > { %2034 = vmatpush3.bf16.msra.mxu0 %v2170_v33  ;;  %2057 = vmatprep.subr.bf16.mxu1 %v2176_v43  ;;  %v644_v6 = vsel %vm627_vm5, %v635_v0, %v643_v3  ;;  %v804_v11 = vor.u32 %v803_v8, %v799_v2  ;;  %v989_v28 = vrot.slane %v987_v20, 2  ;;  %v992_v29 = vrot.slane %v990_v21, 3  ;;  %v2197_v2 = vld [vmem:[%s2510_s1 + $0xa8] sm:$0xff]   ;;  %v2202_v9 = vld [vmem:[%s2510_s1 + $0xc0] sm:$0xff]  }
  0x22   : > { %2047 = vmatprep.subr.bf16.mxu0 %v2173_v38  ;;  %2059 = vmatprep.mubr.msk.bf16.mxu1 %vm221_vm1, %v644_v6  ;;  %v812_v23 = vor.u32 %v810_v13, %v808_v12  ;;  %v897_v31 = vrot.slane %v2369_v22, 2  ;;  %v981_v32 = vrot.slane %v979_v25, 2  ;;  %v984_v33 = vrot.slane %v982_v26, 3  ;;  %v1430_v18 = vld [vmem:[%s2275_s27 + $0x8] sm:$0xc] }
  0x23   : > { %v809_v17 = vsel %vm193_vm0, %v804_v11, %v808_v12  ;;  %v993_v34 = vor.u32 %v992_v29, %v989_v28  ;;  %v1845_v35 = vcombine.low %v2323_v44, %v2323_v44  ;;  %v1165_v47 = vshrl.u32 %v2199_v40, 16  ;;  %v2214_v22 = vld [vmem:[%s2275_s27 + $0x10] ss:$0 sps:$4 sm:$0xff]  }
  0x24   : > { %2036 = vmatmul.mubr.msk.bf16.vlgmr.msra.gmra.mrb[4].mxu0 %vm221_vm1, %v355_v24  ;;  %2058 = vmatpush3.bf16.msra.mxu1 %v2176_v43  ;;  %v2187_v24 = vld [vmem:[%s2510_s1 + $0x80] sm:$0xff]   ;;  %v985_v37 = vor.u32 %v984_v33, %v981_v32  ;;  %v898_v43 = vsel %vm895_vm6, %v896_v30, %v897_v31  ;;  %v1168_v48 = vshll.u32 %v2199_v40, 16  ;;  %v1882_v49 = vcombine.low %v1064_v45, %v2316_v41  ;;  %v2210_v30 = vld [vmem:[%s2510_s1 + $0xf0] sm:$0xff]  }
  0x25   : > { %2048 = vmatpush3.bf16.msra.mxu0 %v2173_v38  ;;  %2051 = vmatprep.mubr.msk.bf16.mxu0 %vm221_vm1, %v538_v63  ;;  %v2387_v38 = vld [vmem:[%s2275_s27 + $0xc] sm:$0xf]  ;;  %v1074_v56 = vrot.slane %v2355_v15, 3  ;;  %v2414_v63 = vld [vmem:[%s2275_s27 + $0x10] ss:$0 sps:$4 sm:$0x77]  }
  0x26   : > { %2049 = vmatprep.subr.bf16.mxu0 %v2175_v54  ;;  %2071 = vmatprep.subr.bf16.mxu1 %v2182_v1  ;;  %v994_v42 = vsel %vm977_vm7, %v985_v37, %v993_v34  ;;  %v1892_v44 = vcombine.low %v2387_v38, %v1148_v39  ;;  %v1073_v55 = vrot.slane %v1882_v49, 3  ;;  %v1901_v62 = vcombine.low %v1250_v60, %v2387_v38  ;;  %v2212_v15 = vld [vmem:[%s2510_s1 + $0xf8] sm:$0xff]  }
  0x27   : > { %2060 = vmatmul.mubr.msk.bf16.vlgmr.msra.gmra.mrb[8].mxu1 %vm221_vm1, %v643_v3  ;;  %v1353_v6 = vshrl.u32 %v2414_v63, 16  ;;  %v1356_v8 = vshll.u32 %v2414_v63, 16  ;;  %v1920_v21 = vcombine.low %v1430_v18, %v2387_v38  ;;  %v1529_v26 = vshrl.u32 %v2214_v22, 16 }
  0x28   : > { %2072 = vmatpush3.bf16.msra.mxu1 %v2182_v1  ;;  %2075 = vmatprep.mubr.msk.bf16.mxu1 %vm221_vm1, %v809_v17  ;;  %v1173_v51 = vshrl.u32 %v1892_v44, 16  ;;  %v1176_v52 = vshll.u32 %v1892_v44, 16  ;;  %v1075_v0 = vsel %vm535_vm4, %v1073_v55, %v1074_v56  ;;  %v2421_v1 = vld [vmem:[%s2275_s27 + $0x10] ss:$0 sps:$4 sm:$0x33]   ;;  %v1345_v4 = vshrl.u32 %v1901_v62, 16 }
  0x29   : > { %2050 = vmatpush3.bf16.msra.mxu0 %v2175_v54  ;;  %2073 = vmatprep.subr.bf16.mxu1 %v2184_v10  ;;  %v1170_v54 = vrot.slane %v1168_v48, 4  ;;  %v1348_v5 = vshll.u32 %v1901_v62, 16  ;;  %v1355_v12 = vrot.slane %v1353_v6, 1  ;;  %v1263_v13 = vrot.slane %v1901_v62, 1 }
  0x2a   : > { %2063 = vmatprep.subr.bf16.mxu0 %v2181_v7  ;;  %v1175_v41 = vrot.slane %v1173_v51, 3  ;;  %v1178_v57 = vrot.slane %v1176_v52, 4  ;;  %v1358_v14 = vrot.slane %v1356_v8, 2  ;;  %v1524_v25 = vshll.u32 %v1920_v21, 16 }
  0x2b   : > { %v1350_v11 = vrot.slane %v1348_v5, 2  ;;  %v1532_v29 = vshll.u32 %v2214_v22, 16  ;;  %v1531_v33 = vrot.slane %v1529_v26, 2  ;;  %v1439_v38 = vrot.slane %v1920_v21, 2 }
  0x2c   : > { %2052 = vmatmul.mubr.msk.bf16.vlgmr.msra.gmra.mrb[8].mxu0 %vm221_vm1, %v537_v58  ;;  %2074 = vmatpush3.bf16.msra.mxu1 %v2184_v10  ;;  %v2198_v58 = vld [vmem:[%s2510_s1 + $0xb8] sm:$0xff]   ;;  %v1179_v61 = vor.u32 %v1178_v57, %v1175_v41  ;;  %v1347_v10 = vrot.slane %v1345_v4, 1  ;;  %v1359_v20 = vor.u32 %v1358_v14, %v1355_v12  ;;  %v1526_v32 = vrot.slane %v1524_v25, 3 }
  0x2d   : > { %2064 = vmatpush3.bf16.msra.mxu0 %v2181_v7  ;;  %2067 = vmatprep.mubr.msk.bf16.mxu0 %vm221_vm1, %v1844_v53  ;;  %v1167_v53 = vrot.slane %v1165_v47, 3  ;;  %v2203_v7 = vld [vmem:[%s2510_s1 + $0xd0] sm:$0xff]   ;;  %v1440_v39 = vrot.slane %v2414_v63, 2 }
  0x2e   : > { %2065 = vmatprep.subr.bf16.mxu0 %v2183_v16  ;;  %2087 = vmatprep.subr.bf16.mxu1 %v2188_v19  ;;  %v1351_v17 = vor.u32 %v1350_v11, %v1347_v10 }
  0x2f   : > { %2076 = vmatmul.mubr.msk.bf16.vlgmr.msra.gmra.mrb[12].mxu1 %vm221_vm1, %v812_v23  ;;  %v1171_v59 = vor.u32 %v1170_v54, %v1167_v53 }
  0x30   : > { %2088 = vmatpush3.bf16.msra.mxu1 %v2188_v19  ;;  %2091 = vmatprep.mubr.msk.bf16.mxu1 %vm221_vm1, %v994_v42  ;;  %v2205_v19 = vld [vmem:[%s2510_s1 + $0xd8] sm:$0xff]   ;;  %v1360_v23 = vsel %vm435_vm2, %v1351_v17, %v1359_v20  ;;  %v2211_v42 = vld [vmem:[%s2510_s1 + $0xe8] sm:$0xff]  }
  0x31   : > { %2066 = vmatpush3.bf16.msra.mxu0 %v2183_v16  ;;  %2089 = vmatprep.subr.bf16.mxu1 %v2191_v27  ;;  %v1180_v3 = vsel %vm627_vm5, %v1171_v59, %v1179_v61  ;;  %v1264_v16 = vrot.slane %v2421_v1, 1 }
  0x32   : > { %2079 = vmatprep.subr.bf16.mxu0 %v2187_v24 }
  0x33   : > { %v1265_v28 = vsel %vm353_vm3, %v1263_v13, %v1264_v16 }
  0x34   : > { %2068 = vmatmul.mubr.msk.bf16.vlgmr.msra.gmra.mrb[12].mxu0 %vm221_vm1, %v1845_v35  ;;  %2090 = vmatpush3.bf16.msra.mxu1 %v2191_v27  ;;  %v2204_v27 = vld [vmem:[%s2510_s1 + $0xc8] sm:$0xff]  }
  0x35   : > { %2080 = vmatpush3.bf16.msra.mxu0 %v2187_v24  ;;  %2083 = vmatprep.mubr.msk.bf16.mxu0 %vm221_vm1, %v898_v43  ;;  %v1521_v24 = vshrl.u32 %v1920_v21, 16  ;;  %v1441_v43 = vsel %vm895_vm6, %v1439_v38, %v1440_v39 }
  0x36   : > { %2081 = vmatprep.subr.bf16.mxu0 %v2190_v36  ;;  %2103 = vmatprep.subr.bf16.mxu1 %v2196_v46 }
  0x37   : > { %2092 = vmatmul.mubr.msk.bf16.vlgmr.msra.gmra.mrb[16].mxu1 %vm221_vm1, %v993_v34  ;;  %v1534_v34 = vrot.slane %v1532_v29, 3 }
  0x38   : > { %2104 = vmatpush3.bf16.msra.mxu1 %v2196_v46  ;;  %2107 = vmatprep.mubr.msk.bf16.mxu1 %vm221_vm1, %v1180_v3 }
  0x39   : > { %2082 = vmatpush3.bf16.msra.mxu0 %v2190_v36  ;;  %2105 = vmatprep.subr.bf16.mxu1 %v2198_v58  ;;  %v2209_v36 = vld [vmem:[%s2510_s1 + $0xe0] sm:$0xff]   ;;  %v1535_v37 = vor.u32 %v1534_v34, %v1531_v33 }
  0x3a   : > { %2095 = vmatprep.subr.bf16.mxu0 %v2195_v50 }
  0x3c   : > { %2084 = vmatmul.mubr.msk.bf16.vlgmr.msra.gmra.mrb[16].mxu0 %vm221_vm1, %v897_v31  ;;  %2106 = vmatpush3.bf16.msra.mxu1 %v2198_v58  ;;  %v1523_v31 = vrot.slane %v1521_v24, 2 }
  0x3d   : > { %2096 = vmatpush3.bf16.msra.mxu0 %v2195_v50  ;;  %2099 = vmatprep.mubr.msk.bf16.mxu0 %vm221_vm1, %v1075_v0 }
  0x3e   : > { %2097 = vmatprep.subr.bf16.mxu0 %v2197_v2  ;;  %2119 = vmatprep.subr.bf16.mxu1 %v2203_v7  ;;  %v1527_v35 = vor.u32 %v1526_v32, %v1523_v31 }
  0x3f   : > { %2108 = vmatmul.mubr.msk.bf16.vlgmr.msra.gmra.mrb[20].mxu1 %vm221_vm1, %v1179_v61 }
  0x40   : > { %2120 = vmatpush3.bf16.msra.mxu1 %v2203_v7  ;;  %2123 = vmatprep.mubr.msk.bf16.mxu1 %vm221_vm1, %v1360_v23  ;;  %v1536_v40 = vsel %vm977_vm7, %v1527_v35, %v1535_v37 }
  0x41   : > { %2098 = vmatpush3.bf16.msra.mxu0 %v2197_v2  ;;  %2121 = vmatprep.subr.bf16.mxu1 %v2205_v19 }
  0x42   : > { %2111 = vmatprep.subr.bf16.mxu0 %v2202_v9 }
  0x44   : > { %2100 = vmatmul.mubr.msk.bf16.vlgmr.msra.gmra.mrb[20].mxu0 %vm221_vm1, %v1074_v56  ;;  %2122 = vmatpush3.bf16.msra.mxu1 %v2205_v19 }
  0x45   : > { %2112 = vmatpush3.bf16.msra.mxu0 %v2202_v9  ;;  %2115 = vmatprep.mubr.msk.bf16.mxu0 %vm221_vm1, %v1265_v28 }
  0x46   : > { %2113 = vmatprep.subr.bf16.mxu0 %v2204_v27  ;;  %2135 = vmatprep.subr.bf16.mxu1 %v2210_v30 }
  0x47   : > { %2124 = vmatmul.mubr.msk.bf16.vlgmr.msra.gmra.mrb[24].mxu1 %vm221_vm1, %v1359_v20 }
  0x48   : > { %2136 = vmatpush3.bf16.msra.mxu1 %v2210_v30  ;;  %2139 = vmatprep.mubr.msk.bf16.mxu1 %vm221_vm1, %v1536_v40  ;;  %v1616_v30 = vlaneseq }
  0x49   : > { %2114 = vmatpush3.bf16.msra.mxu0 %v2204_v27  ;;  %2137 = vmatprep.subr.bf16.mxu1 %v2212_v15 }
  0x4a   : > { %2127 = vmatprep.subr.bf16.mxu0 %v2209_v36 }
  0x4c   : > { %2116 = vmatmul.mubr.msk.bf16.vlgmr.msra.gmra.mrb[24].mxu0 %vm221_vm1, %v1264_v16  ;;  %2138 = vmatpush3.bf16.msra.mxu1 %v2212_v15 }
  0x4d   : > { %2128 = vmatpush3.bf16.msra.mxu0 %v2209_v36  ;;  %2131 = vmatprep.mubr.msk.bf16.mxu0 %vm221_vm1, %v1441_v43 }
  0x4e   : > { %2129 = vmatprep.subr.bf16.mxu0 %v2211_v42 }
  0x4f   : > { %2140 = vmatmul.mubr.msk.bf16.vlgmr.msra.gmra.mrb[28].mxu1 %vm221_vm1, %v1535_v37  ;;  %v2479_v37 = vshrl.u32 %v1616_v30, 7 }
  0x51   : > { %2130 = vmatpush3.bf16.msra.mxu0 %v2211_v42 }
  0x54   : > { %2132 = vmatmul.mubr.msk.bf16.vlgmr.msra.gmra.mrb[28].mxu0 %vm221_vm1, %v1440_v39 }
  0xe8   : > { %v2029_v44 = vpop.f32.mrb[0].mxu1 }
  0xe9   : > { %v330_v45 = vpop.f32.mrb[1].mxu1 }
  0xea   : > { %v2030_v46 = vpop.f32.mrb[2].mxu1 }
  0xeb   : > { %v333_v47 = vpop.f32.mrb[3].mxu1  ;;  %v1619_v46 = vadd.s32 16, %v2479_v37 }
  0xef   : > { %v2021_v48 = vpop.f32.mrb[0].mxu0 }
  0xf0   : > { %v339_v49 = vadd.f32 %v2029_v44, %v2021_v48  ;;  %v262_v50 = vpop.f32.mrb[1].mxu0 }
  0xf1   : > { %v331_v51 = vadd.f32 %v330_v45, %v262_v50  ;;  %v2022_v52 = vpop.f32.mrb[2].mxu0 }
  0xf2   : > { %v265_v53 = vpop.f32.mrb[3].mxu0  ;;  %v2045_v55 = vpop.f32.mrb[4].mxu1 }
  0xf3   : > { %v334_v54 = vadd.f32 %v333_v47, %v265_v53  ;;  %v505_v56 = vpop.f32.mrb[5].mxu1 }
  0xf4   : > { %v2046_v41 = vpop.f32.mrb[6].mxu1 }
  0xf5   : > { %v508_v58 = vpop.f32.mrb[7].mxu1 }
  0xf7   : > { %v2037_v57 = vpop.f32.mrb[4].mxu0 }
  0xf8   : > { %v425_v59 = vadd.f32 %v2037_v57, %v339_v49  ;;  %v409_v60 = vpop.f32.mrb[5].mxu0  ;;  %v1618_v49 = vadd.s32 8, %v2479_v37 }
  0xf9   : > { %v423_v61 = vadd.f32 %v409_v60, %v331_v51  ;;  %v2038_v62 = vpop.f32.mrb[6].mxu0 }
  0xfa   : > { %v412_v63 = vpop.f32.mrb[7].mxu0  ;;  %v521_v0 = vadd.f32 %v2045_v55, %v425_v59  ;;  %v2061_v3 = vpop.f32.mrb[8].mxu1  ;;  %v2490_v59 = vmul.u32.u64.low 2863311531, %v1618_v49  ;;  %v2491_v60 = vmul.u32.u64.high 2863311531, %v1618_v49, %v2490_v59 }
  0xfb   : > { %v424_v1 = vadd.f32 %v412_v63, %v334_v54  ;;  %v519_v2 = vadd.f32 %v505_v56, %v423_v61  ;;  %v697_v4 = vpop.f32.mrb[9].mxu1  ;;  %v2483_v54 = vmul.u32.u64.low 2863311531, %v1619_v46  ;;  %v2484_v55 = vmul.u32.u64.high 2863311531, %v1619_v46, %v2483_v54 }
  0xfc   : > { %v2062_v6 = vpop.f32.mrb[10].mxu1 }
  0xfd   : > { %v520_v5 = vadd.f32 %v508_v58, %v424_v1  ;;  %v700_v8 = vpop.f32.mrb[11].mxu1  ;;  %v2487_v57 = vmul.u32.u64.low 2863311531, %v2479_v37  ;;  %v2488_v58 = vmul.u32.u64.high 2863311531, %v2479_v37, %v2487_v57 }
  0xff   : > { %v2053_v7 = vpop.f32.mrb[8].mxu0 }
 0x100   : > { %v607_v9 = vadd.f32 %v2053_v7, %v521_v0  ;;  %v591_v10 = vpop.f32.mrb[9].mxu0 }
 0x101   : > { %v605_v11 = vadd.f32 %v591_v10, %v519_v2  ;;  %v2054_v12 = vpop.f32.mrb[10].mxu0 }
 0x102   : > { %v594_v13 = vpop.f32.mrb[11].mxu0  ;;  %v713_v14 = vadd.f32 %v2061_v3, %v607_v9  ;;  %v2077_v18 = vpop.f32.mrb[12].mxu1  ;;  %v1648_v9 = vshrl.u32 %v2484_v55, 2  ;;  %v1626_v12 = vshrl.u32 %v2488_v58, 2 }
 0x103   : > { %v606_v16 = vadd.f32 %v594_v13, %v520_v5  ;;  %v711_v17 = vadd.f32 %v697_v4, %v605_v11  ;;  %v865_v19 = vpop.f32.mrb[13].mxu1  ;;  %v1637_v13 = vshrl.u32 %v2491_v60, 2 }
 0x104   : > { %v2078_v21 = vpop.f32.mrb[14].mxu1 }
 0x105   : > { %v712_v20 = vadd.f32 %v700_v8, %v606_v16  ;;  %v868_v23 = vpop.f32.mrb[15].mxu1  ;;  %v1649_v21 = vmul.u32 6, %v1648_v9 }
 0x107   : > { %v2069_v22 = vpop.f32.mrb[12].mxu0 }
 0x108   : > { %v789_v24 = vadd.f32 %v2069_v22, %v713_v14  ;;  %v773_v25 = vpop.f32.mrb[13].mxu0 }
 0x109   : > { %v787_v26 = vadd.f32 %v773_v25, %v711_v17  ;;  %v2070_v27 = vpop.f32.mrb[14].mxu0  ;;  %v1638_v25 = vmul.u32 6, %v1637_v13 }
 0x10a   : > { %v776_v28 = vpop.f32.mrb[15].mxu0  ;;  %v881_v29 = vadd.f32 %v2077_v18, %v789_v24  ;;  %v2093_v33 = vpop.f32.mrb[16].mxu1  ;;  %v1627_v24 = vmul.u32 6, %v1626_v12 }
 0x10b   : > { %v788_v31 = vadd.f32 %v776_v28, %v712_v20  ;;  %v879_v32 = vadd.f32 %v865_v19, %v787_v26  ;;  %v1047_v34 = vpop.f32.mrb[17].mxu1 }
 0x10c   : > { %v2094_v36 = vpop.f32.mrb[18].mxu1 }
 0x10d   : > { %v880_v35 = vadd.f32 %v868_v23, %v788_v31  ;;  %v1050_v39 = vpop.f32.mrb[19].mxu1 }
 0x10f   : > { %v2085_v38 = vpop.f32.mrb[16].mxu0 }
 0x110   : > { %v967_v15 = vadd.f32 %v2085_v38, %v881_v29  ;;  %v951_v40 = vpop.f32.mrb[17].mxu0  ;;  %v1650_v29 = vsub.s32 %v1619_v46, %v1649_v21  ;;  %v1934_v38 = vld [vmem:[%s2511_s2] ss:$0 sm:$0xff]  ;;  %v2225_v46 = vmov 0.0  }
 0x111   : > { %v965_v42 = vadd.f32 %v951_v40, %v879_v32  ;;  %v2086_v43 = vpop.f32.mrb[18].mxu0  ;;  %v1628_v32 = vsub.s32 %v2479_v37, %v1627_v24 }
 0x112   : > { %v954_v44 = vpop.f32.mrb[19].mxu0  ;;  %v1063_v45 = vadd.f32 %v2093_v33, %v967_v15  ;;  %v2109_v50 = vpop.f32.mrb[20].mxu1  ;;  %vm1655_vm8 = vcmp.lt.s32.totalorder %v1650_v29, 3 }
 0x113   : > { %v966_v47 = vadd.f32 %v954_v44, %v880_v35  ;;  %v1061_v48 = vadd.f32 %v1047_v34, %v965_v42  ;;  %v1233_v51 = vpop.f32.mrb[21].mxu1  ;;  %v1639_v34 = vsub.s32 %v1618_v49, %v1638_v25  ;;  %vm1653_vm9 = vcmp.lt.s32.totalorder %v1628_v32, 3 }
 0x114   : > { %v2110_v53 = vpop.f32.mrb[22].mxu1  ;;  %v1937_v37 = vsel %vm1655_vm8, 1.0, %v2225_v46  ;;  %v1935_v49 = vsel %vm1653_vm9, 1.0, %v2225_v46 }
 0x115   : > { %v1062_v52 = vadd.f32 %v1050_v39, %v966_v47  ;;  %v1236_v41 = vpop.f32.mrb[23].mxu1  ;;  %vm1654_vm10 = vcmp.lt.s32.totalorder %v1639_v34, 3 }
 0x117   : > { %v2101_v56 = vpop.f32.mrb[20].mxu0 }
 0x118   : > { %v1144_v61 = vadd.f32 %v2101_v56, %v1063_v45  ;;  %v1128_v62 = vpop.f32.mrb[21].mxu0 }
 0x119   : > { %v1142_v63 = vadd.f32 %v1128_v62, %v1061_v48  ;;  %v2102_v0 = vpop.f32.mrb[22].mxu0 }
 0x11a   : > { %v1131_v1 = vpop.f32.mrb[23].mxu0  ;;  %v1249_v2 = vadd.f32 %v2109_v50, %v1144_v61  ;;  %v2125_v5 = vpop.f32.mrb[24].mxu1  ;;  %v1936_v50 = vsel %vm1654_vm10, 1.0, %v2225_v46 }
 0x11b   : > { %v1143_v3 = vadd.f32 %v1131_v1, %v1062_v52  ;;  %v1247_v4 = vadd.f32 %v1233_v51, %v1142_v63  ;;  %v1413_v6 = vpop.f32.mrb[25].mxu1 }
 0x11c   : > { %v2126_v8 = vpop.f32.mrb[26].mxu1 }
 0x11d   : > { %v1248_v7 = vadd.f32 %v1236_v41, %v1143_v3  ;;  %v1416_v11 = vpop.f32.mrb[27].mxu1 }
 0x11f   : > { %v2117_v10 = vpop.f32.mrb[24].mxu0 }
 0x120   : > { %v1334_v14 = vadd.f32 %v2117_v10, %v1249_v2  ;;  %v1318_v16 = vpop.f32.mrb[25].mxu0 }
 0x121   : > { %v1332_v17 = vadd.f32 %v1318_v16, %v1247_v4  ;;  %v2118_v18 = vpop.f32.mrb[26].mxu0 }
 0x122   : > { %v1321_v19 = vpop.f32.mrb[27].mxu0  ;;  %v1429_v20 = vadd.f32 %v2125_v5, %v1334_v14  ;;  %v2141_v26 = vpop.f32.mrb[28].mxu1 }
 0x123   : > { %v1333_v22 = vadd.f32 %v1321_v19, %v1248_v7  ;;  %v1427_v23 = vadd.f32 %v1413_v6, %v1332_v17  ;;  %v1589_v27 = vpop.f32.mrb[29].mxu1 }
 0x124   : > { %v2142_v30 = vpop.f32.mrb[30].mxu1 }
 0x125   : > { %v1428_v28 = vadd.f32 %v1416_v11, %v1333_v22  ;;  %v1592_v33 = vpop.f32.mrb[31].mxu1 }
 0x127   : > { %v2133_v31 = vpop.f32.mrb[28].mxu0 }
 0x128   : > { %v1510_v35 = vadd.f32 %v2133_v31, %v1429_v20  ;;  %v1494_v36 = vpop.f32.mrb[29].mxu0 }
 0x129   : > { %v1508_v39 = vadd.f32 %v1494_v36, %v1427_v23  ;;  %v2134_v15 = vpop.f32.mrb[30].mxu0 }
 0x12a   : > { %v1605_v40 = vadd.f32 %v2141_v26, %v1510_v35  ;;  %v1497_v42 = vpop.f32.mrb[31].mxu0 }
 0x12b   : > { %v1603_v43 = vadd.f32 %v1589_v27, %v1508_v39  ;;  %v1509_v44 = vadd.f32 %v1497_v42, %v1428_v28 }
 0x12c   : > { %v1615_v45 = vadd.f32 %v1934_v38, %v1605_v40 }
 0x12d   : > { %v1613_v47 = vadd.f32 %v1934_v38, %v1603_v43  ;;  %v1604_v48 = vadd.f32 %v1592_v33, %v1509_v44 }
 0x12e   : > { %v1664_v52 = vmul.f32 %v1937_v37, %v1615_v45 }
 0x12f   : > { %v1614_v51 = vadd.f32 %v1934_v38, %v1604_v48  ;;  %v1662_v53 = vmul.f32 %v1935_v49, %v1613_v47 }
 0x130   : > { %v1667_v56 = vsel %vm1666_vm11, %v1664_v52, 0.0 }
 0x131   : > { %v1663_v54 = vmul.f32 %v1936_v50, %v1614_v51 }
 0x133   : > { %v1665_v55 = vadd.f32 %v1663_v54, %v1662_v53 }
 0x135   : > { %v1668_v41 = vadd.f32 %v1667_v56, %v1665_v55 }
 0x137   : > { %v1669_v57 = vrot.slane %v1668_v41, 4 }
 0x139   : > { %v1670_v58 = vadd.f32 %v1669_v57, %v1668_v41 }
 0x13b   : > { %v1671_v59 = vrot.slane %v1670_v58, 2 }
 0x13d   : > { %v1672_v60 = vadd.f32 %v1671_v59, %v1670_v58 }
 0x13f   : > { %v1673_v61 = vrot.slane %v1672_v60, 1 }
 0x141   : > { %v1674_v62 = vadd.f32 %v1673_v61, %v1672_v60 }
 0x143   : > { %v1675_v63 = vmul.f32 0.11111111, %v1674_v62 }
 0x145   : > { %v1676_v0 = vsub.f32 %v1613_v47, %v1675_v63  ;;  %v1677_v1 = vsub.f32 %v1614_v51, %v1675_v63  ;;  %v1678_v2 = vsub.f32 %v1615_v45, %v1675_v63 }
 0x147   : > { %v1679_v3 = vmul.f32 %v1935_v49, %v1676_v0  ;;  %v1680_v4 = vmul.f32 %v1936_v50, %v1677_v1  ;;  %v1681_v5 = vmul.f32 %v1937_v37, %v1678_v2 }
 0x149   : > { %v1682_v6 = vmul.f32 %v1679_v3, %v1679_v3  ;;  %v1683_v7 = vmul.f32 %v1680_v4, %v1680_v4  ;;  %v1684_v8 = vmul.f32 %v1681_v5, %v1681_v5 }
 0x14b   : > { %v1685_v9 = vadd.f32 %v1683_v7, %v1682_v6  ;;  %v1686_v10 = vsel %vm1666_vm11, %v1684_v8, 0.0 }
 0x14d   : > { %v1687_v11 = vadd.f32 %v1686_v10, %v1685_v9 }
 0x14f   : > { %v1688_v12 = vrot.slane %v1687_v11, 4 }
 0x151   : > { %v1689_v13 = vadd.f32 %v1688_v12, %v1687_v11 }
 0x153   : > { %v1690_v14 = vrot.slane %v1689_v13, 2 }
 0x155   : > { %v1691_v16 = vadd.f32 %v1690_v14, %v1689_v13 }
 0x157   : > { %v1692_v17 = vrot.slane %v1691_v16, 1 }
 0x159   : > { %v1693_v18 = vadd.f32 %v1692_v17, %v1691_v16 }
 0x15b   : > { %v1694_v19 = vmul.f32 0.11111111, %v1693_v18 }
 0x15d   : > { %v1695_v20 = vadd.f32 1e-05, %v1694_v19 }
 0x15f   : > { %2215 = vrsqrt.f32 %v1695_v20 }
 0x169   : > { %v2216_v21 = vpop.eup %2215 }
 0x16a   : > { %v1697_v22 = vmul.f32 %v2216_v21, %v1676_v0  ;;  %v1698_v23 = vmul.f32 %v2216_v21, %v1677_v1  ;;  %v1699_v24 = vmul.f32 %v2216_v21, %v1678_v2 }
 0x16c   : > { %vm1700_vm12 = vcmp.gt.f32.partialorder %v1697_v22, 0.0  ;;  %vm1701_vm13 = vcmp.gt.f32.partialorder %v1698_v23, 0.0  ;;  %vm1702_vm14 = vcmp.gt.f32.partialorder %v1699_v24, 0.0  ;;  %v1703_v25 = vmul.f32 0.2, %v1697_v22 }
 0x16d   : > { %v1704_v26 = vmul.f32 0.2, %v1698_v23  ;;  %v1705_v27 = vmul.f32 0.2, %v1699_v24 }
 0x16e   : > { %v1706_v28 = vsel %vm1700_vm12, %v1697_v22, %v1703_v25 }
 0x16f   : > { %v1707_v29 = vsel %vm1701_vm13, %v1698_v23, %v1704_v26  ;;  %v1708_v30 = vsel %vm1702_vm14, %v1699_v24, %v1705_v27 }
 0x170   : > { %v1945_v31 = vpack.c.bf16 %v1708_v30, %v1708_v30  ;;  %v1949_v32 = vpack.c.bf16 %v1707_v29, %v1706_v28 }
 0x172   : > { %1950 = vst [vmem:[%s170_s11] sm:$0xff] %v1949_v32   ;;  %1724 = vst [vmem:[%s170_s11 + $0x8] sm:$0x1] %v1945_v31 }
 0x173 PF: > { %s13_s12 = sadd.s32 1, %s2223_s12  }
 0x174   : > { %p10_p4 = scmp.ge.s32.totalorder %s13_s12, 4  }
 0x176   :  { %12 = sbr.rel (!%p10_p4) target bundleno = 1 (0x1), region = 77 }

// kernel: discriminator_forward.9
= control target key start
LH: loop header
LB: loop body
LE: loop exit
PB: predicated region body
PF: predicated region fallthrough
CT: control target
= control target key end

     0   :  { %s2283_s12 = smov 0   ;;  %s2643_s0 = inlined_call_operand.vmem [shape: bf16[2,30,64], index: 0, kind: input, shape index: {}]   ;;  %s2644_s1 = inlined_call_operand.vmem [shape: bf16[16,64,128], index: 1, kind: input, shape index: {}]   ;;  %s2645_s2 = inlined_call_operand.vmem [shape: f32[1,128], index: 2, kind: input, shape index: {}]   ;;  %s2646_s3 = inlined_call_operand.vmem [shape: f32[2,10,128], index: 3, kind: output, shape index: {}]  }
   0x1 LB: > { %s1657_s13 = sadd.s32 4294967295, %s2259_s12   ;;  %p1661_p0 = scmp.ge.s32.totalorder %s2259_s12, 1  ;;  %s2259_s12 = sphi %s2283_s12, %s13_s12  }
   0x2   : > { %p137_p1 = scmp.lt.s32.totalorder %s2259_s12, 3 }
   0x4   : > { %p138_p2 = pnand %p1661_p0, %p137_p1 }
   0x5   : > { %v2171_v0 = vld [vmem:[%s2644_s1 + $0x20] sm:$0xff] (!%p138_p2)   ;;  %v2261_v1 = vmov (!%p138_p2), 0.0   ;;  %v2173_v3 = vld [vmem:[%s2644_s1 + $0x28] sm:$0xff] (!%p138_p2)   ;;  %vm2262_vm0 = vmmov (!%p138_p2), 0   ;;  %p161_p3 = scmp.lt.s32.totalorder (!%p138_p2), %s1657_s13, 1  ;;  %v2175_v5 = vld [vmem:[%s2644_s1 + $0x30] sm:$0xff] (!%p138_p2)  }
   0x6   : > { %141 = sbr.rel (%p138_p2) target bundleno = 358 (0x166), region = 32  ;;  %1969 = vmatprep.subr.bf16.mxu0 (!%p138_p2), %v2261_v1  ;;  %1981 = vmatprep.subr.bf16.mxu1 (!%p138_p2), %v2261_v1  ;;  %v2172_v2 = vld [vmem:[%s2644_s1] sm:$0xff] (!%p138_p2)   ;;  %v2174_v4 = vld [vmem:[%s2644_s1 + $0x8] sm:$0xff] (!%p138_p2)   ;;  %v2176_v6 = vld [vmem:[%s2644_s1 + $0x10] sm:$0xff] (!%p138_p2)   ;;  %vm228_vm1 = vcmask (!%p138_p2), 523264  }
   0x7   : > { %1970 = vmatpush3.bf16.msra.mxu0 (!%p138_p2), %v2171_v0  ;;  %1977 = vmatprep.mubr.msk.bf16.mxu0 (!%p138_p2), %vm2262_vm0, %v2261_v1  ;;  %v2177_v7 = vld [vmem:[%s2644_s1 + $0x38] sm:$0xff] (!%p138_p2)   ;;  %v2181_v17 = vld [vmem:[%s2644_s1 + $0x40] sm:$0xff] (!%p138_p2)   ;;  %v2183_v22 = vld [vmem:[%s2644_s1 + $0x48] sm:$0xff] (!%p138_p2)   ;;  %vm717_vm2 = vsmask.f32 (!%p138_p2), 4352 }
   0x8   : > { %1982 = vmatpush3.bf16.msra.mxu1 (!%p138_p2), %v2172_v2  ;;  %1971 = vmatprep.subr.bf16.mxu0 (!%p138_p2), %v2261_v1  ;;  %v2178_v10 = vld [vmem:[%s2644_s1 + $0x18] sm:$0xff] (!%p138_p2)   ;;  %v2182_v19 = vld [vmem:[%s2644_s1 + $0x60] sm:$0xff] (!%p138_p2)   ;;  %v2184_v24 = vld [vmem:[%s2644_s1 + $0x68] sm:$0xff] (!%p138_p2)  }
   0x9   : > { %1983 = vmatprep.subr.bf16.mxu1 (!%p138_p2), %v2261_v1  ;;  %1989 = vmatprep.mubr.msk.bf16.mxu1 (!%p138_p2), %vm2262_vm0, %v2261_v1  ;;  %v2185_v25 = vld [vmem:[%s2644_s1 + $0x50] sm:$0xff] (!%p138_p2)   ;;  %v2187_v30 = vld [vmem:[%s2644_s1 + $0x58] sm:$0xff] (!%p138_p2)   ;;  %v2191_v35 = vld [vmem:[%s2644_s1 + $0x80] sm:$0xff] (!%p138_p2)  }
   0xa   : > { %v2186_v26 = vld [vmem:[%s2644_s1 + $0x70] sm:$0xff] (!%p138_p2)   ;;  %v2188_v33 = vld [vmem:[%s2644_s1 + $0x78] sm:$0xff] (!%p138_p2)   ;;  %v2192_v39 = vld [vmem:[%s2644_s1 + $0xa0] sm:$0xff] (!%p138_p2)  }
   0xb   : > { %1972 = vmatpush3.bf16.msra.mxu0 (!%p138_p2), %v2173_v3  ;;  %v2193_v41 = vld [vmem:[%s2644_s1 + $0x88] sm:$0xff] (!%p138_p2)   ;;  %v2195_v45 = vld [vmem:[%s2644_s1 + $0x90] sm:$0xff] (!%p138_p2)   ;;  %v2197_v48 = vld [vmem:[%s2644_s1 + $0x98] sm:$0xff] (!%p138_p2)  }
   0xc   : > { %1984 = vmatpush3.bf16.msra.mxu1 (!%p138_p2), %v2174_v4  ;;  %1973 = vmatprep.subr.bf16.mxu0 (!%p138_p2), %v2261_v1  ;;  %v2194_v42 = vld [vmem:[%s2644_s1 + $0xa8] sm:$0xff] (!%p138_p2)   ;;  %v2196_v46 = vld [vmem:[%s2644_s1 + $0xb0] sm:$0xff] (!%p138_p2)   ;;  %v2198_v49 = vld [vmem:[%s2644_s1 + $0xb8] sm:$0xff] (!%p138_p2)  }
   0xd   : > { %s2648_s13 = smov (!%p161_p3, %s1657_s13), 1  ;;  %1985 = vmatprep.subr.bf16.mxu1 %v2261_v1  ;;  %v2201_v57 = vld [vmem:[%s2644_s1 + $0xc0] sm:$0xff]   ;;  %v2203_v61 = vld [vmem:[%s2644_s1 + $0xc8] sm:$0xff]   ;;  %v2205_v3 = vld [vmem:[%s2644_s1 + $0xd0] sm:$0xff]  }
   0xe   : > { %s1887_s24 = sshll.u32 %s2648_s13, 4  ;;  %v2202_v60 = vld [vmem:[%s2644_s1 + $0xe0] sm:$0xff]   ;;  %v2204_v2 = vld [vmem:[%s2644_s1 + $0xe8] sm:$0xff]  }
   0xf   : > { %s2326_s29 = scalar_lea.vmem %s2643_s0, %s1887_s24  ;;  %1974 = vmatpush3.bf16.msra.mxu0 %v2175_v5  ;;  %s170_s7 = scalar_lea.vmem %s2646_s3, %s1887_s24 }
  0x10   : > { %v172_v8 = vld [vmem:[%s2326_s29] sm:$0xf]  ;;  %v182_v9 = vld [vmem:[%s2326_s29 + $0x4] sm:$0x3]  ;;  %1986 = vmatpush3.bf16.msra.mxu1 %v2176_v6  ;;  %1975 = vmatprep.subr.bf16.mxu0 %v2261_v1  ;;  %v699_v58 = vld [vmem:[%s2326_s29 + $0x8] sm:$0x1] }
  0x11   : > { %v1674_v11 = vcombine.low %v172_v8, %v182_v9  ;;  %v173_v12 = vld [vmem:[%s2326_s29 + $0x4] sm:$0x1]  ;;  %1987 = vmatprep.subr.bf16.mxu1 %v2261_v1  ;;  %v344_v20 = vld [vmem:[%s2326_s29] sm:$0xe]  ;;  %v1751_v62 = vcombine.low %v699_v58, %v699_v58 }
  0x12   : > { %v1680_v16 = vcombine.low %v172_v8, %v173_v12  ;;  %v428_v21 = vld [vmem:[%s2326_s29 + $0x4] sm:$0x7]  ;;  %v1694_v29 = vcombine.low %v344_v20, %v182_v9  ;;  %v519_v36 = vld [vmem:[%s2326_s29] sm:$0xc]  ;;  %v2207_v8 = vld [vmem:[%s2644_s1 + $0xd8] sm:$0xff]  }
  0x13   : > { %v198_v13 = vshrl.u32 %v1674_v11, 16  ;;  %v200_v14 = vshll.u32 %v1674_v11, 16  ;;  %1976 = vmatpush3.bf16.msra.mxu0 %v2177_v7  ;;  %v1708_v23 = vcombine.low %v344_v20, %v428_v21  ;;  %v520_v38 = vld [vmem:[%s2326_s29 + $0x4] sm:$0xf]  ;;  %v613_v47 = vld [vmem:[%s2326_s29] sm:$0x8] }
  0x14   : > { %1988 = vmatpush3.bf16.msra.mxu1 %v2178_v10  ;;  %1993 = vmatprep.subr.bf16.mxu0 %v2261_v1  ;;  %v357_v34 = vrot.slane %v1694_v29, 1  ;;  %v1722_v40 = vcombine.low %v519_v36, %v520_v38  ;;  %v1736_v52 = vcombine.low %v613_v47, %v520_v38  ;;  %v697_v53 = vld [vmem:[%s2326_s29] sm:$0x8]  ;;  %v698_v54 = vld [vmem:[%s2326_s29 + $0x4] sm:$0xf]  ;;  %v727_v4 = vshll.u32 %v1751_v62, 16 }
  0x15   : > { %v202_v15 = vrot.slane %v200_v14, 1  ;;  %2005 = vmatprep.subr.bf16.mxu1 %v2261_v1  ;;  %v442_v27 = vshrl.u32 %v1708_v23, 16  ;;  %v445_v28 = vshll.u32 %v1708_v23, 16  ;;  %v1750_v59 = vcombine.low %v697_v53, %v698_v54  ;;  %v2206_v7 = vld [vmem:[%s2644_s1 + $0xf0] sm:$0xff]   ;;  %v2208_v9 = vld [vmem:[%s2644_s1 + $0xf8] sm:$0xff]   ;;  %v2212_v12 = vld [vmem:[%s2644_s1 + $0x100] sm:$0xff]  }
  0x16   : > { %v536_v43 = vshrl.u32 %v1722_v40, 16  ;;  %v539_v44 = vshll.u32 %v1722_v40, 16  ;;  %v626_v56 = vrot.slane %v1736_v52, 3  ;;  %v729_v11 = vrot.slane %v727_v4, 4  ;;  %v2215_v20 = vld [vmem:[%s2644_s1 + $0x128] sm:$0xff]   ;;  %v2216_v21 = vld [vmem:[%s2644_s1 + $0x110] sm:$0xff]  }
  0x17   : > { %v203_v18 = vor.u32 %v202_v15, %v198_v13  ;;  %1990 = vmatmul.mubr.msk.bf16.vlgmr.msra.gmra.mrb[0].mxu1 %vm228_vm1, %v1680_v16  ;;  %v444_v31 = vrot.slane %v442_v27, 1  ;;  %v447_v32 = vrot.slane %v445_v28, 2  ;;  %v719_v63 = vshrl.u32 %v1750_v59, 16  ;;  %v2213_v13 = vld [vmem:[%s2644_s1 + $0x120] sm:$0xff]   ;;  %v2218_v27 = vld [vmem:[%s2644_s1 + $0x118] sm:$0xff]   ;;  %v2226_v40 = vld [vmem:[%s2644_s1 + $0x150] sm:$0xff]  }
  0x18   : > { %2006 = vmatpush3.bf16.msra.mxu1 %v2182_v19  ;;  %2013 = vmatprep.mubr.msk.bf16.mxu1 %vm2262_vm0, %v2261_v1  ;;  %v538_v50 = vrot.slane %v536_v43, 2  ;;  %v541_v51 = vrot.slane %v539_v44, 3  ;;  %v722_v0 = vshll.u32 %v1750_v59, 16  ;;  %v1765_v15 = vcombine.low %v698_v54, %v699_v58  ;;  %v881_v16 = vld [vmem:[%s2326_s29 + $0x4] sm:$0xe]  ;;  %v2227_v43 = vld [vmem:[%s2644_s1 + $0x170] sm:$0xff]  }
  0x19   : > { %1978 = vmatmul.mubr.msk.bf16.vlgmr.msra.gmra.mrb[0].mxu0 %vm228_vm1, %v203_v18  ;;  %2007 = vmatprep.subr.bf16.mxu1 %v2261_v1  ;;  %v448_v37 = vor.u32 %v447_v32, %v444_v31  ;;  %v721_v5 = vrot.slane %v719_v63, 3  ;;  %v2214_v18 = vld [vmem:[%s2644_s1 + $0x108] sm:$0xff]   ;;  %v2232_v53 = vld [vmem:[%s2644_s1 + $0x180] sm:$0xff]   ;;  %v2236_v62 = vld [vmem:[%s2644_s1 + $0x190] sm:$0xff]  }
  0x1a   : > { %1994 = vmatpush3.bf16.msra.mxu0 %v2181_v17  ;;  %2001 = vmatprep.mubr.msk.bf16.mxu0 %vm2262_vm0, %v2261_v1  ;;  %v542_v55 = vor.u32 %v541_v51, %v538_v50  ;;  %v724_v6 = vrot.slane %v722_v0, 4  ;;  %v2472_v17 = vld [vmem:[%s2326_s29 + $0x8] sm:$0x7]  ;;  %v2238_v4 = vld [vmem:[%s2644_s1 + $0x198] sm:$0xff]  }
  0x1b   : > { %1995 = vmatprep.subr.bf16.mxu0 %v2261_v1  ;;  %v1793_v19 = vcombine.low %v881_v16, %v2472_v17  ;;  %v1143_v36 = vld [vmem:[%s2326_s29 + $0x8] sm:$0xf] }
  0x1c   : > { %2008 = vmatpush3.bf16.msra.mxu1 %v2184_v24  ;;  %v725_v10 = vor.u32 %v724_v6, %v721_v5  ;;  %v1235_v50 = vld [vmem:[%s2326_s29 + $0x8] sm:$0xf] }
  0x1d   : > { %2009 = vmatprep.subr.bf16.mxu1 %v2261_v1  ;;  %v982_v23 = vshrl.u32 %v1793_v19, 16  ;;  %v985_v24 = vshll.u32 %v1793_v19, 16  ;;  %v1507_v19 = vld [vmem:[%s2326_s29 + $0x8] sm:$0xe] }
  0x1e   : > { %1996 = vmatpush3.bf16.msra.mxu0 %v2183_v22  ;;  %v730_v14 = vsel %vm717_vm2, %v725_v10, %v729_v11  ;;  %v882_v22 = vld [vmem:[%s2326_s29 + $0x8] sm:$0x3]  ;;  %v2243_v10 = vld [vmem:[%s2644_s1 + $0x1c0] sm:$0xff]   ;;  %v1417_v11 = vld [vmem:[%s2326_s29 + $0xc] sm:$0x3] }
  0x1f   : > { %1997 = vmatprep.subr.bf16.mxu0 %v2261_v1  ;;  %v984_v28 = vrot.slane %v982_v23, 1  ;;  %v987_v29 = vrot.slane %v985_v24, 2  ;;  %v1878_v23 = vcombine.low %v1507_v19, %v1417_v11  ;;  %v2250_v24 = vld [vmem:[%s2644_s1 + $0x1f8] sm:$0xff]  }
  0x20   : > { %2010 = vmatpush3.bf16.msra.mxu1 %v2186_v26  ;;  %v1779_v26 = vcombine.low %v881_v16, %v882_v22  ;;  %v2249_v22 = vld [vmem:[%s2644_s1 + $0x1d8] sm:$0xff]  }
  0x21   : > { %2011 = vmatprep.subr.bf16.mxu1 %v2261_v1  ;;  %v988_v32 = vor.u32 %v987_v29, %v984_v28 }
  0x22   : > { %1998 = vmatpush3.bf16.msra.mxu0 %v2185_v25  ;;  %v2217_v25 = vld [vmem:[%s2644_s1 + $0x130] sm:$0xff]   ;;  %v897_v31 = vrot.slane %v1779_v26, 1  ;;  %v1520_v26 = vrot.slane %v1878_v23, 1 }
  0x23   : > { %1999 = vmatprep.subr.bf16.mxu0 %v2261_v1 }
  0x24   : > { %2012 = vmatpush3.bf16.msra.mxu1 %v2188_v33  ;;  %v2222_v33 = vld [vmem:[%s2644_s1 + $0x140] sm:$0xff]  }
  0x25   : > { %2029 = vmatprep.subr.bf16.mxu1 %v2261_v1 }
  0x26   : > { %2000 = vmatpush3.bf16.msra.mxu0 %v2187_v30  ;;  %v2219_v30 = vld [vmem:[%s2644_s1 + $0x138] sm:$0xff]  }
  0x27   : > { %2017 = vmatprep.subr.bf16.mxu0 %v2261_v1  ;;  %2014 = vmatmul.mubr.msk.bf16.vlgmr.msra.gmra.mrb[4].mxu1 %vm228_vm1, %v448_v37  ;;  %v2224_v37 = vld [vmem:[%s2644_s1 + $0x148] sm:$0xff]  }
  0x28   : > { %2030 = vmatpush3.bf16.msra.mxu1 %v2192_v39  ;;  %2037 = vmatprep.mubr.msk.bf16.mxu1 %vm2262_vm0, %v2261_v1  ;;  %v2225_v39 = vld [vmem:[%s2644_s1 + $0x168] sm:$0xff]  }
  0x29   : > { %2002 = vmatmul.mubr.msk.bf16.vlgmr.msra.gmra.mrb[4].mxu0 %vm228_vm1, %v357_v34  ;;  %2031 = vmatprep.subr.bf16.mxu1 %v2261_v1  ;;  %v2223_v34 = vld [vmem:[%s2644_s1 + $0x160] sm:$0xff]  }
  0x2a   : > { %2018 = vmatpush3.bf16.msra.mxu0 %v2191_v35  ;;  %2025 = vmatprep.mubr.msk.bf16.mxu0 %vm2262_vm0, %v2261_v1  ;;  %v1059_v35 = vld [vmem:[%s2326_s29 + $0x4] sm:$0xc] }
  0x2b   : > { %2019 = vmatprep.subr.bf16.mxu0 %v2261_v1  ;;  %v1821_v38 = vcombine.low %v1059_v35, %v1143_v36  ;;  %v1807_v44 = vcombine.low %v1059_v35, %v2472_v17  ;;  %v2247_v17 = vld [vmem:[%s2644_s1 + $0x1d0] sm:$0xff]  }
  0x2c   : > { %2032 = vmatpush3.bf16.msra.mxu1 %v2194_v42 }
  0x2d   : > { %2033 = vmatprep.subr.bf16.mxu1 %v2261_v1  ;;  %v1160_v42 = vshll.u32 %v1821_v38, 16  ;;  %v1072_v51 = vrot.slane %v1807_v44, 2 }
  0x2e   : > { %2020 = vmatpush3.bf16.msra.mxu0 %v2193_v41  ;;  %v1157_v41 = vshrl.u32 %v1821_v38, 16 }
  0x2f   : > { %2021 = vmatprep.subr.bf16.mxu0 %v2261_v1  ;;  %v1162_v47 = vrot.slane %v1160_v42, 3 }
  0x30   : > { %2034 = vmatpush3.bf16.msra.mxu1 %v2196_v46  ;;  %v1159_v46 = vrot.slane %v1157_v41, 2 }
  0x31   : > { %2035 = vmatprep.subr.bf16.mxu1 %v2261_v1 }
  0x32   : > { %2022 = vmatpush3.bf16.msra.mxu0 %v2195_v45  ;;  %v2228_v45 = vld [vmem:[%s2644_s1 + $0x158] sm:$0xff]   ;;  %v1163_v52 = vor.u32 %v1162_v47, %v1159_v46 }
  0x33   : > { %2023 = vmatprep.subr.bf16.mxu0 %v2261_v1 }
  0x34   : > { %2036 = vmatpush3.bf16.msra.mxu1 %v2198_v49  ;;  %v1234_v49 = vld [vmem:[%s2326_s29 + $0x4] sm:$0x8] }
  0x35   : > { %2053 = vmatprep.subr.bf16.mxu1 %v2261_v1  ;;  %v1835_v54 = vcombine.low %v1234_v49, %v1235_v50 }
  0x36   : > { %2024 = vmatpush3.bf16.msra.mxu0 %v2197_v48  ;;  %v2229_v48 = vld [vmem:[%s2644_s1 + $0x178] sm:$0xff]  }
  0x37   : > { %2041 = vmatprep.subr.bf16.mxu0 %v2261_v1  ;;  %2038 = vmatmul.mubr.msk.bf16.vlgmr.msra.gmra.mrb[8].mxu1 %vm228_vm1, %v626_v56  ;;  %v1236_v56 = vld [vmem:[%s2326_s29 + $0xc] sm:$0x1]  ;;  %v1255_v59 = vshrl.u32 %v1835_v54, 16 }
  0x38   : > { %2054 = vmatpush3.bf16.msra.mxu1 %v2202_v60  ;;  %2061 = vmatprep.mubr.msk.bf16.mxu1 %vm2262_vm0, %v2261_v1  ;;  %v1836_v58 = vcombine.low %v1236_v56, %v1236_v56  ;;  %v1258_v60 = vshll.u32 %v1835_v54, 16 }
  0x39   : > { %2026 = vmatmul.mubr.msk.bf16.vlgmr.msra.gmra.mrb[8].mxu0 %vm228_vm1, %v542_v55  ;;  %2055 = vmatprep.subr.bf16.mxu1 %v2261_v1  ;;  %v2233_v55 = vld [vmem:[%s2644_s1 + $0x1a0] sm:$0xff]   ;;  %v1257_v63 = vrot.slane %v1255_v59, 3 }
  0x3a   : > { %2042 = vmatpush3.bf16.msra.mxu0 %v2201_v57  ;;  %2049 = vmatprep.mubr.msk.bf16.mxu0 %vm2262_vm0, %v2261_v1  ;;  %v2234_v57 = vld [vmem:[%s2644_s1 + $0x188] sm:$0xff]   ;;  %v1260_v0 = vrot.slane %v1258_v60, 4 }
  0x3b   : > { %2043 = vmatprep.subr.bf16.mxu0 %v2261_v1 }
  0x3c   : > { %2056 = vmatpush3.bf16.msra.mxu1 %v2204_v2  ;;  %v1263_v2 = vshll.u32 %v1836_v58, 16  ;;  %v1261_v5 = vor.u32 %v1260_v0, %v1257_v63 }
  0x3d   : > { %2057 = vmatprep.subr.bf16.mxu1 %v2261_v1 }
  0x3e   : > { %2044 = vmatpush3.bf16.msra.mxu0 %v2203_v61  ;;  %v2235_v61 = vld [vmem:[%s2644_s1 + $0x1a8] sm:$0xff]   ;;  %v1265_v6 = vrot.slane %v1263_v2, 4 }
  0x3f   : > { %2045 = vmatprep.subr.bf16.mxu0 %v2261_v1 }
  0x40   : > { %2058 = vmatpush3.bf16.msra.mxu1 %v2206_v7  ;;  %v2239_v7 = vld [vmem:[%s2644_s1 + $0x1b8] sm:$0xff]  }
  0x41   : > { %2059 = vmatprep.subr.bf16.mxu1 %v2261_v1 }
  0x42   : > { %2046 = vmatpush3.bf16.msra.mxu0 %v2205_v3  ;;  %v2237_v3 = vld [vmem:[%s2644_s1 + $0x1b0] sm:$0xff]  }
  0x43   : > { %2047 = vmatprep.subr.bf16.mxu0 %v2261_v1 }
  0x44   : > { %2060 = vmatpush3.bf16.msra.mxu1 %v2208_v9  ;;  %v1850_v9 = vcombine.low %v1235_v50, %v1236_v56 }
  0x45   : > { %2077 = vmatprep.subr.bf16.mxu1 %v2261_v1 }
  0x46   : > { %2048 = vmatpush3.bf16.msra.mxu0 %v2207_v8  ;;  %v1266_v8 = vsel %vm717_vm2, %v1261_v5, %v1265_v6 }
  0x47   : > { %2065 = vmatprep.subr.bf16.mxu0 %v2261_v1  ;;  %2062 = vmatmul.mubr.msk.bf16.vlgmr.msra.gmra.mrb[12].mxu1 %vm228_vm1, %v1765_v15  ;;  %v2246_v15 = vld [vmem:[%s2644_s1 + $0x1e8] sm:$0xff]  }
  0x48   : > { %2078 = vmatpush3.bf16.msra.mxu1 %v2213_v13  ;;  %2085 = vmatprep.mubr.msk.bf16.mxu1 %vm2262_vm0, %v2261_v1  ;;  %v1864_v13 = vcombine.low %v1235_v50, %v1417_v11 }
  0x49   : > { %2050 = vmatmul.mubr.msk.bf16.vlgmr.msra.gmra.mrb[12].mxu0 %vm228_vm1, %v730_v14  ;;  %2079 = vmatprep.subr.bf16.mxu1 %v2261_v1  ;;  %v2245_v14 = vld [vmem:[%s2644_s1 + $0x1c8] sm:$0xff]  }
  0x4a   : > { %2066 = vmatpush3.bf16.msra.mxu0 %v2212_v12  ;;  %2073 = vmatprep.mubr.msk.bf16.mxu0 %vm2262_vm0, %v2261_v1  ;;  %v2244_v12 = vld [vmem:[%s2644_s1 + $0x1e0] sm:$0xff]   ;;  %v1433_v16 = vshll.u32 %v1864_v13, 16 }
  0x4b   : > { %2067 = vmatprep.subr.bf16.mxu0 %v2261_v1 }
  0x4c   : > { %2080 = vmatpush3.bf16.msra.mxu1 %v2215_v20  ;;  %v1431_v20 = vshrl.u32 %v1864_v13, 16 }
  0x4d   : > { %2081 = vmatprep.subr.bf16.mxu1 %v2261_v1 }
  0x4e   : > { %2068 = vmatpush3.bf16.msra.mxu0 %v2214_v18  ;;  %v2248_v18 = vld [vmem:[%s2644_s1 + $0x1f0] sm:$0xff]  }
  0x4f   : > { %2069 = vmatprep.subr.bf16.mxu0 %v2261_v1 }
  0x50   : > { %2082 = vmatpush3.bf16.msra.mxu1 %v2217_v25 }
  0x51   : > { %2083 = vmatprep.subr.bf16.mxu1 %v2261_v1 }
  0x52   : > { %2070 = vmatpush3.bf16.msra.mxu0 %v2216_v21  ;;  %v1435_v21 = vrot.slane %v1433_v16, 1 }
  0x53   : > { %2071 = vmatprep.subr.bf16.mxu0 %v2261_v1 }
  0x54   : > { %2084 = vmatpush3.bf16.msra.mxu1 %v2219_v30  ;;  %v1436_v25 = vor.u32 %v1435_v21, %v1431_v20 }
  0x55   : > { %2101 = vmatprep.subr.bf16.mxu1 %v2261_v1 }
  0x56   : > { %2072 = vmatpush3.bf16.msra.mxu0 %v2218_v27 }
  0x57   : > { %2089 = vmatprep.subr.bf16.mxu0 %v2261_v1  ;;  %2086 = vmatmul.mubr.msk.bf16.vlgmr.msra.gmra.mrb[16].mxu1 %vm228_vm1, %v988_v32 }
  0x58   : > { %2102 = vmatpush3.bf16.msra.mxu1 %v2223_v34  ;;  %2109 = vmatprep.mubr.msk.bf16.mxu1 %vm2262_vm0, %v2261_v1 }
  0x59   : > { %2074 = vmatmul.mubr.msk.bf16.vlgmr.msra.gmra.mrb[16].mxu0 %vm228_vm1, %v897_v31  ;;  %2103 = vmatprep.subr.bf16.mxu1 %v2261_v1 }
  0x5a   : > { %2090 = vmatpush3.bf16.msra.mxu0 %v2222_v33  ;;  %2097 = vmatprep.mubr.msk.bf16.mxu0 %vm2262_vm0, %v2261_v1 }
  0x5b   : > { %2091 = vmatprep.subr.bf16.mxu0 %v2261_v1 }
  0x5c   : > { %2104 = vmatpush3.bf16.msra.mxu1 %v2225_v39 }
  0x5d   : > { %2105 = vmatprep.subr.bf16.mxu1 %v2261_v1 }
  0x5e   : > { %2092 = vmatpush3.bf16.msra.mxu0 %v2224_v37 }
  0x5f   : > { %2093 = vmatprep.subr.bf16.mxu0 %v2261_v1 }
  0x60   : > { %2106 = vmatpush3.bf16.msra.mxu1 %v2227_v43 }
  0x61   : > { %2107 = vmatprep.subr.bf16.mxu1 %v2261_v1 }
  0x62   : > { %2094 = vmatpush3.bf16.msra.mxu0 %v2226_v40 }
  0x63   : > { %2095 = vmatprep.subr.bf16.mxu0 %v2261_v1 }
  0x64   : > { %2108 = vmatpush3.bf16.msra.mxu1 %v2229_v48 }
  0x65   : > { %2125 = vmatprep.subr.bf16.mxu1 %v2261_v1 }
  0x66   : > { %2096 = vmatpush3.bf16.msra.mxu0 %v2228_v45 }
  0x67   : > { %2113 = vmatprep.subr.bf16.mxu0 %v2261_v1  ;;  %2110 = vmatmul.mubr.msk.bf16.vlgmr.msra.gmra.mrb[20].mxu1 %vm228_vm1, %v1163_v52 }
  0x68   : > { %2126 = vmatpush3.bf16.msra.mxu1 %v2233_v55  ;;  %2133 = vmatprep.mubr.msk.bf16.mxu1 %vm2262_vm0, %v2261_v1 }
  0x69   : > { %2098 = vmatmul.mubr.msk.bf16.vlgmr.msra.gmra.mrb[20].mxu0 %vm228_vm1, %v1072_v51  ;;  %2127 = vmatprep.subr.bf16.mxu1 %v2261_v1 }
  0x6a   : > { %2114 = vmatpush3.bf16.msra.mxu0 %v2232_v53  ;;  %2121 = vmatprep.mubr.msk.bf16.mxu0 %vm2262_vm0, %v2261_v1 }
  0x6b   : > { %2115 = vmatprep.subr.bf16.mxu0 %v2261_v1 }
  0x6c   : > { %2128 = vmatpush3.bf16.msra.mxu1 %v2235_v61 }
  0x6d   : > { %2129 = vmatprep.subr.bf16.mxu1 %v2261_v1 }
  0x6e   : > { %2116 = vmatpush3.bf16.msra.mxu0 %v2234_v57 }
  0x6f   : > { %2117 = vmatprep.subr.bf16.mxu0 %v2261_v1 }
  0x70   : > { %2130 = vmatpush3.bf16.msra.mxu1 %v2237_v3 }
  0x71   : > { %2131 = vmatprep.subr.bf16.mxu1 %v2261_v1 }
  0x72   : > { %2118 = vmatpush3.bf16.msra.mxu0 %v2236_v62 }
  0x73   : > { %2119 = vmatprep.subr.bf16.mxu0 %v2261_v1 }
  0x74   : > { %2132 = vmatpush3.bf16.msra.mxu1 %v2239_v7 }
  0x75   : > { %2149 = vmatprep.subr.bf16.mxu1 %v2261_v1 }
  0x76   : > { %2120 = vmatpush3.bf16.msra.mxu0 %v2238_v4 }
  0x77   : > { %2137 = vmatprep.subr.bf16.mxu0 %v2261_v1  ;;  %2134 = vmatmul.mubr.msk.bf16.vlgmr.msra.gmra.mrb[24].mxu1 %vm228_vm1, %v1850_v9 }
  0x78   : > { %2150 = vmatpush3.bf16.msra.mxu1 %v2244_v12  ;;  %2157 = vmatprep.mubr.msk.bf16.mxu1 %vm2262_vm0, %v2261_v1 }
  0x79   : > { %2122 = vmatmul.mubr.msk.bf16.vlgmr.msra.gmra.mrb[24].mxu0 %vm228_vm1, %v1266_v8  ;;  %2151 = vmatprep.subr.bf16.mxu1 %v2261_v1 }
  0x7a   : > { %2138 = vmatpush3.bf16.msra.mxu0 %v2243_v10  ;;  %2145 = vmatprep.mubr.msk.bf16.mxu0 %vm2262_vm0, %v2261_v1 }
  0x7b   : > { %2139 = vmatprep.subr.bf16.mxu0 %v2261_v1 }
  0x7c   : > { %2152 = vmatpush3.bf16.msra.mxu1 %v2246_v15 }
  0x7d   : > { %2153 = vmatprep.subr.bf16.mxu1 %v2261_v1 }
  0x7e   : > { %2140 = vmatpush3.bf16.msra.mxu0 %v2245_v14 }
  0x7f   : > { %2141 = vmatprep.subr.bf16.mxu0 %v2261_v1 }
  0x80   : > { %2154 = vmatpush3.bf16.msra.mxu1 %v2248_v18 }
  0x81   : > { %2155 = vmatprep.subr.bf16.mxu1 %v2261_v1 }
  0x82   : > { %2142 = vmatpush3.bf16.msra.mxu0 %v2247_v17 }
  0x83   : > { %2143 = vmatprep.subr.bf16.mxu0 %v2261_v1 }
  0x84   : > { %2156 = vmatpush3.bf16.msra.mxu1 %v2250_v24 }
  0x86   : > { %2144 = vmatpush3.bf16.msra.mxu0 %v2249_v22 }
  0x87   : > { %2158 = vmatmul.mubr.msk.bf16.vlgmr.msra.gmra.mrb[28].mxu1 %vm228_vm1, %v1520_v26 }
  0x89   : > { %2146 = vmatmul.mubr.msk.bf16.vlgmr.msra.gmra.mrb[28].mxu0 %vm228_vm1, %v1436_v25 }
  0xea   : > { %v337_v28 = vpop.f32.mrb[0].mxu1 }
  0xeb   : > { %v1991_v31 = vpop.f32.mrb[1].mxu1 }
  0xec   : > { %v266_v27 = vpop.f32.mrb[0].mxu0  ;;  %v340_v33 = vpop.f32.mrb[2].mxu1 }
  0xed   : > { %v1979_v29 = vpop.f32.mrb[1].mxu0  ;;  %v338_v30 = vadd.f32 %v337_v28, %v266_v27  ;;  %v1992_v36 = vpop.f32.mrb[3].mxu1 }
  0xee   : > { %v269_v32 = vpop.f32.mrb[2].mxu0 }
  0xef   : > { %v1980_v34 = vpop.f32.mrb[3].mxu0  ;;  %v341_v35 = vadd.f32 %v340_v33, %v269_v32 }
  0xfa   : > { %v510_v38 = vpop.f32.mrb[4].mxu1 }
  0xfb   : > { %v2015_v40 = vpop.f32.mrb[5].mxu1 }
  0xfc   : > { %v419_v37 = vpop.f32.mrb[4].mxu0  ;;  %v513_v44 = vpop.f32.mrb[6].mxu1 }
  0xfd   : > { %v426_v1 = vadd.f32 %v419_v37, %v338_v30  ;;  %v2003_v39 = vpop.f32.mrb[5].mxu0  ;;  %v2016_v46 = vpop.f32.mrb[7].mxu1 }
  0xfe   : > { %v422_v41 = vpop.f32.mrb[6].mxu0 }
  0xff   : > { %v517_v42 = vadd.f32 %v510_v38, %v426_v1  ;;  %v427_v43 = vadd.f32 %v422_v41, %v341_v35  ;;  %v2004_v45 = vpop.f32.mrb[7].mxu0 }
 0x101   : > { %v518_v47 = vadd.f32 %v513_v44, %v427_v43 }
 0x10a   : > { %v688_v50 = vpop.f32.mrb[8].mxu1 }
 0x10b   : > { %v2039_v52 = vpop.f32.mrb[9].mxu1 }
 0x10c   : > { %v604_v48 = vpop.f32.mrb[8].mxu0  ;;  %v691_v56 = vpop.f32.mrb[10].mxu1 }
 0x10d   : > { %v611_v49 = vadd.f32 %v604_v48, %v517_v42  ;;  %v2027_v51 = vpop.f32.mrb[9].mxu0  ;;  %v2040_v58 = vpop.f32.mrb[11].mxu1  ;;  %v1884_v48 = vld [vmem:[%s2645_s2] ss:$0 sm:$0xff] }
 0x10e   : > { %v607_v53 = vpop.f32.mrb[10].mxu0 }
 0x10f   : > { %v695_v54 = vadd.f32 %v688_v50, %v611_v49  ;;  %v612_v55 = vadd.f32 %v607_v53, %v518_v47  ;;  %v2028_v57 = vpop.f32.mrb[11].mxu0 }
 0x111   : > { %v696_v59 = vadd.f32 %v691_v56, %v612_v55 }
 0x11a   : > { %v872_v62 = vpop.f32.mrb[12].mxu1 }
 0x11b   : > { %v2063_v0 = vpop.f32.mrb[13].mxu1 }
 0x11c   : > { %v792_v60 = vpop.f32.mrb[12].mxu0  ;;  %v875_v5 = vpop.f32.mrb[14].mxu1 }
 0x11d   : > { %v799_v61 = vadd.f32 %v792_v60, %v695_v54  ;;  %v2051_v63 = vpop.f32.mrb[13].mxu0  ;;  %v2064_v7 = vpop.f32.mrb[15].mxu1 }
 0x11e   : > { %v795_v2 = vpop.f32.mrb[14].mxu0 }
 0x11f   : > { %v879_v3 = vadd.f32 %v872_v62, %v799_v61  ;;  %v800_v4 = vadd.f32 %v795_v2, %v696_v59  ;;  %v2052_v6 = vpop.f32.mrb[15].mxu0 }
 0x121   : > { %v880_v8 = vadd.f32 %v875_v5, %v800_v4 }
 0x12a   : > { %v1050_v11 = vpop.f32.mrb[16].mxu1 }
 0x12b   : > { %v2087_v13 = vpop.f32.mrb[17].mxu1 }
 0x12c   : > { %v959_v9 = vpop.f32.mrb[16].mxu0  ;;  %v1053_v17 = vpop.f32.mrb[18].mxu1 }
 0x12d   : > { %v966_v10 = vadd.f32 %v959_v9, %v879_v3  ;;  %v2075_v12 = vpop.f32.mrb[17].mxu0  ;;  %v2088_v19 = vpop.f32.mrb[19].mxu1 }
 0x12e   : > { %v962_v14 = vpop.f32.mrb[18].mxu0 }
 0x12f   : > { %v1057_v15 = vadd.f32 %v1050_v11, %v966_v10  ;;  %v967_v16 = vadd.f32 %v962_v14, %v880_v8  ;;  %v2076_v18 = vpop.f32.mrb[19].mxu0 }
 0x131   : > { %v1058_v20 = vadd.f32 %v1053_v17, %v967_v16 }
 0x13a   : > { %v1225_v23 = vpop.f32.mrb[20].mxu1 }
 0x13b   : > { %v2111_v25 = vpop.f32.mrb[21].mxu1 }
 0x13c   : > { %v1134_v21 = vpop.f32.mrb[20].mxu0  ;;  %v1228_v29 = vpop.f32.mrb[22].mxu1 }
 0x13d   : > { %v1141_v22 = vadd.f32 %v1134_v21, %v1057_v15  ;;  %v2099_v24 = vpop.f32.mrb[21].mxu0  ;;  %v2112_v31 = vpop.f32.mrb[23].mxu1 }
 0x13e   : > { %v1137_v26 = vpop.f32.mrb[22].mxu0 }
 0x13f   : > { %v1232_v27 = vadd.f32 %v1225_v23, %v1141_v22  ;;  %v1142_v28 = vadd.f32 %v1137_v26, %v1058_v20  ;;  %v2100_v30 = vpop.f32.mrb[23].mxu0 }
 0x141   : > { %v1233_v32 = vadd.f32 %v1228_v29, %v1142_v28 }
 0x14a   : > { %v1408_v35 = vpop.f32.mrb[24].mxu1 }
 0x14b   : > { %v2135_v37 = vpop.f32.mrb[25].mxu1 }
 0x14c   : > { %v1328_v33 = vpop.f32.mrb[24].mxu0  ;;  %v1411_v40 = vpop.f32.mrb[26].mxu1 }
 0x14d   : > { %v1335_v34 = vadd.f32 %v1328_v33, %v1232_v27  ;;  %v2123_v36 = vpop.f32.mrb[25].mxu0  ;;  %v2136_v42 = vpop.f32.mrb[27].mxu1 }
 0x14e   : > { %v1331_v1 = vpop.f32.mrb[26].mxu0 }
 0x14f   : > { %v1415_v38 = vadd.f32 %v1408_v35, %v1335_v34  ;;  %v1336_v39 = vadd.f32 %v1331_v1, %v1233_v32  ;;  %v2124_v41 = vpop.f32.mrb[27].mxu0 }
 0x151   : > { %v1416_v43 = vadd.f32 %v1411_v40, %v1336_v39 }
 0x15a   : > { %v1582_v46 = vpop.f32.mrb[28].mxu1 }
 0x15b   : > { %v2159_v49 = vpop.f32.mrb[29].mxu1 }
 0x15c   : > { %v1498_v44 = vpop.f32.mrb[28].mxu0  ;;  %v1585_v53 = vpop.f32.mrb[30].mxu1 }
 0x15d   : > { %v1505_v45 = vadd.f32 %v1498_v44, %v1415_v38  ;;  %v2147_v47 = vpop.f32.mrb[29].mxu0  ;;  %v2160_v55 = vpop.f32.mrb[31].mxu1 }
 0x15e   : > { %v1501_v50 = vpop.f32.mrb[30].mxu0 }
 0x15f   : > { %v1589_v51 = vadd.f32 %v1582_v46, %v1505_v45  ;;  %v1506_v52 = vadd.f32 %v1501_v50, %v1416_v43  ;;  %v2148_v54 = vpop.f32.mrb[31].mxu0 }
 0x161   : > { %v1598_v56 = vadd.f32 %v1884_v48, %v1589_v51  ;;  %v1590_v57 = vadd.f32 %v1585_v53, %v1506_v52 }
 0x163   : > { %1600 = vst [vmem:[%s170_s7] sm:$0xff] %v1598_v56  ;;  %v1599_v58 = vadd.f32 %v1884_v48, %v1590_v57 }
 0x165   : > { %1601 = vst [vmem:[%s170_s7 + $0x8] sm:$0x3] %v1599_v58 }
 0x166 PF: > { %s13_s12 = sadd.s32 1, %s2259_s12  }
 0x167   : > { %p10_p4 = scmp.ge.s32.totalorder %s13_s12, 4  }
 0x169   :  { %12 = sbr.rel (!%p10_p4) target bundleno = 1 (0x1), region = 77 }

</bundles_post_ra>
